<compile_context>
chip_gen: v7x
topology: tpu7x:2x2x1
jax: 0.10.0
libtpu: 0.0.40
codegen_flags: <defaults>
</compile_context>

<pallas_src>
import jax
import jax.numpy as jnp
from jax.experimental import pallas as pl
from jax.experimental.pallas import tpu as pltpu


KERNEL_SIZE = 7
CHANNELS = [32, 64, 64]   # per ResidualBlock output channels


# ---------------------------------------------------------------------------
# Kernel
# ---------------------------------------------------------------------------

def _im2col_causal(h):
    """h: (B, L, C) -> (B*L, K*C) causal patch matrix (left zero-pad per seq)."""
    B, L, C = h.shape
    hp = jnp.concatenate(
        [jnp.zeros((B, KERNEL_SIZE - 1, C), h.dtype), h], axis=1)
    cols = [hp[:, k:k + L, :] for k in range(KERNEL_SIZE)]
    return jnp.concatenate(cols, axis=-1).reshape(B * L, KERNEL_SIZE * C)


def _conv(h_f32, w_ref, b_ref, *, fused_residual):
    """Causal dilation-1 conv as a single im2col matmul (bf16 in, f32 acc).

    h_f32: (B, L, Cin) f32.  w_ref: (K*Cin, Cout[ + Cout_ds]) bf16.
    If fused_residual, the trailing Cout columns of w are the 1x1 downsample
    (placed in the k=K-1 rows, i.e. applied to the unshifted input) and are
    returned separately WITHOUT relu.
    """
    B, L, _ = h_f32.shape
    p = _im2col_causal(h_f32.astype(jnp.bfloat16))            # (B*L, K*Cin)
    z = jnp.dot(p, w_ref[...], preferred_element_type=jnp.float32)
    z = z + b_ref[...]                                          # f32 bias
    if fused_residual:
        cout = w_ref.shape[1] // 2
        y = jnp.maximum(z[:, :cout], 0.0).reshape(B, L, cout)
        res = z[:, cout:].reshape(B, L, cout)
        return y, res
    cout = w_ref.shape[1]
    return jnp.maximum(z, 0.0).reshape(B, L, cout)


def tcn_kernel(x_ref,
               w1a, b1a, w1b, b1b,
               w2a, b2a, w2b, b2b,
               w3a, b3a, w3b, b3b,
               wfc, bfc,
               out_ref):
    # One tile of B_TILE batch elements per grid step.
    x = x_ref[...].astype(jnp.float32)                 # (B, L, Cin)

    # Block 1: Cin -> 32  (conv1 fused with 1x1 downsample; dropout = identity)
    y, res = _conv(x, w1a, b1a, fused_residual=True)
    h = _conv(y, w1b, b1b, fused_residual=False) + res

    # Block 2: 32 -> 64   (conv1 fused with 1x1 downsample)
    y, res = _conv(h, w2a, b2a, fused_residual=True)
    h = _conv(y, w2b, b2b, fused_residual=False) + res

    # Block 3: 64 -> 64   (identity residual, no downsample)
    y = _conv(h, w3a, b3a, fused_residual=False)
    h = _conv(y, w3b, b3b, fused_residual=False) + h

    # AdaptiveAvgPool1d(1) == mean over the length axis, then Linear.
    pooled = jnp.mean(h, axis=1)                        # (B, 64) f32
    logits = jnp.dot(pooled.astype(jnp.bfloat16), wfc[...],
                     preferred_element_type=jnp.float32) + bfc[...]
    out_ref[0] = logits.astype(out_ref.dtype)


# ---------------------------------------------------------------------------
# Host wrapper
# ---------------------------------------------------------------------------

def tcn_forward(x_nlc, prepped_params, num_classes, b_tile=8):
    """x_nlc: (N, L, Cin) f32; prepped_params from prepare_params()."""
    N, L, Cin = x_nlc.shape

    # Batch several sequences per grid step, but keep >= 2 grid steps so the
    # "parallel" axis can shard across both v7x TensorCores.
    b_tile = max(1, min(b_tile, pl.cdiv(N, 2)))
    n_pad = (-N) % b_tile
    if n_pad:
        x_nlc = jnp.concatenate(
            [x_nlc, jnp.zeros((n_pad, L, Cin), x_nlc.dtype)], axis=0)
    num_steps = (N + n_pad) // b_tile

    def const_spec(a):
        nd = a.ndim
        return pl.BlockSpec(a.shape, lambda n, _nd=nd: (0,) * _nd)

    in_specs = [pl.BlockSpec((b_tile, L, Cin), lambda n: (n, 0, 0))]
    in_specs += [const_spec(p) for p in prepped_params]
    out_specs = pl.BlockSpec((1, b_tile, num_classes), lambda n: (n, 0, 0))

    out = pl.pallas_call(
        tcn_kernel,
        out_shape=jax.ShapeDtypeStruct((num_steps, b_tile, num_classes),
                                       jnp.float32),
        grid_spec=pltpu.PrefetchScalarGridSpec(
            num_scalar_prefetch=0,
            grid=(num_steps,),
            in_specs=in_specs,
            out_specs=out_specs,
        ),
        compiler_params=pltpu.CompilerParams(
            dimension_semantics=("parallel",)),
    )(x_nlc, *prepped_params)
    return out.reshape(num_steps * b_tile, num_classes)[:N]


# ---------------------------------------------------------------------------
# Parameters
# ---------------------------------------------------------------------------

def init_params(key, input_channels, num_classes):
    """Deterministic synthetic parameters (shapes match the PyTorch module)."""
    params = []
    chans = [input_channels] + CHANNELS
    keys = iter(jax.random.split(key, 64))

    def conv_w(cin, cout):
        scale = 1.0 / jnp.sqrt(cin * KERNEL_SIZE)
        return scale * jax.random.normal(next(keys), (KERNEL_SIZE, cin, cout),
                                         jnp.float32)

    for i in range(3):
        cin, cout = chans[i], chans[i + 1]
        params += [conv_w(cin, cout),
                   0.01 * jax.random.normal(next(keys), (1, cout), jnp.float32)]
        params += [conv_w(cout, cout),
                   0.01 * jax.random.normal(next(keys), (1, cout), jnp.float32)]
        if cin != cout:   # downsample 1x1 conv
            params += [
                (1.0 / jnp.sqrt(cin)) *
                jax.random.normal(next(keys), (cin, cout), jnp.float32),
                0.01 * jax.random.normal(next(keys), (1, cout), jnp.float32),
            ]
    params += [
        (1.0 / jnp.sqrt(64.0)) *
        jax.random.normal(next(keys), (64, num_classes), jnp.float32),
        0.01 * jax.random.normal(next(keys), (1, num_classes), jnp.float32),
    ]
    return tuple(params)


def prepare_params(raw):
    """Flatten conv weights for im2col, fuse 1x1 downsamples, cast to bf16."""
    (w11, b11, w12, b12, wd1, bd1,
     w21, b21, w22, b22, wd2, bd2,
     w31, b31, w32, b32, wfc, bfc) = raw
    K = KERNEL_SIZE

    def flat(w):
        k, cin, cout = w.shape
        return w.reshape(k * cin, cout)

    def fuse(w, wd):
        # Downsample reads the unshifted input == the k=K-1 patch columns.
        cin = w.shape[1]
        wd_pad = jnp.concatenate(
            [jnp.zeros(((K - 1) * cin, wd.shape[1]), jnp.float32), wd], axis=0)
        return jnp.concatenate([flat(w), wd_pad], axis=1)

    bf = lambda a: a.astype(jnp.bfloat16)
    f32 = lambda a: a.astype(jnp.float32)

    return (
        bf(fuse(w11, wd1)), f32(jnp.concatenate([b11, bd1], axis=1)),
        bf(flat(w12)), f32(b12),
        bf(fuse(w21, wd2)), f32(jnp.concatenate([b21, bd2], axis=1)),
        bf(flat(w22)), f32(b22),
        bf(flat(w31)), f32(b31),
        bf(flat(w32)), f32(b32),
        bf(wfc), f32(bfc),
    )


# ---------------------------------------------------------------------------
# Pure-jnp reference (same math / same bf16-operand, f32-acc dtype flow)
# ---------------------------------------------------------------------------

def tcn_reference(x_nlc, raw, num_classes):
    (w11, b11, w12, b12, wd1, bd1,
     w21, b21, w22, b22, wd2, bd2,
     w31, b31, w32, b32, wfc, bfc) = raw
    bf = jnp.bfloat16

    def causal_conv(h, w, b):
        K, cin, cout = w.shape
        L = h.shape[0]
        hp = jnp.concatenate([jnp.zeros((K - 1, cin), jnp.float32), h], axis=0)
        acc = jnp.zeros((L, cout), jnp.float32)
        for k in range(K):
            acc = acc + jnp.dot(hp[k:k + L].astype(bf), w[k].astype(bf),
                                preferred_element_type=jnp.float32)
        return jnp.maximum(acc + b, 0.0)

    def block(h, w1, b1, w2, b2, wd, bd):
        if wd is None:
            res = h
        else:
            res = jnp.dot(h.astype(bf), wd.astype(bf),
                          preferred_element_type=jnp.float32) + bd
        y = causal_conv(h, w1, b1)
        y = causal_conv(y, w2, b2)
        return y + res

    outs = []
    for n in range(x_nlc.shape[0]):
        h = x_nlc[n].astype(jnp.float32)
        h = block(h, w11, b11, w12, b12, wd1, bd1)
        h = block(h, w21, b21, w22, b22, wd2, bd2)
        h = block(h, w31, b31, w32, b32, None, None)
        pooled = jnp.mean(h, axis=0, keepdims=True)
        outs.append(jnp.dot(pooled.astype(bf), wfc.astype(bf),
                            preferred_element_type=jnp.float32) + bfc)
    return jnp.concatenate(outs, axis=0)


if __name__ == "__main__":
    input_channels = 4
    num_classes = 3
    N, L = 8, 16     # small, exercises b_tile>1 and a 2-step parallel grid

    key = jax.random.PRNGKey(0)
    k_x, k_p = jax.random.split(key)

    # PyTorch-convention input (N, C, L), transposed to kernel layout (N, L, C).
    x_ncl = jax.random.normal(k_x, (N, input_channels, L), jnp.float32)
    x_nlc = jnp.transpose(x_ncl, (0, 2, 1))

    raw_params = init_params(k_p, input_channels, num_classes)
    prepped = prepare_params(raw_params)

    out = tcn_forward(x_nlc, prepped, num_classes)
    out = jax.block_until_ready(out)

    ref = tcn_reference(x_nlc, raw_params, num_classes)
    assert out.shape == (N, num_classes)
    assert jnp.allclose(out, ref, atol=2e-3, rtol=2e-3), (out, ref)

    print("KERNEL_OK")
</pallas_src>

<mosaic_0001>
module attributes {stable_mosaic.version = 11 : i64} {
  func.func @tcn_kernel(%arg0: i32, %arg1: memref<4x16x4xf32, #tpu.memory_space<vmem>>, %arg2: memref<28x64xbf16, #tpu.memory_space<vmem>>, %arg3: memref<1x64xf32, #tpu.memory_space<vmem>>, %arg4: memref<224x32xbf16, #tpu.memory_space<vmem>>, %arg5: memref<1x32xf32, #tpu.memory_space<vmem>>, %arg6: memref<224x128xbf16, #tpu.memory_space<vmem>>, %arg7: memref<1x128xf32, #tpu.memory_space<vmem>>, %arg8: memref<448x64xbf16, #tpu.memory_space<vmem>>, %arg9: memref<1x64xf32, #tpu.memory_space<vmem>>, %arg10: memref<448x64xbf16, #tpu.memory_space<vmem>>, %arg11: memref<1x64xf32, #tpu.memory_space<vmem>>, %arg12: memref<448x64xbf16, #tpu.memory_space<vmem>>, %arg13: memref<1x64xf32, #tpu.memory_space<vmem>>, %arg14: memref<64x3xbf16, #tpu.memory_space<vmem>>, %arg15: memref<1x3xf32, #tpu.memory_space<vmem>>, %arg16: memref<1x4x3xf32, #tpu.memory_space<vmem>>) attributes {dimension_semantics = [#tpu.dimension_semantics<parallel>], iteration_bounds = array<i64: 2>, scalar_prefetch = 0 : i64, scratch_operands = 0 : i64, tpu.core_type = #tpu.core_type<tc>, window_params = [{transform_indices = @transform_0, window_bounds = array<i64: 4, 16, 4>}, {pipeline_mode = #tpu.pipeline_mode<synchronous>, transform_indices = @transform_1, window_bounds = array<i64: 28, 64>}, {pipeline_mode = #tpu.pipeline_mode<synchronous>, transform_indices = @transform_2, window_bounds = array<i64: 1, 64>}, {pipeline_mode = #tpu.pipeline_mode<synchronous>, transform_indices = @transform_3, window_bounds = array<i64: 224, 32>}, {pipeline_mode = #tpu.pipeline_mode<synchronous>, transform_indices = @transform_4, window_bounds = array<i64: 1, 32>}, {pipeline_mode = #tpu.pipeline_mode<synchronous>, transform_indices = @transform_5, window_bounds = array<i64: 224, 128>}, {pipeline_mode = #tpu.pipeline_mode<synchronous>, transform_indices = @transform_6, window_bounds = array<i64: 1, 128>}, {pipeline_mode = #tpu.pipeline_mode<synchronous>, transform_indices = @transform_7, window_bounds = array<i64: 448, 64>}, {pipeline_mode = #tpu.pipeline_mode<synchronous>, transform_indices = @transform_8, window_bounds = array<i64: 1, 64>}, {pipeline_mode = #tpu.pipeline_mode<synchronous>, transform_indices = @transform_9, window_bounds = array<i64: 448, 64>}, {pipeline_mode = #tpu.pipeline_mode<synchronous>, transform_indices = @transform_10, window_bounds = array<i64: 1, 64>}, {pipeline_mode = #tpu.pipeline_mode<synchronous>, transform_indices = @transform_11, window_bounds = array<i64: 448, 64>}, {pipeline_mode = #tpu.pipeline_mode<synchronous>, transform_indices = @transform_12, window_bounds = array<i64: 1, 64>}, {pipeline_mode = #tpu.pipeline_mode<synchronous>, transform_indices = @transform_13, window_bounds = array<i64: 64, 3>}, {pipeline_mode = #tpu.pipeline_mode<synchronous>, transform_indices = @transform_14, window_bounds = array<i64: 1, 3>}, {transform_indices = @transform_15, window_bounds = array<i64: 1, 4, 3>}]} {
    %c0 = arith.constant 0 : index
    %c0_0 = arith.constant 0 : index
    %c0_1 = arith.constant 0 : index
    %0 = vector.load %arg1[%c0, %c0_0, %c0_1] : memref<4x16x4xf32, #tpu.memory_space<vmem>>, vector<4x16x4xf32>
    %1 = arith.truncf %0 : vector<4x16x4xf32> to vector<4x16x4xbf16>
    %cst = arith.constant 0.000000e+00 : bf16
    %2 = vector.broadcast %cst : bf16 to vector<4x6x4xbf16>
    %3 = tpu.concatenate %2, %1 in 1 : vector<4x6x4xbf16>, vector<4x16x4xbf16> -> vector<4x22x4xbf16>
    %4 = vector.extract_strided_slice %3 {offsets = [0, 0, 0], sizes = [4, 16, 4], strides = [1, 1, 1]} : vector<4x22x4xbf16> to vector<4x16x4xbf16>
    %5 = vector.extract_strided_slice %3 {offsets = [0, 1, 0], sizes = [4, 16, 4], strides = [1, 1, 1]} : vector<4x22x4xbf16> to vector<4x16x4xbf16>
    %6 = vector.extract_strided_slice %3 {offsets = [0, 2, 0], sizes = [4, 16, 4], strides = [1, 1, 1]} : vector<4x22x4xbf16> to vector<4x16x4xbf16>
    %7 = vector.extract_strided_slice %3 {offsets = [0, 3, 0], sizes = [4, 16, 4], strides = [1, 1, 1]} : vector<4x22x4xbf16> to vector<4x16x4xbf16>
    %8 = vector.extract_strided_slice %3 {offsets = [0, 4, 0], sizes = [4, 16, 4], strides = [1, 1, 1]} : vector<4x22x4xbf16> to vector<4x16x4xbf16>
    %9 = vector.extract_strided_slice %3 {offsets = [0, 5, 0], sizes = [4, 16, 4], strides = [1, 1, 1]} : vector<4x22x4xbf16> to vector<4x16x4xbf16>
    %10 = vector.extract_strided_slice %3 {offsets = [0, 6, 0], sizes = [4, 16, 4], strides = [1, 1, 1]} : vector<4x22x4xbf16> to vector<4x16x4xbf16>
    %11 = tpu.concatenate %4, %5, %6, %7, %8, %9, %10 in 2 : vector<4x16x4xbf16>, vector<4x16x4xbf16>, vector<4x16x4xbf16>, vector<4x16x4xbf16>, vector<4x16x4xbf16>, vector<4x16x4xbf16>, vector<4x16x4xbf16> -> vector<4x16x28xbf16>
    %12 = vector.shape_cast %11 : vector<4x16x28xbf16> to vector<64x28xbf16>
    %c0_2 = arith.constant 0 : index
    %c0_3 = arith.constant 0 : index
    %13 = vector.load %arg2[%c0_2, %c0_3] : memref<28x64xbf16, #tpu.memory_space<vmem>>, vector<28x64xbf16>
    %cst_4 = arith.constant dense<0.000000e+00> : vector<64x64xf32>
    %14 = tpu.matmul %12, %13, %cst_4 {dimension_numbers = #tpu.dot_dimension_numbers<[1], [0], [0], [1], [0, 0, 1, 1], [], []>} : vector<64x28xbf16>, vector<28x64xbf16>, vector<64x64xf32> -> vector<64x64xf32>
    %c0_5 = arith.constant 0 : index
    %c0_6 = arith.constant 0 : index
    %15 = vector.load %arg3[%c0_5, %c0_6] : memref<1x64xf32, #tpu.memory_space<vmem>>, vector<1x64xf32>
    %16 = vector.broadcast %15 : vector<1x64xf32> to vector<64x64xf32>
    %17 = arith.addf %14, %16 : vector<64x64xf32>
    %18 = vector.extract_strided_slice %17 {offsets = [0, 0], sizes = [64, 32], strides = [1, 1]} : vector<64x64xf32> to vector<64x32xf32>
    %cst_7 = arith.constant 0.000000e+00 : f32
    %19 = vector.broadcast %cst_7 : f32 to vector<64x32xf32>
    %20 = arith.maximumf %18, %19 : vector<64x32xf32>
    %21 = vector.shape_cast %20 : vector<64x32xf32> to vector<4x16x32xf32>
    %22 = vector.extract_strided_slice %17 {offsets = [0, 32], sizes = [64, 32], strides = [1, 1]} : vector<64x64xf32> to vector<64x32xf32>
    %23 = vector.shape_cast %22 : vector<64x32xf32> to vector<4x16x32xf32>
    %24 = arith.truncf %21 : vector<4x16x32xf32> to vector<4x16x32xbf16>
    %cst_8 = arith.constant 0.000000e+00 : bf16
    %25 = vector.broadcast %cst_8 : bf16 to vector<4x6x32xbf16>
    %26 = tpu.concatenate %25, %24 in 1 : vector<4x6x32xbf16>, vector<4x16x32xbf16> -> vector<4x22x32xbf16>
    %27 = vector.extract_strided_slice %26 {offsets = [0, 0, 0], sizes = [4, 16, 32], strides = [1, 1, 1]} : vector<4x22x32xbf16> to vector<4x16x32xbf16>
    %28 = vector.extract_strided_slice %26 {offsets = [0, 1, 0], sizes = [4, 16, 32], strides = [1, 1, 1]} : vector<4x22x32xbf16> to vector<4x16x32xbf16>
    %29 = vector.extract_strided_slice %26 {offsets = [0, 2, 0], sizes = [4, 16, 32], strides = [1, 1, 1]} : vector<4x22x32xbf16> to vector<4x16x32xbf16>
    %30 = vector.extract_strided_slice %26 {offsets = [0, 3, 0], sizes = [4, 16, 32], strides = [1, 1, 1]} : vector<4x22x32xbf16> to vector<4x16x32xbf16>
    %31 = vector.extract_strided_slice %26 {offsets = [0, 4, 0], sizes = [4, 16, 32], strides = [1, 1, 1]} : vector<4x22x32xbf16> to vector<4x16x32xbf16>
    %32 = vector.extract_strided_slice %26 {offsets = [0, 5, 0], sizes = [4, 16, 32], strides = [1, 1, 1]} : vector<4x22x32xbf16> to vector<4x16x32xbf16>
    %33 = vector.extract_strided_slice %26 {offsets = [0, 6, 0], sizes = [4, 16, 32], strides = [1, 1, 1]} : vector<4x22x32xbf16> to vector<4x16x32xbf16>
    %34 = tpu.concatenate %27, %28, %29, %30, %31, %32, %33 in 2 : vector<4x16x32xbf16>, vector<4x16x32xbf16>, vector<4x16x32xbf16>, vector<4x16x32xbf16>, vector<4x16x32xbf16>, vector<4x16x32xbf16>, vector<4x16x32xbf16> -> vector<4x16x224xbf16>
    %35 = vector.shape_cast %34 : vector<4x16x224xbf16> to vector<64x224xbf16>
    %c0_9 = arith.constant 0 : index
    %c0_10 = arith.constant 0 : index
    %36 = vector.load %arg4[%c0_9, %c0_10] : memref<224x32xbf16, #tpu.memory_space<vmem>>, vector<224x32xbf16>
    %cst_11 = arith.constant dense<0.000000e+00> : vector<64x32xf32>
    %37 = tpu.matmul %35, %36, %cst_11 {dimension_numbers = #tpu.dot_dimension_numbers<[1], [0], [0], [1], [0, 0, 1, 1], [], []>} : vector<64x224xbf16>, vector<224x32xbf16>, vector<64x32xf32> -> vector<64x32xf32>
    %c0_12 = arith.constant 0 : index
    %c0_13 = arith.constant 0 : index
    %38 = vector.load %arg5[%c0_12, %c0_13] : memref<1x32xf32, #tpu.memory_space<vmem>>, vector<1x32xf32>
    %39 = vector.broadcast %38 : vector<1x32xf32> to vector<64x32xf32>
    %40 = arith.addf %37, %39 : vector<64x32xf32>
    %cst_14 = arith.constant 0.000000e+00 : f32
    %41 = vector.broadcast %cst_14 : f32 to vector<64x32xf32>
    %42 = arith.maximumf %40, %41 : vector<64x32xf32>
    %43 = vector.shape_cast %42 : vector<64x32xf32> to vector<4x16x32xf32>
    %44 = arith.addf %43, %23 : vector<4x16x32xf32>
    %45 = arith.truncf %44 : vector<4x16x32xf32> to vector<4x16x32xbf16>
    %cst_15 = arith.constant 0.000000e+00 : bf16
    %46 = vector.broadcast %cst_15 : bf16 to vector<4x6x32xbf16>
    %47 = tpu.concatenate %46, %45 in 1 : vector<4x6x32xbf16>, vector<4x16x32xbf16> -> vector<4x22x32xbf16>
    %48 = vector.extract_strided_slice %47 {offsets = [0, 0, 0], sizes = [4, 16, 32], strides = [1, 1, 1]} : vector<4x22x32xbf16> to vector<4x16x32xbf16>
    %49 = vector.extract_strided_slice %47 {offsets = [0, 1, 0], sizes = [4, 16, 32], strides = [1, 1, 1]} : vector<4x22x32xbf16> to vector<4x16x32xbf16>
    %50 = vector.extract_strided_slice %47 {offsets = [0, 2, 0], sizes = [4, 16, 32], strides = [1, 1, 1]} : vector<4x22x32xbf16> to vector<4x16x32xbf16>
    %51 = vector.extract_strided_slice %47 {offsets = [0, 3, 0], sizes = [4, 16, 32], strides = [1, 1, 1]} : vector<4x22x32xbf16> to vector<4x16x32xbf16>
    %52 = vector.extract_strided_slice %47 {offsets = [0, 4, 0], sizes = [4, 16, 32], strides = [1, 1, 1]} : vector<4x22x32xbf16> to vector<4x16x32xbf16>
    %53 = vector.extract_strided_slice %47 {offsets = [0, 5, 0], sizes = [4, 16, 32], strides = [1, 1, 1]} : vector<4x22x32xbf16> to vector<4x16x32xbf16>
    %54 = vector.extract_strided_slice %47 {offsets = [0, 6, 0], sizes = [4, 16, 32], strides = [1, 1, 1]} : vector<4x22x32xbf16> to vector<4x16x32xbf16>
    %55 = tpu.concatenate %48, %49, %50, %51, %52, %53, %54 in 2 : vector<4x16x32xbf16>, vector<4x16x32xbf16>, vector<4x16x32xbf16>, vector<4x16x32xbf16>, vector<4x16x32xbf16>, vector<4x16x32xbf16>, vector<4x16x32xbf16> -> vector<4x16x224xbf16>
    %56 = vector.shape_cast %55 : vector<4x16x224xbf16> to vector<64x224xbf16>
    %c0_16 = arith.constant 0 : index
    %c0_17 = arith.constant 0 : index
    %57 = vector.load %arg6[%c0_16, %c0_17] : memref<224x128xbf16, #tpu.memory_space<vmem>>, vector<224x128xbf16>
    %cst_18 = arith.constant dense<0.000000e+00> : vector<64x128xf32>
    %58 = tpu.matmul %56, %57, %cst_18 {dimension_numbers = #tpu.dot_dimension_numbers<[1], [0], [0], [1], [0, 0, 1, 1], [], []>} : vector<64x224xbf16>, vector<224x128xbf16>, vector<64x128xf32> -> vector<64x128xf32>
    %c0_19 = arith.constant 0 : index
    %c0_20 = arith.constant 0 : index
    %59 = vector.load %arg7[%c0_19, %c0_20] : memref<1x128xf32, #tpu.memory_space<vmem>>, vector<1x128xf32>
    %60 = vector.broadcast %59 : vector<1x128xf32> to vector<64x128xf32>
    %61 = arith.addf %58, %60 : vector<64x128xf32>
    %62 = vector.extract_strided_slice %61 {offsets = [0, 0], sizes = [64, 64], strides = [1, 1]} : vector<64x128xf32> to vector<64x64xf32>
    %cst_21 = arith.constant 0.000000e+00 : f32
    %63 = vector.broadcast %cst_21 : f32 to vector<64x64xf32>
    %64 = arith.maximumf %62, %63 : vector<64x64xf32>
    %65 = vector.shape_cast %64 : vector<64x64xf32> to vector<4x16x64xf32>
    %66 = vector.extract_strided_slice %61 {offsets = [0, 64], sizes = [64, 64], strides = [1, 1]} : vector<64x128xf32> to vector<64x64xf32>
    %67 = vector.shape_cast %66 : vector<64x64xf32> to vector<4x16x64xf32>
    %68 = arith.truncf %65 : vector<4x16x64xf32> to vector<4x16x64xbf16>
    %cst_22 = arith.constant 0.000000e+00 : bf16
    %69 = vector.broadcast %cst_22 : bf16 to vector<4x6x64xbf16>
    %70 = tpu.concatenate %69, %68 in 1 : vector<4x6x64xbf16>, vector<4x16x64xbf16> -> vector<4x22x64xbf16>
    %71 = vector.extract_strided_slice %70 {offsets = [0, 0, 0], sizes = [4, 16, 64], strides = [1, 1, 1]} : vector<4x22x64xbf16> to vector<4x16x64xbf16>
    %72 = vector.extract_strided_slice %70 {offsets = [0, 1, 0], sizes = [4, 16, 64], strides = [1, 1, 1]} : vector<4x22x64xbf16> to vector<4x16x64xbf16>
    %73 = vector.extract_strided_slice %70 {offsets = [0, 2, 0], sizes = [4, 16, 64], strides = [1, 1, 1]} : vector<4x22x64xbf16> to vector<4x16x64xbf16>
    %74 = vector.extract_strided_slice %70 {offsets = [0, 3, 0], sizes = [4, 16, 64], strides = [1, 1, 1]} : vector<4x22x64xbf16> to vector<4x16x64xbf16>
    %75 = vector.extract_strided_slice %70 {offsets = [0, 4, 0], sizes = [4, 16, 64], strides = [1, 1, 1]} : vector<4x22x64xbf16> to vector<4x16x64xbf16>
    %76 = vector.extract_strided_slice %70 {offsets = [0, 5, 0], sizes = [4, 16, 64], strides = [1, 1, 1]} : vector<4x22x64xbf16> to vector<4x16x64xbf16>
    %77 = vector.extract_strided_slice %70 {offsets = [0, 6, 0], sizes = [4, 16, 64], strides = [1, 1, 1]} : vector<4x22x64xbf16> to vector<4x16x64xbf16>
    %78 = tpu.concatenate %71, %72, %73, %74, %75, %76, %77 in 2 : vector<4x16x64xbf16>, vector<4x16x64xbf16>, vector<4x16x64xbf16>, vector<4x16x64xbf16>, vector<4x16x64xbf16>, vector<4x16x64xbf16>, vector<4x16x64xbf16> -> vector<4x16x448xbf16>
    %79 = vector.shape_cast %78 : vector<4x16x448xbf16> to vector<64x448xbf16>
    %c0_23 = arith.constant 0 : index
    %c0_24 = arith.constant 0 : index
    %80 = vector.load %arg8[%c0_23, %c0_24] : memref<448x64xbf16, #tpu.memory_space<vmem>>, vector<448x64xbf16>
    %cst_25 = arith.constant dense<0.000000e+00> : vector<64x64xf32>
    %81 = tpu.matmul %79, %80, %cst_25 {dimension_numbers = #tpu.dot_dimension_numbers<[1], [0], [0], [1], [0, 0, 1, 1], [], []>} : vector<64x448xbf16>, vector<448x64xbf16>, vector<64x64xf32> -> vector<64x64xf32>
    %c0_26 = arith.constant 0 : index
    %c0_27 = arith.constant 0 : index
    %82 = vector.load %arg9[%c0_26, %c0_27] : memref<1x64xf32, #tpu.memory_space<vmem>>, vector<1x64xf32>
    %83 = vector.broadcast %82 : vector<1x64xf32> to vector<64x64xf32>
    %84 = arith.addf %81, %83 : vector<64x64xf32>
    %cst_28 = arith.constant 0.000000e+00 : f32
    %85 = vector.broadcast %cst_28 : f32 to vector<64x64xf32>
    %86 = arith.maximumf %84, %85 : vector<64x64xf32>
    %87 = vector.shape_cast %86 : vector<64x64xf32> to vector<4x16x64xf32>
    %88 = arith.addf %87, %67 : vector<4x16x64xf32>
    %89 = arith.truncf %88 : vector<4x16x64xf32> to vector<4x16x64xbf16>
    %cst_29 = arith.constant 0.000000e+00 : bf16
    %90 = vector.broadcast %cst_29 : bf16 to vector<4x6x64xbf16>
    %91 = tpu.concatenate %90, %89 in 1 : vector<4x6x64xbf16>, vector<4x16x64xbf16> -> vector<4x22x64xbf16>
    %92 = vector.extract_strided_slice %91 {offsets = [0, 0, 0], sizes = [4, 16, 64], strides = [1, 1, 1]} : vector<4x22x64xbf16> to vector<4x16x64xbf16>
    %93 = vector.extract_strided_slice %91 {offsets = [0, 1, 0], sizes = [4, 16, 64], strides = [1, 1, 1]} : vector<4x22x64xbf16> to vector<4x16x64xbf16>
    %94 = vector.extract_strided_slice %91 {offsets = [0, 2, 0], sizes = [4, 16, 64], strides = [1, 1, 1]} : vector<4x22x64xbf16> to vector<4x16x64xbf16>
    %95 = vector.extract_strided_slice %91 {offsets = [0, 3, 0], sizes = [4, 16, 64], strides = [1, 1, 1]} : vector<4x22x64xbf16> to vector<4x16x64xbf16>
    %96 = vector.extract_strided_slice %91 {offsets = [0, 4, 0], sizes = [4, 16, 64], strides = [1, 1, 1]} : vector<4x22x64xbf16> to vector<4x16x64xbf16>
    %97 = vector.extract_strided_slice %91 {offsets = [0, 5, 0], sizes = [4, 16, 64], strides = [1, 1, 1]} : vector<4x22x64xbf16> to vector<4x16x64xbf16>
    %98 = vector.extract_strided_slice %91 {offsets = [0, 6, 0], sizes = [4, 16, 64], strides = [1, 1, 1]} : vector<4x22x64xbf16> to vector<4x16x64xbf16>
    %99 = tpu.concatenate %92, %93, %94, %95, %96, %97, %98 in 2 : vector<4x16x64xbf16>, vector<4x16x64xbf16>, vector<4x16x64xbf16>, vector<4x16x64xbf16>, vector<4x16x64xbf16>, vector<4x16x64xbf16>, vector<4x16x64xbf16> -> vector<4x16x448xbf16>
    %100 = vector.shape_cast %99 : vector<4x16x448xbf16> to vector<64x448xbf16>
    %c0_30 = arith.constant 0 : index
    %c0_31 = arith.constant 0 : index
    %101 = vector.load %arg10[%c0_30, %c0_31] : memref<448x64xbf16, #tpu.memory_space<vmem>>, vector<448x64xbf16>
    %cst_32 = arith.constant dense<0.000000e+00> : vector<64x64xf32>
    %102 = tpu.matmul %100, %101, %cst_32 {dimension_numbers = #tpu.dot_dimension_numbers<[1], [0], [0], [1], [0, 0, 1, 1], [], []>} : vector<64x448xbf16>, vector<448x64xbf16>, vector<64x64xf32> -> vector<64x64xf32>
    %c0_33 = arith.constant 0 : index
    %c0_34 = arith.constant 0 : index
    %103 = vector.load %arg11[%c0_33, %c0_34] : memref<1x64xf32, #tpu.memory_space<vmem>>, vector<1x64xf32>
    %104 = vector.broadcast %103 : vector<1x64xf32> to vector<64x64xf32>
    %105 = arith.addf %102, %104 : vector<64x64xf32>
    %cst_35 = arith.constant 0.000000e+00 : f32
    %106 = vector.broadcast %cst_35 : f32 to vector<64x64xf32>
    %107 = arith.maximumf %105, %106 : vector<64x64xf32>
    %108 = vector.shape_cast %107 : vector<64x64xf32> to vector<4x16x64xf32>
    %109 = arith.truncf %108 : vector<4x16x64xf32> to vector<4x16x64xbf16>
    %cst_36 = arith.constant 0.000000e+00 : bf16
    %110 = vector.broadcast %cst_36 : bf16 to vector<4x6x64xbf16>
    %111 = tpu.concatenate %110, %109 in 1 : vector<4x6x64xbf16>, vector<4x16x64xbf16> -> vector<4x22x64xbf16>
    %112 = vector.extract_strided_slice %111 {offsets = [0, 0, 0], sizes = [4, 16, 64], strides = [1, 1, 1]} : vector<4x22x64xbf16> to vector<4x16x64xbf16>
    %113 = vector.extract_strided_slice %111 {offsets = [0, 1, 0], sizes = [4, 16, 64], strides = [1, 1, 1]} : vector<4x22x64xbf16> to vector<4x16x64xbf16>
    %114 = vector.extract_strided_slice %111 {offsets = [0, 2, 0], sizes = [4, 16, 64], strides = [1, 1, 1]} : vector<4x22x64xbf16> to vector<4x16x64xbf16>
    %115 = vector.extract_strided_slice %111 {offsets = [0, 3, 0], sizes = [4, 16, 64], strides = [1, 1, 1]} : vector<4x22x64xbf16> to vector<4x16x64xbf16>
    %116 = vector.extract_strided_slice %111 {offsets = [0, 4, 0], sizes = [4, 16, 64], strides = [1, 1, 1]} : vector<4x22x64xbf16> to vector<4x16x64xbf16>
    %117 = vector.extract_strided_slice %111 {offsets = [0, 5, 0], sizes = [4, 16, 64], strides = [1, 1, 1]} : vector<4x22x64xbf16> to vector<4x16x64xbf16>
    %118 = vector.extract_strided_slice %111 {offsets = [0, 6, 0], sizes = [4, 16, 64], strides = [1, 1, 1]} : vector<4x22x64xbf16> to vector<4x16x64xbf16>
    %119 = tpu.concatenate %112, %113, %114, %115, %116, %117, %118 in 2 : vector<4x16x64xbf16>, vector<4x16x64xbf16>, vector<4x16x64xbf16>, vector<4x16x64xbf16>, vector<4x16x64xbf16>, vector<4x16x64xbf16>, vector<4x16x64xbf16> -> vector<4x16x448xbf16>
    %120 = vector.shape_cast %119 : vector<4x16x448xbf16> to vector<64x448xbf16>
    %c0_37 = arith.constant 0 : index
    %c0_38 = arith.constant 0 : index
    %121 = vector.load %arg12[%c0_37, %c0_38] : memref<448x64xbf16, #tpu.memory_space<vmem>>, vector<448x64xbf16>
    %cst_39 = arith.constant dense<0.000000e+00> : vector<64x64xf32>
    %122 = tpu.matmul %120, %121, %cst_39 {dimension_numbers = #tpu.dot_dimension_numbers<[1], [0], [0], [1], [0, 0, 1, 1], [], []>} : vector<64x448xbf16>, vector<448x64xbf16>, vector<64x64xf32> -> vector<64x64xf32>
    %c0_40 = arith.constant 0 : index
    %c0_41 = arith.constant 0 : index
    %123 = vector.load %arg13[%c0_40, %c0_41] : memref<1x64xf32, #tpu.memory_space<vmem>>, vector<1x64xf32>
    %124 = vector.broadcast %123 : vector<1x64xf32> to vector<64x64xf32>
    %125 = arith.addf %122, %124 : vector<64x64xf32>
    %cst_42 = arith.constant 0.000000e+00 : f32
    %126 = vector.broadcast %cst_42 : f32 to vector<64x64xf32>
    %127 = arith.maximumf %125, %126 : vector<64x64xf32>
    %128 = vector.shape_cast %127 : vector<64x64xf32> to vector<4x16x64xf32>
    %129 = arith.addf %128, %88 : vector<4x16x64xf32>
    %cst_43 = arith.constant dense<0.000000e+00> : vector<4x64xf32>
    %130 = vector.multi_reduction <add>, %129, %cst_43 [1] : vector<4x16x64xf32> to vector<4x64xf32>
    %cst_44 = arith.constant 1.600000e+01 : f32
    %131 = vector.broadcast %cst_44 : f32 to vector<4x64xf32>
    %132 = arith.divf %130, %131 : vector<4x64xf32>
    %133 = arith.truncf %132 : vector<4x64xf32> to vector<4x64xbf16>
    %c0_45 = arith.constant 0 : index
    %c0_46 = arith.constant 0 : index
    %134 = vector.load %arg14[%c0_45, %c0_46] : memref<64x3xbf16, #tpu.memory_space<vmem>>, vector<64x3xbf16>
    %cst_47 = arith.constant dense<0.000000e+00> : vector<4x3xf32>
    %135 = tpu.matmul %133, %134, %cst_47 {dimension_numbers = #tpu.dot_dimension_numbers<[1], [0], [0], [1], [0, 0, 1, 1], [], []>} : vector<4x64xbf16>, vector<64x3xbf16>, vector<4x3xf32> -> vector<4x3xf32>
    %c0_48 = arith.constant 0 : index
    %c0_49 = arith.constant 0 : index
    %136 = vector.load %arg15[%c0_48, %c0_49] : memref<1x3xf32, #tpu.memory_space<vmem>>, vector<1x3xf32>
    %137 = vector.broadcast %136 : vector<1x3xf32> to vector<4x3xf32>
    %138 = arith.addf %135, %137 : vector<4x3xf32>
    %c0_50 = arith.constant 0 : index
    %c0_51 = arith.constant 0 : index
    %c0_52 = arith.constant 0 : index
    %139 = vector.load %arg16[%c0_50, %c0_51, %c0_52] : memref<1x4x3xf32, #tpu.memory_space<vmem>>, vector<1x4x3xf32>
    %140 = vector.shape_cast %139 : vector<1x4x3xf32> to vector<4x3xf32>
    %141 = vector.shape_cast %138 : vector<4x3xf32> to vector<1x4x3xf32>
    tpu.vector_store %arg16[%c0_50, %c0_51, %c0_52], %141 {strides = array<i32>} : memref<1x4x3xf32, #tpu.memory_space<vmem>>, vector<1x4x3xf32>,
    return
  }
  func.func @transform_0(%arg0: i32) -> (i32, i32, i32) {
    %c0_i32 = arith.constant 0 : i32
    %c0_i32_0 = arith.constant 0 : i32
    %c0_i32_1 = arith.constant 0 : i32
    return %arg0, %c0_i32, %c0_i32_0 : i32, i32, i32
  }
  func.func @transform_1(%arg0: i32) -> (i32, i32) {
    %c0_i32 = arith.constant 0 : i32
    %c0_i32_0 = arith.constant 0 : i32
    %c0_i32_1 = arith.constant 0 : i32
    return %c0_i32, %c0_i32_0 : i32, i32
  }
  func.func @transform_2(%arg0: i32) -> (i32, i32) {
    %c0_i32 = arith.constant 0 : i32
    %c0_i32_0 = arith.constant 0 : i32
    %c0_i32_1 = arith.constant 0 : i32
    return %c0_i32, %c0_i32_0 : i32, i32
  }
  func.func @transform_3(%arg0: i32) -> (i32, i32) {
    %c0_i32 = arith.constant 0 : i32
    %c0_i32_0 = arith.constant 0 : i32
    %c0_i32_1 = arith.constant 0 : i32
    return %c0_i32, %c0_i32_0 : i32, i32
  }
  func.func @transform_4(%arg0: i32) -> (i32, i32) {
    %c0_i32 = arith.constant 0 : i32
    %c0_i32_0 = arith.constant 0 : i32
    %c0_i32_1 = arith.constant 0 : i32
    return %c0_i32, %c0_i32_0 : i32, i32
  }
  func.func @transform_5(%arg0: i32) -> (i32, i32) {
    %c0_i32 = arith.constant 0 : i32
    %c0_i32_0 = arith.constant 0 : i32
    %c0_i32_1 = arith.constant 0 : i32
    return %c0_i32, %c0_i32_0 : i32, i32
  }
  func.func @transform_6(%arg0: i32) -> (i32, i32) {
    %c0_i32 = arith.constant 0 : i32
    %c0_i32_0 = arith.constant 0 : i32
    %c0_i32_1 = arith.constant 0 : i32
    return %c0_i32, %c0_i32_0 : i32, i32
  }
  func.func @transform_7(%arg0: i32) -> (i32, i32) {
    %c0_i32 = arith.constant 0 : i32
    %c0_i32_0 = arith.constant 0 : i32
    %c0_i32_1 = arith.constant 0 : i32
    return %c0_i32, %c0_i32_0 : i32, i32
  }
  func.func @transform_8(%arg0: i32) -> (i32, i32) {
    %c0_i32 = arith.constant 0 : i32
    %c0_i32_0 = arith.constant 0 : i32
    %c0_i32_1 = arith.constant 0 : i32
    return %c0_i32, %c0_i32_0 : i32, i32
  }
  func.func @transform_9(%arg0: i32) -> (i32, i32) {
    %c0_i32 = arith.constant 0 : i32
    %c0_i32_0 = arith.constant 0 : i32
    %c0_i32_1 = arith.constant 0 : i32
    return %c0_i32, %c0_i32_0 : i32, i32
  }
  func.func @transform_10(%arg0: i32) -> (i32, i32) {
    %c0_i32 = arith.constant 0 : i32
    %c0_i32_0 = arith.constant 0 : i32
    %c0_i32_1 = arith.constant 0 : i32
    return %c0_i32, %c0_i32_0 : i32, i32
  }
  func.func @transform_11(%arg0: i32) -> (i32, i32) {
    %c0_i32 = arith.constant 0 : i32
    %c0_i32_0 = arith.constant 0 : i32
    %c0_i32_1 = arith.constant 0 : i32
    return %c0_i32, %c0_i32_0 : i32, i32
  }
  func.func @transform_12(%arg0: i32) -> (i32, i32) {
    %c0_i32 = arith.constant 0 : i32
    %c0_i32_0 = arith.constant 0 : i32
    %c0_i32_1 = arith.constant 0 : i32
    return %c0_i32, %c0_i32_0 : i32, i32
  }
  func.func @transform_13(%arg0: i32) -> (i32, i32) {
    %c0_i32 = arith.constant 0 : i32
    %c0_i32_0 = arith.constant 0 : i32
    %c0_i32_1 = arith.constant 0 : i32
    return %c0_i32, %c0_i32_0 : i32, i32
  }
  func.func @transform_14(%arg0: i32) -> (i32, i32) {
    %c0_i32 = arith.constant 0 : i32
    %c0_i32_0 = arith.constant 0 : i32
    %c0_i32_1 = arith.constant 0 : i32
    return %c0_i32, %c0_i32_0 : i32, i32
  }
  func.func @transform_15(%arg0: i32) -> (i32, i32, i32) {
    %c0_i32 = arith.constant 0 : i32
    %c0_i32_0 = arith.constant 0 : i32
    %c0_i32_1 = arith.constant 0 : i32
    return %arg0, %c0_i32, %c0_i32_0 : i32, i32, i32
  }
}

</mosaic_0001>

<bundles_post_ra>
// kernel: tpu_custom_call.1
= control target key start
LH: loop header
LB: loop body
LE: loop exit
PB: predicated region body
PF: predicated region fallthrough
CT: control target
= control target key end

     0   :  { %s4476_s18 = smov 0   ;;  %s5993_s0 = inlined_call_operand.vmem [shape: f32[8,16,4], index: 0, kind: input, shape index: {}]   ;;  %s5994_s1 = inlined_call_operand.vmem [shape: bf16[28,64], index: 1, kind: input, shape index: {}]   ;;  %s5995_s2 = inlined_call_operand.vmem [shape: f32[1,64], index: 2, kind: input, shape index: {}]   ;;  %s5996_s3 = inlined_call_operand.vmem [shape: bf16[224,32], index: 3, kind: input, shape index: {}]   ;;  %s5997_s4 = inlined_call_operand.vmem [shape: f32[1,32], index: 4, kind: input, shape index: {}]   ;;  %s5998_s5 = inlined_call_operand.vmem [shape: bf16[224,128], index: 5, kind: input, shape index: {}]   ;;  %s5999_s6 = inlined_call_operand.vmem [shape: f32[1,128], index: 6, kind: input, shape index: {}]   ;;  %s6000_s7 = inlined_call_operand.vmem [shape: bf16[448,64], index: 7, kind: input, shape index: {}]   ;;  %s6001_s8 = inlined_call_operand.vmem [shape: f32[1,64], index: 8, kind: input, shape index: {}]   ;;  %s6002_s9 = inlined_call_operand.vmem [shape: bf16[448,64], index: 9, kind: input, shape index: {}]   ;;  %s6003_s10 = inlined_call_operand.vmem [shape: f32[1,64], index: 10, kind: input, shape index: {}]   ;;  %s6004_s11 = inlined_call_operand.vmem [shape: bf16[448,64], index: 11, kind: input, shape index: {}]   ;;  %s6005_s12 = inlined_call_operand.vmem [shape: f32[1,64], index: 12, kind: input, shape index: {}]   ;;  %s6006_s13 = inlined_call_operand.vmem [shape: bf16[64,3], index: 13, kind: input, shape index: {}]   ;;  %s6007_s14 = inlined_call_operand.vmem [shape: f32[1,3], index: 14, kind: input, shape index: {}]   ;;  %s6008_s15 = inlined_call_operand.vmem [shape: f32[2,4,3], index: 15, kind: output, shape index: {}]  }
   0x1 LB: > { %s4482_s19 = sadd.s32 4294967295, %s4382_s18   ;;  %p3924_p0 = scmp.ge.s32.totalorder %s4382_s18, 1  ;;  %s4382_s18 = sphi %s4476_s18, %s25_s18  }
   0x2   : > { %p439_p1 = scmp.lt.s32.totalorder %s4382_s18, 3 }
   0x4   : > { %p440_p2 = pnand %p3924_p0, %p439_p1 }
   0x5   : > { %s3925_s20 = sshll.u32 (!%p440_p2), %s4482_s19, 2  ;;  %vm519_vm0 = vcmask (!%p440_p2), 1042432   ;;  %vm648_vm1 = vcmask (!%p440_p2), 1045504   ;;  %vm529_vm2 = vsmask.f32 (!%p440_p2), 7424  ;;  %vm582_vm3 = vcmask (!%p440_p2), 1046528  }
   0x6   : > { %443 = sbr.rel (%p440_p2) target bundleno = 2454 (0x996), region = 80  ;;  %p488_p3 = scmp.lt.s32.totalorder (!%p440_p2), %s3925_s20, 7  ;;  %vm603_vm4 = vsmask.f32 (!%p440_p2), 6400  ;;  %v4258_v31 = vld [vmem:[%s5994_s1] sm:$0xff] (!%p440_p2)   ;;  %vm706_vm6 = vcmask (!%p440_p2), 1044480  }
   0x7   : > { %s4384_s25 = smov (!%p440_p2), 16   ;;  %s4385_s26 = smov (!%p440_p2), 8   ;;  %vm669_vm5 = vsmask.f32 (!%p440_p2), 5376  ;;  %4213 = vmatprep.subr.bf16.mxu0 (!%p440_p2), %v4258_v31  ;;  %v4559_v50 = vld [vmem:[%s5994_s1 + $0x8] sm:$0x3f] (!%p440_p2)  }
   0x8   : > { %4214 = vmatpush3.bf16.msra.mxu0 (!%p440_p2), %v4258_v31  ;;  %s4386_s16 = smov (!%p440_p2), 4   ;;  %s4387_s17 = smov (!%p440_p2), 12   ;;  %vm727_vm7 = vcmask (!%p440_p2), 31744   ;;  %vm736_vm8 = vcmask (!%p440_p2), 64512   ;;  %vm745_vm9 = vcmask (!%p440_p2), 97280   ;;  %vm754_vm10 = vcmask (!%p440_p2), 130048  }
   0x9   : > { %4237 = vmatprep.subr.msk.bf16.mxu0 (!%p440_p2), %vm648_vm1, %v4559_v50  ;;  %vm763_vm11 = vcmask (!%p440_p2), 162816   ;;  %vm772_vm12 = vcmask (!%p440_p2), 195584   ;;  %vm803_vm13 = vcmask (!%p440_p2), 228352   ;;  %s4392_s27 = smov (!%p440_p2), 32   ;;  %s4393_s28 = smov (!%p440_p2), 96   ;;  %vm1093_vm14 = vcmask (!%p440_p2), 261120  }
   0xa   : > { %vm1102_vm15 = vcmask (!%p440_p2), 523264   ;;  %p494_p4 = scmp.lt.s32.totalorder (!%p440_p2), %s4482_s19, 1 }
   0xd   : > { %s6010_s20 = smov (!%p488_p3, %s3925_s20), 7  ;;  %s6012_s19 = smov (!%p494_p4, %s4482_s19), 1 }
   0xe   : > { %s4081_s21 = sshll.u32 %s6010_s20, 4  ;;  %s4388_s20 = smov 20  }
   0xf   : > { %s4490_s24 = scalar_lea.vmem %s5993_s0, %s4081_s21  ;;  %s4389_s21 = smov 24  }
  0x10   : > { %v499_v0 = vld [vmem:[%s4490_s24] sm:$0xff]  ;;  %v500_v1 = vld [vmem:[%s4490_s24 + $0x8] sm:$0xff]  ;;  %v501_v2 = vld [vmem:[%s4490_s24 + $0x10] sm:$0xff] }
  0x11   : > { %v507_v3 = vpack.c.bf16 %v500_v1, %v499_v0  ;;  %v502_v4 = vld [vmem:[%s4490_s24 + $0x18] sm:$0xff]  ;;  %v4497_v5 = vld [vmem:[%s4490_s24 + $0x30] sm:$0xff]  ;;  %v503_v44 = vld [vmem:[%s4490_s24 + $0x20] sm:$0xff] }
  0x12   : > { %v4500_v6 = vld [vmem:[%s4490_s24 + $0x38] sm:$0xff]  ;;  %v508_v7 = vpack.c.bf16 %v502_v4, %v501_v2  ;;  %v504_v49 = vld [vmem:[%s4490_s24 + $0x28] sm:$0xff] }
  0x13   : > { %v4502_v8 = vrot.slane %v507_v3, 5  ;;  %v510_v10 = vpack.c.bf16 %v4500_v6, %v4497_v5  ;;  %v509_v2 = vpack.c.bf16 %v504_v49, %v503_v44 }
  0x14   : > { %v4504_v9 = vrot.slane %v508_v7, 5 }
  0x15   : > { %v4510_v11 = vsel %vm519_vm0, 0, %v4502_v8  ;;  %v650_v12 = vrot.slane %v4502_v8, 2  ;;  %v584_v13 = vrot.slane %v4502_v8, 1  ;;  %v4515_v14 = vshll.u32 %v4502_v8, 16 }
  0x16   : > { %v649_v15 = vrot.slane %v4510_v11, 2  ;;  %v583_v16 = vrot.slane %v4510_v11, 1  ;;  %v4521_v17 = vsel %vm519_vm0, 0, %v4504_v9  ;;  %v587_v18 = vrot.slane %v4504_v9, 1 }
  0x17   : > { %v586_v19 = vrot.slane %v4521_v17, 1  ;;  %v4526_v20 = vshrl.u32 %v4510_v11, 16  ;;  %v4529_v21 = vshll.u32 %v4510_v11, 16  ;;  %v538_v22 = vrot.slane %v4515_v14, 1 }
  0x18   : > { %v651_v23 = vsel %vm648_vm1, %v649_v15, %v650_v12  ;;  %v585_v24 = vsel %vm582_vm3, %v583_v16, %v584_v13  ;;  %v652_v25 = vrot.slane %v4521_v17, 2  ;;  %v653_v26 = vrot.slane %v4504_v9, 2 }
  0x19   : > { %661 = vrot.lane.b32.xlu0 %v651_v23, %s4384_s25  ;;  %595 = vrot.lane.b32.xlu1 %v585_v24, %s4385_s26  ;;  %v588_v27 = vsel %vm582_vm3, %v586_v19, %v587_v18  ;;  %v534_v28 = vrot.slane %v4529_v21, 1  ;;  %v540_v29 = vshrl.u32 %v4521_v17, 16  ;;  %v542_v30 = vshll.u32 %v4521_v17, 16 }
  0x1a   : > { %v654_v32 = vsel %vm648_vm1, %v652_v25, %v653_v26  ;;  %v546_v33 = vshll.u32 %v4504_v9, 16  ;;  %v616_v34 = vshrl.u32 %v4504_v9, 16  ;;  %v604_v35 = vrot.slane %v4526_v20, 1 }
  0x1b   : > { %v535_v36 = vor.u32 %v534_v28, %v4526_v20  ;;  %v544_v37 = vrot.slane %v542_v30, 1  ;;  %v613_v38 = vrot.slane %v540_v29, 1  ;;  %v614_v39 = vrot.slane %v542_v30, 2 }
  0x1c   : > { %v548_v40 = vrot.slane %v546_v33, 1  ;;  %v618_v41 = vrot.slane %v616_v34, 1  ;;  %v619_v42 = vrot.slane %v546_v33, 2  ;;  %v605_v43 = vrot.slane %v4529_v21, 2 }
  0x1d   : > { %597 = vrot.lane.b32.xlu1 %v588_v27, %s4385_s26  ;;  %v539_v45 = vsel %vm529_vm2, %v535_v36, %v538_v22  ;;  %v545_v46 = vor.u32 %v544_v37, %v540_v29  ;;  %v615_v47 = vor.u32 %v614_v39, %v613_v38  ;;  %v607_v48 = vshrl.u32 %v4502_v8, 16 }
  0x1e   : > { %570 = vrot.lane.b32.xlu0 %v539_v45, %s4386_s16  ;;  %v620_v51 = vor.u32 %v619_v42, %v618_v41  ;;  %v606_v52 = vor.u32 %v605_v43, %v604_v35  ;;  %v610_v53 = vrot.slane %v4515_v14, 2  ;;  %v677_v54 = vrot.slane %v540_v29, 2 }
  0x1f   : > { %v549_v55 = vsel %vm529_vm2, %v545_v46, %v548_v40  ;;  %v609_v56 = vrot.slane %v607_v48, 1  ;;  %v678_v57 = vrot.slane %v542_v30, 3  ;;  %v680_v58 = vrot.slane %v616_v34, 2 }
  0x20   : > { %v681_v59 = vrot.slane %v546_v33, 3  ;;  %v670_v60 = vrot.slane %v4526_v20, 2  ;;  %v671_v61 = vrot.slane %v4529_v21, 3  ;;  %v4571_v62 = vrot.slane %v510_v10, 5 }
  0x21   : > { %663 = vrot.lane.b32.xlu1 %v654_v32, %s4384_s25  ;;  %v611_v63 = vor.u32 %v610_v53, %v609_v56  ;;  %v673_v0 = vrot.slane %v607_v48, 2  ;;  %v674_v1 = vrot.slane %v4515_v14, 3  ;;  %v621_v3 = vsel %vm603_vm4, %v615_v47, %v620_v51 }
  0x22   : > { %572 = vrot.lane.b32.xlu0 %v549_v55, %s4386_s16  ;;  %v679_v4 = vor.u32 %v678_v57, %v677_v54  ;;  %v682_v7 = vor.u32 %v681_v59, %v680_v58  ;;  %v672_v12 = vor.u32 %v671_v61, %v670_v60  ;;  %v710_v5 = vrot.slane %v4521_v17, 3 }
  0x23   : > { %v612_v13 = vsel %vm603_vm4, %v606_v52, %v611_v63  ;;  %v675_v15 = vor.u32 %v674_v1, %v673_v0  ;;  %v711_v6 = vrot.slane %v4504_v9, 3  ;;  %v4582_v10 = vsel %vm519_vm0, 0, %v4571_v62 }
  0x24   : > { %v4585_v14 = vshll.u32 %v4571_v62, 16  ;;  %v4589_v16 = vshll.u32 %v4582_v10, 16  ;;  %v683_v18 = vsel %vm669_vm5, %v679_v4, %v682_v7  ;;  %v707_v19 = vrot.slane %v4510_v11, 3 }
  0x25   : > { %642 = vrot.lane.b32.xlu1 %v621_v3, %s4387_s17  ;;  %v4595_v9 = vshrl.u32 %v4582_v10, 16  ;;  %v4597_v20 = vrot.slane %v509_v2, 5  ;;  %v676_v21 = vsel %vm669_vm5, %v672_v12, %v675_v15  ;;  %v712_v22 = vsel %vm706_vm6, %v710_v5, %v711_v6 }
  0x26   : > { %640 = vrot.lane.b32.xlu0 %v612_v13, %s4387_s17  ;;  %v708_v23 = vrot.slane %v4502_v8, 3  ;;  %v564_v24 = vrot.slane %v4589_v16, 1  ;;  %v568_v25 = vrot.slane %v4585_v14, 1  ;;  %v634_v28 = vshrl.u32 %v4571_v62, 16 }
  0x27   : > { %v4606_v26 = vsel %vm519_vm0, 0, %v4597_v20  ;;  %v4609_v27 = vshll.u32 %v4597_v20, 16  ;;  %v592_v30 = vrot.slane %v4582_v10, 1  ;;  %v593_v31 = vrot.slane %v4571_v62, 1 }
  0x28   : > { %v4614_v29 = vshrl.u32 %v4606_v26, 16  ;;  %v552_v8 = vshll.u32 %v4606_v26, 16  ;;  %v565_v32 = vor.u32 %v564_v24, %v4595_v9  ;;  %v590_v33 = vrot.slane %v4597_v20, 1 }
  0x29   : > { %700 = vrot.lane.b32.xlu1 %v683_v18, %s4388_s20  ;;  %v631_v34 = vrot.slane %v4595_v9, 1  ;;  %v632_v35 = vrot.slane %v4589_v16, 2  ;;  %v709_v36 = vsel %vm706_vm6, %v707_v19, %v708_v23  ;;  %v558_v38 = vrot.slane %v4609_v27, 1 }
  0x2a   : > { %698 = vrot.lane.b32.xlu0 %v676_v21, %s4388_s20  ;;  %v554_v37 = vrot.slane %v552_v8, 1  ;;  %v589_v39 = vrot.slane %v4606_v26, 1  ;;  %v636_v40 = vrot.slane %v634_v28, 1  ;;  %v637_v41 = vrot.slane %v4585_v14, 2 }
  0x2b   : > { %v625_v42 = vshrl.u32 %v4597_v20, 16  ;;  %v622_v44 = vrot.slane %v4614_v29, 1  ;;  %v623_v45 = vrot.slane %v552_v8, 2  ;;  %v569_v46 = vsel %vm529_vm2, %v565_v32, %v568_v25 }
  0x2c   : > { %v555_v43 = vor.u32 %v554_v37, %v4614_v29  ;;  %v628_v48 = vrot.slane %v4609_v27, 2  ;;  %v594_v51 = vsel %vm582_vm3, %v592_v30, %v593_v31  ;;  %v591_v52 = vsel %vm582_vm3, %v589_v39, %v590_v33 }
  0x2d   : > { %721 = vrot.lane.b32.xlu1 %v712_v22, %s4389_s21  ;;  %v627_v47 = vrot.slane %v625_v42, 1  ;;  %v633_v53 = vor.u32 %v632_v35, %v631_v34  ;;  %v638_v54 = vor.u32 %v637_v41, %v636_v40  ;;  %v658_v55 = vrot.slane %v4582_v10, 2 }
  0x2e   : > { %719 = vrot.lane.b32.xlu0 %v709_v36, %s4389_s21  ;;  %v559_v49 = vsel %vm529_vm2, %v555_v43, %v558_v38  ;;  %v659_v56 = vrot.slane %v4571_v62, 2  ;;  %v655_v57 = vrot.slane %v4606_v26, 2  ;;  %v656_v58 = vrot.slane %v4597_v20, 2 }
  0x2f   : > { %v691_v59 = vrot.slane %v4595_v9, 2  ;;  %v624_v60 = vor.u32 %v623_v45, %v622_v44  ;;  %v629_v61 = vor.u32 %v628_v48, %v627_v47  ;;  %v692_v63 = vrot.slane %v4589_v16, 3 }
  0x30   : > { %v694_v0 = vrot.slane %v634_v28, 2  ;;  %v695_v1 = vrot.slane %v4585_v14, 3  ;;  %v684_v2 = vrot.slane %v4614_v29, 2  ;;  %v685_v3 = vrot.slane %v552_v8, 3 }
  0x31   : > { %576 = vrot.lane.b32.xlu1 %v569_v46, %s4386_s16  ;;  %v687_v4 = vrot.slane %v625_v42, 2  ;;  %v688_v7 = vrot.slane %v4609_v27, 3  ;;  %v716_v12 = vrot.slane %v4582_v10, 3  ;;  %v717_v13 = vrot.slane %v4571_v62, 3 }
  0x32   : > { %574 = vrot.lane.b32.xlu0 %v559_v49, %s4386_s16  ;;  %v814_v15 = vsel %vm648_vm1, %v4559_v50, 0  ;;  %v639_v5 = vsel %vm603_vm4, %v633_v53, %v638_v54  ;;  %v713_v6 = vrot.slane %v4606_v26, 3  ;;  %v714_v14 = vrot.slane %v4597_v20, 3 }
  0x33   : > { %4216 = vmatpush3.bf16.msra.mxu0 %v814_v15  ;;  %v630_v16 = vsel %vm603_vm4, %v624_v60, %v629_v61  ;;  %v660_v62 = vsel %vm648_vm1, %v658_v55, %v659_v56  ;;  %v693_v18 = vor.u32 %v692_v63, %v691_v59  ;;  %v696_v19 = vor.u32 %v695_v1, %v694_v0 }
  0x34   : > { %v657_v50 = vsel %vm648_vm1, %v655_v57, %v656_v58  ;;  %v686_v9 = vor.u32 %v685_v3, %v684_v2  ;;  %v689_v21 = vor.u32 %v688_v7, %v687_v4  ;;  %v718_v23 = vsel %vm706_vm6, %v716_v12, %v717_v13  ;;  %v4260_v13 = vld [vmem:[%s5996_s3] sm:$0xff]  }
  0x35   : > { %601 = vrot.lane.b32.xlu1 %v594_v51, %s4385_s26  ;;  %v697_v20 = vsel %vm669_vm5, %v693_v18, %v696_v19  ;;  %v715_v24 = vsel %vm706_vm6, %v713_v6, %v714_v14  ;;  %v4390_v15 = vmov 0   ;;  %v4262_v6 = vld [vmem:[%s5996_s3 + $0x10] sm:$0xff]   ;;  %v4263_v14 = vld [vmem:[%s5996_s3 + $0x18] sm:$0xff]  }
  0x36   : > { %599 = vrot.lane.b32.xlu0 %v591_v52, %s4385_s26  ;;  %v690_v22 = vsel %vm669_vm5, %v686_v9, %v689_v21  ;;  %1271 = vmatprep.subr.bf16.mxu1 %v4390_v15  ;;  %v4266_v18 = vld [vmem:[%s5996_s3 + $0x30] sm:$0xff]   ;;  %v4267_v19 = vld [vmem:[%s5996_s3 + $0x38] sm:$0xff]   ;;  %v4269_v9 = vld [vmem:[%s5996_s3 + $0x48] sm:$0xff]   ;;  %s4391_s26 = smov 64  }
  0x37   : > { %1763 = vmatprep.subr.bf16.mxu0 %v4390_v15  ;;  %1272 = vmatpush1.bf16.msra.mxu1 %v4260_v13  ;;  %v4270_v21 = vld [vmem:[%s5996_s3 + $0x50] sm:$0xff]  }
  0x38   : > { %1273 = vmatprep.subr.bf16.mxu1 %v4390_v15 }
  0x39   : > { %646 = vrot.lane.b32.xlu1 %v639_v5, %s4387_s17  ;;  %v4261_v5 = vld [vmem:[%s5996_s3 + $0x8] sm:$0xff]  }
  0x3a   : > { %644 = vrot.lane.b32.xlu0 %v630_v16, %s4387_s17  ;;  %v4264_v16 = vld [vmem:[%s5996_s3 + $0x20] sm:$0xff]  }
  0x3b   : > { %1274 = vmatpush1.bf16.msra.mxu1 %v4261_v5 }
  0x3c   : > { %1275 = vmatprep.subr.bf16.mxu1 %v4390_v15 }
  0x3d   : > { %667 = vrot.lane.b32.xlu1 %v660_v62, %s4384_s25  ;;  %v4265_v62 = vld [vmem:[%s5996_s3 + $0x28] sm:$0xff]  }
  0x3e   : > { %665 = vrot.lane.b32.xlu0 %v657_v50, %s4384_s25  ;;  %v4268_v50 = vld [vmem:[%s5996_s3 + $0x40] sm:$0xff]  }
  0x3f   : > { %1276 = vmatpush1.bf16.msra.mxu1 %v4262_v6 }
  0x40   : > { %1277 = vmatprep.subr.bf16.mxu1 %v4390_v15 }
  0x41   : > { %704 = vrot.lane.b32.xlu1 %v697_v20, %s4388_s20  ;;  %v4271_v20 = vld [vmem:[%s5996_s3 + $0x58] sm:$0xff]  }
  0x42   : > { %702 = vrot.lane.b32.xlu0 %v690_v22, %s4388_s20  ;;  %v4758_v22 = vld [vmem:[%s5995_s2] ss:$0 sm:$0xff] }
  0x43   : > { %1278 = vmatpush1.bf16.msra.mxu1 %v4263_v14 }
  0x44   : > { %1279 = vmatprep.subr.bf16.mxu1 %v4390_v15 }
  0x45   : > { %725 = vrot.lane.b32.xlu1 %v718_v23, %s4389_s21 }
  0x46   : > { %723 = vrot.lane.b32.xlu0 %v715_v24, %s4389_s21 }
  0x47   : > { %1280 = vmatpush1.bf16.msra.mxu1 %v4264_v16 }
  0x48   : > { %1281 = vmatprep.subr.bf16.mxu1 %v4390_v15 }
  0x4b   : > { %1282 = vmatpush1.bf16.msra.mxu1 %v4265_v62 }
  0x4c   : > { %1283 = vmatprep.subr.bf16.mxu1 %v4390_v15 }
  0x4f   : > { %1284 = vmatpush1.bf16.msra.mxu1 %v4266_v18 }
  0x50   : > { %1285 = vmatprep.subr.bf16.mxu1 %v4390_v15 }
  0x53   : > { %1286 = vmatpush1.bf16.msra.mxu1 %v4267_v19 }
  0x54   : > { %1287 = vmatprep.subr.bf16.mxu1 %v4390_v15 }
  0x57   : > { %1288 = vmatpush1.bf16.msra.mxu1 %v4268_v50 }
  0x58   : > { %1289 = vmatprep.subr.bf16.mxu1 %v4390_v15 }
  0x5b   : > { %1290 = vmatpush1.bf16.msra.mxu1 %v4269_v9 }
  0x5c   : > { %1291 = vmatprep.subr.bf16.mxu1 %v4390_v15 }
  0x5f   : > { %1292 = vmatpush1.bf16.msra.mxu1 %v4270_v21 }
  0x60   : > { %1293 = vmatprep.subr.bf16.mxu1 %v4390_v15 }
  0x63   : > { %1294 = vmatpush1.bf16.msra.mxu1 %v4271_v20 }
  0x64   : > { %1295 = vmatprep.subr.bf16.mxu1 %v4390_v15 }
  0x8b   : > { %v662_v25 = vpop.permute.xlu0 %661  ;;  %v596_v27 = vpop.permute.xlu1 %595 }
  0x8f   : > { %v598_v28 = vpop.permute.xlu1 %597 }
  0x90   : > { %v571_v29 = vpop.permute.xlu0 %570 }
  0x91   : > { %v729_v33 = vsel %vm727_vm7, %v4510_v11, %v571_v29  ;;  %v4272_v29 = vld [vmem:[%s5996_s3 + $0x60] sm:$0xff]  }
  0x92   : > { %v738_v37 = vsel %vm736_vm8, %v729_v33, %v596_v27  ;;  %1296 = vmatpush1.bf16.msra.mxu1 %v4272_v29 }
  0x93   : > { %v664_v8 = vpop.permute.xlu1 %663  ;;  %1297 = vmatprep.subr.bf16.mxu1 %v4390_v15 }
  0x94   : > { %v573_v30 = vpop.permute.xlu0 %572 }
  0x95   : > { %v731_v31 = vsel %vm727_vm7, %v4521_v17, %v573_v30 }
  0x96   : > { %v740_v35 = vsel %vm736_vm8, %v731_v31, %v598_v28 }
  0x97   : > { %v643_v32 = vpop.permute.xlu1 %642 }
  0x98   : > { %v641_v34 = vpop.permute.xlu0 %640  ;;  %v749_v36 = vsel %vm745_vm9, %v740_v35, %v643_v32 }
  0x99   : > { %v747_v39 = vsel %vm745_vm9, %v738_v37, %v641_v34  ;;  %v758_v17 = vsel %vm754_vm10, %v749_v36, %v664_v8  ;;  %v4273_v37 = vld [vmem:[%s5996_s3 + $0x68] sm:$0xff]  }
  0x9a   : > { %v756_v41 = vsel %vm754_vm10, %v747_v39, %v662_v25  ;;  %1298 = vmatpush1.bf16.msra.mxu1 %v4273_v37 }
  0x9b   : > { %v701_v38 = vpop.permute.xlu1 %700 }
  0x9c   : > { %v699_v40 = vpop.permute.xlu0 %698  ;;  %v767_v11 = vsel %vm763_vm11, %v758_v17, %v701_v38 }
  0x9d   : > { %v765_v43 = vsel %vm763_vm11, %v756_v41, %v699_v40 }
  0x9f   : > { %v722_v42 = vpop.permute.xlu1 %721 }
  0xa0   : > { %v776_v44 = vsel %vm772_vm12, %v767_v11, %v722_v42  ;;  %v720_v45 = vpop.permute.xlu0 %719 }
  0xa1   : > { %v774_v46 = vsel %vm772_vm12, %v765_v43, %v720_v45 }
  0xa2   : > { %4217 = vmatprep.mubr.msk.bf16.mxu0 %vm803_vm13, %v774_v46 }
  0xa3   : > { %4218 = vmatmul.mubr.msk.bf16.vlgmr.msra.gmra.mrb[0].mxu0 %vm803_vm13, %v776_v44  ;;  %v577_v47 = vpop.permute.xlu1 %576 }
  0xa4   : > { %v575_v48 = vpop.permute.xlu0 %574  ;;  %v735_v54 = vsel %vm727_vm7, %v4582_v10, %v577_v47 }
  0xa5   : > { %v733_v56 = vsel %vm727_vm7, %v4606_v26, %v575_v48  ;;  %vm1111_vm7 = vcmask 785408  }
  0xa7   : > { %v602_v49 = vpop.permute.xlu1 %601 }
  0xa8   : > { %v600_v51 = vpop.permute.xlu0 %599  ;;  %v744_v57 = vsel %vm736_vm8, %v735_v54, %v602_v49 }
  0xa9   : > { %v742_v59 = vsel %vm736_vm8, %v733_v56, %v600_v51 }
  0xab   : > { %v647_v52 = vpop.permute.xlu1 %646 }
  0xac   : > { %v645_v53 = vpop.permute.xlu0 %644  ;;  %v753_v60 = vsel %vm745_vm9, %v744_v57, %v647_v52 }
  0xad   : > { %v751_v0 = vsel %vm745_vm9, %v742_v59, %v645_v53 }
  0xaf   : > { %v668_v55 = vpop.permute.xlu1 %667 }
  0xb0   : > { %v666_v58 = vpop.permute.xlu0 %665  ;;  %v762_v1 = vsel %vm754_vm10, %v753_v60, %v668_v55 }
  0xb1   : > { %v760_v2 = vsel %vm754_vm10, %v751_v0, %v666_v58 }
  0xb3   : > { %v705_v61 = vpop.permute.xlu1 %704 }
  0xb4   : > { %v703_v63 = vpop.permute.xlu0 %702  ;;  %v771_v10 = vsel %vm763_vm11, %v762_v1, %v705_v61 }
  0xb5   : > { %v769_v26 = vsel %vm763_vm11, %v760_v2, %v703_v63 }
  0xb7   : > { %v726_v3 = vpop.permute.xlu1 %725 }
  0xb8   : > { %v780_v4 = vsel %vm772_vm12, %v771_v10, %v726_v3  ;;  %v724_v7 = vpop.permute.xlu0 %723 }
  0xb9   : > { %v778_v12 = vsel %vm772_vm12, %v769_v26, %v724_v7 }
  0xba   : > { %4221 = vmatprep.mubr.msk.bf16.mxu0 %vm803_vm13, %v778_v12 }
  0xbb   : > { %4222 = vmatmul.mubr.msk.bf16.gmra.mrb[4].mxu0 %vm803_vm13, %v780_v4 }
 0x176   : > { %v4219_v23 = vpop.f32.mrb[0].mxu0 }
 0x177   : > { %v4761_v24 = vadd.f32 %v4219_v23, %v4758_v22  ;;  %v850_v25 = vpop.f32.mrb[1].mxu0 }
 0x178   : > { %v4764_v27 = vadd.f32 %v4758_v22, %v850_v25  ;;  %v4220_v28 = vpop.f32.mrb[2].mxu0 }
 0x179   : > { %v4770_v8 = vadd.f32 %v4220_v28, %v4758_v22  ;;  %v853_v30 = vpop.f32.mrb[3].mxu0  ;;  %v883_v32 = vmax.f32 %v4761_v24, 0.0 }
 0x17a   : > { %v4773_v31 = vadd.f32 %v4758_v22, %v853_v30  ;;  %v881_v34 = vmax.f32 %v4764_v27, 0.0 }
 0x17b   : > { %v884_v33 = vmax.f32 %v4770_v8, 0.0 }
 0x17c   : > { %v882_v35 = vmax.f32 %v4773_v31, 0.0 }
 0x17d   : > { %v890_v36 = vpack.c.bf16 %v884_v33, %v883_v32 }
 0x17e   : > { %v889_v38 = vpack.c.bf16 %v882_v35, %v881_v34 }
 0x17f   : > { %v4783_v39 = vrot.slane %v890_v36, 5 }
 0x180   : > { %v4785_v40 = vrot.slane %v889_v38, 5 }
 0x181   : > { %v4789_v17 = vsel %vm519_vm0, 0, %v4783_v39  ;;  %v4802_v47 = vshll.u32 %v4783_v39, 16  ;;  %v993_v52 = vshrl.u32 %v4783_v39, 16  ;;  %v965_v23 = vrot.slane %v4783_v39, 1 }
 0x182   : > { %v4793_v11 = vsel %vm519_vm0, 0, %v4785_v40  ;;  %v962_v41 = vrot.slane %v4785_v40, 1  ;;  %v915_v42 = vshll.u32 %v4785_v40, 16  ;;  %v984_v43 = vshrl.u32 %v4785_v40, 16 }
 0x183   : > { %v961_v44 = vrot.slane %v4793_v11, 1  ;;  %v909_v45 = vshrl.u32 %v4793_v11, 16  ;;  %v911_v46 = vshll.u32 %v4793_v11, 16  ;;  %v1073_v51 = vrot.slane %v4793_v11, 3 }
 0x184   : > { %v1040_v48 = vrot.slane %v984_v43, 2  ;;  %v1041_v49 = vrot.slane %v915_v42, 3  ;;  %v917_v58 = vrot.slane %v915_v42, 1  ;;  %v986_v0 = vrot.slane %v984_v43, 1 }
 0x185   : > { %v963_v53 = vsel %vm582_vm3, %v961_v44, %v962_v41  ;;  %v1037_v54 = vrot.slane %v909_v45, 2  ;;  %v1038_v55 = vrot.slane %v911_v46, 3  ;;  %v913_v56 = vrot.slane %v911_v46, 1 }
 0x186   : > { %973 = vrot.lane.b32.xlu0 %v963_v53, %s4391_s26  ;;  %v1042_v57 = vor.u32 %v1041_v49, %v1040_v48  ;;  %v981_v59 = vrot.slane %v909_v45, 1  ;;  %v982_v60 = vrot.slane %v911_v46, 2  ;;  %v987_v1 = vrot.slane %v915_v42, 2 }
 0x187   : > { %v1039_v61 = vor.u32 %v1038_v55, %v1037_v54  ;;  %v914_v63 = vor.u32 %v913_v56, %v909_v45  ;;  %v1074_v2 = vrot.slane %v4785_v40, 3  ;;  %v919_v3 = vshrl.u32 %v4789_v17, 16 }
 0x188   : > { %v983_v10 = vor.u32 %v982_v60, %v981_v59  ;;  %v921_v26 = vshll.u32 %v4789_v17, 16  ;;  %v988_v12 = vor.u32 %v987_v1, %v986_v0  ;;  %v1047_v13 = vrot.slane %v993_v52, 2 }
 0x189   : > { %v1043_v4 = vsel %vm669_vm5, %v1039_v61, %v1042_v57  ;;  %v918_v7 = vsel %vm529_vm2, %v914_v63, %v917_v58  ;;  %v1044_v6 = vrot.slane %v919_v3, 2  ;;  %v1048_v16 = vrot.slane %v4802_v47, 3 }
 0x18a   : > { %1065 = vrot.lane.b32.xlu1 %v1043_v4, %s4392_s27  ;;  %949 = vrot.lane.b32.xlu0 %v918_v7, %s4392_s27  ;;  %v923_v5 = vrot.slane %v921_v26, 1  ;;  %v1045_v14 = vrot.slane %v921_v26, 3  ;;  %v1075_v62 = vsel %vm706_vm6, %v1073_v51, %v1074_v2  ;;  %v989_v18 = vsel %vm603_vm4, %v983_v10, %v988_v12 }
 0x18b   : > { %v1049_v9 = vor.u32 %v1048_v16, %v1047_v13  ;;  %v927_v20 = vrot.slane %v4802_v47, 1  ;;  %v964_v29 = vrot.slane %v4789_v17, 1  ;;  %v1076_v30 = vrot.slane %v4789_v17, 3 }
 0x18c   : > { %v924_v19 = vor.u32 %v923_v5, %v919_v3  ;;  %v1046_v50 = vor.u32 %v1045_v14, %v1044_v6  ;;  %v1077_v32 = vrot.slane %v4783_v39, 3  ;;  %v990_v35 = vrot.slane %v919_v3, 1 }
 0x18d   : > { %v991_v36 = vrot.slane %v921_v26, 2  ;;  %v995_v37 = vrot.slane %v993_v52, 1  ;;  %v996_v44 = vrot.slane %v4802_v47, 2  ;;  %v966_v52 = vsel %vm582_vm3, %v964_v29, %v965_v23 }
 0x18e   : > { %1085 = vrot.lane.b32.xlu1 %v1075_v62, %s4391_s26  ;;  %1017 = vrot.lane.b32.xlu0 %v989_v18, %s4393_s28  ;;  %v4223_v21 = vpop.f32.mrb[4].mxu0  ;;  %v928_v42 = vsel %vm529_vm2, %v924_v19, %v927_v20  ;;  %v1050_v43 = vsel %vm669_vm5, %v1046_v50, %v1049_v9  ;;  %v1078_v47 = vsel %vm706_vm6, %v1076_v30, %v1077_v32 }
 0x18f   : > { %v4823_v25 = vadd.f32 %v4223_v21, %v4758_v22  ;;  %v866_v28 = vpop.f32.mrb[5].mxu0  ;;  %v992_v54 = vor.u32 %v991_v36, %v990_v35 }
 0x190   : > { %v4829_v33 = vadd.f32 %v4758_v22, %v866_v28  ;;  %v4224_v34 = vpop.f32.mrb[6].mxu0 }
 0x191   : > { %v4832_v38 = vadd.f32 %v4224_v34, %v4758_v22  ;;  %v869_v41 = vpop.f32.mrb[7].mxu0  ;;  %v887_v46 = vmax.f32 %v4823_v25, 0.0 }
 0x192   : > { %v4838_v45 = vadd.f32 %v4758_v22, %v869_v41  ;;  %951 = vrot.lane.b32.xlu1 %v928_v42, %s4392_s27  ;;  %1067 = vrot.lane.b32.xlu0 %v1050_v43, %s4392_s27  ;;  %v885_v49 = vmax.f32 %v4829_v33, 0.0  ;;  %v997_v22 = vor.u32 %v996_v44, %v995_v37 }
 0x193   : > { %v888_v48 = vmax.f32 %v4832_v38, 0.0 }
 0x194   : > { %v886_v51 = vmax.f32 %v4838_v45, 0.0  ;;  %v998_v58 = vsel %vm603_vm4, %v992_v54, %v997_v22 }
 0x195   : > { %v892_v53 = vpack.c.bf16 %v888_v48, %v887_v46 }
 0x196   : > { %v891_v55 = vpack.c.bf16 %v886_v51, %v885_v49  ;;  %975 = vrot.lane.b32.xlu1 %v966_v52, %s4391_s26  ;;  %1087 = vrot.lane.b32.xlu0 %v1078_v47, %s4391_s26 }
 0x197   : > { %v4850_v56 = vrot.slane %v892_v53, 5 }
 0x198   : > { %v4852_v57 = vrot.slane %v891_v55, 5 }
 0x199   : > { %v4857_v59 = vsel %vm519_vm0, 0, %v4850_v56  ;;  %v945_v60 = vshll.u32 %v4850_v56, 16  ;;  %v1011_v13 = vshrl.u32 %v4850_v56, 16  ;;  %v971_v51 = vrot.slane %v4850_v56, 1 }
 0x19a   : > { %1019 = vrot.lane.b32.xlu1 %v998_v58, %s4393_s28  ;;  %v4863_v61 = vsel %vm519_vm0, 0, %v4852_v57  ;;  %v1080_v63 = vrot.slane %v4852_v57, 3  ;;  %v968_v0 = vrot.slane %v4852_v57, 1  ;;  %v935_v1 = vshll.u32 %v4852_v57, 16 }
 0x19b   : > { %v1079_v2 = vrot.slane %v4863_v61, 3  ;;  %v967_v10 = vrot.slane %v4863_v61, 1  ;;  %v929_v3 = vshrl.u32 %v4863_v61, 16  ;;  %v931_v26 = vshll.u32 %v4863_v61, 16 }
 0x19c   : > { %v1002_v4 = vshrl.u32 %v4852_v57, 16  ;;  %v1055_v7 = vrot.slane %v935_v1, 3  ;;  %v939_v12 = vshrl.u32 %v4857_v59, 16  ;;  %v937_v19 = vrot.slane %v935_v1, 1 }
 0x19d   : > { %v1081_v5 = vsel %vm706_vm6, %v1079_v2, %v1080_v63  ;;  %v969_v6 = vsel %vm582_vm3, %v967_v10, %v968_v0  ;;  %v1051_v14 = vrot.slane %v929_v3, 2  ;;  %v1052_v16 = vrot.slane %v931_v26, 3 }
 0x19e   : > { %1089 = vrot.lane.b32.xlu1 %v1081_v5, %s4391_s26  ;;  %977 = vrot.lane.b32.xlu0 %v969_v6, %s4391_s26  ;;  %v1054_v62 = vrot.slane %v1002_v4, 2  ;;  %v933_v18 = vrot.slane %v931_v26, 1  ;;  %v941_v50 = vshll.u32 %v4857_v59, 16  ;;  %v999_v21 = vrot.slane %v929_v3, 1 }
 0x19f   : > { %v1053_v9 = vor.u32 %v1052_v16, %v1051_v14  ;;  %v1000_v20 = vrot.slane %v931_v26, 2  ;;  %v1004_v23 = vrot.slane %v1002_v4, 1  ;;  %v1005_v32 = vrot.slane %v935_v1, 2 }
 0x1a0   : > { %v1056_v28 = vor.u32 %v1055_v7, %v1054_v62  ;;  %v934_v29 = vor.u32 %v933_v18, %v929_v3  ;;  %v943_v30 = vrot.slane %v941_v50, 1  ;;  %v1058_v35 = vrot.slane %v939_v12, 2 }
 0x1a1   : > { %v1001_v34 = vor.u32 %v1000_v20, %v999_v21  ;;  %v1059_v36 = vrot.slane %v941_v50, 3  ;;  %v1006_v43 = vor.u32 %v1005_v32, %v1004_v23  ;;  %v947_v44 = vrot.slane %v945_v60, 1 }
 0x1a2   : > { %v1057_v37 = vsel %vm669_vm5, %v1053_v9, %v1056_v28  ;;  %v938_v41 = vsel %vm529_vm2, %v934_v29, %v937_v19  ;;  %v944_v42 = vor.u32 %v943_v30, %v939_v12  ;;  %v1061_v46 = vrot.slane %v1011_v13, 2 }
 0x1a3   : > { %1069 = vrot.lane.b32.xlu1 %v1057_v37, %s4392_s27  ;;  %953 = vrot.lane.b32.xlu0 %v938_v41, %s4392_s27  ;;  %v1062_v48 = vrot.slane %v945_v60, 3  ;;  %v970_v49 = vrot.slane %v4857_v59, 1  ;;  %v1007_v53 = vsel %vm603_vm4, %v1001_v34, %v1006_v43  ;;  %v1060_v47 = vor.u32 %v1059_v36, %v1058_v35 }
 0x1a4   : > { %v948_v52 = vsel %vm529_vm2, %v944_v42, %v947_v44  ;;  %v1008_v54 = vrot.slane %v939_v12, 1  ;;  %v1009_v55 = vrot.slane %v941_v50, 2  ;;  %v1013_v58 = vrot.slane %v1011_v13, 1 }
 0x1a5   : > { %v1063_v22 = vor.u32 %v1062_v48, %v1061_v46  ;;  %v1014_v63 = vrot.slane %v945_v60, 2  ;;  %v972_v0 = vsel %vm582_vm3, %v970_v49, %v971_v51  ;;  %v1082_v1 = vrot.slane %v4857_v59, 3 }
 0x1a6   : > { %v1010_v10 = vor.u32 %v1009_v55, %v1008_v54  ;;  %v1083_v26 = vrot.slane %v4850_v56, 3  ;;  %v1031_v30 = vrot.slane %v4863_v61, 2  ;;  %v1032_v32 = vrot.slane %v4852_v57, 2 }
 0x1a7   : > { %955 = vrot.lane.b32.xlu1 %v948_v52, %s4392_s27  ;;  %1021 = vrot.lane.b32.xlu0 %v1007_v53, %s4393_s28  ;;  %v1064_v2 = vsel %vm669_vm5, %v1060_v47, %v1063_v22  ;;  %v1015_v3 = vor.u32 %v1014_v63, %v1013_v58  ;;  %v1034_v57 = vrot.slane %v4857_v59, 2  ;;  %v1035_v48 = vrot.slane %v4850_v56, 2  ;;  %v4274_v56 = vld [vmem:[%s5998_s5] sm:$0xff]   ;;  %v4276_v63 = vld [vmem:[%s5998_s5 + $0x10] sm:$0xff]  }
 0x1a8   : > { %v1084_v4 = vsel %vm706_vm6, %v1082_v1, %v1083_v26  ;;  %v1033_v34 = vsel %vm648_vm1, %v1031_v30, %v1032_v32  ;;  %1764 = vmatpush1.bf16.msra.mxu0 %v4274_v56  ;;  %v4278_v1 = vld [vmem:[%s5998_s5 + $0x20] sm:$0xff]  }
 0x1a9   : > { %v1016_v60 = vsel %vm603_vm4, %v1010_v10, %v1015_v3  ;;  %v1036_v52 = vsel %vm648_vm1, %v1034_v57, %v1035_v48  ;;  %1765 = vmatprep.subr.bf16.mxu0 %v4390_v15  ;;  %v4280_v10 = vld [vmem:[%s5998_s5 + $0x30] sm:$0xff]   ;;  %v4281_v3 = vld [vmem:[%s5998_s5 + $0x38] sm:$0xff]   ;;  %v4282_v26 = vld [vmem:[%s5998_s5 + $0x40] sm:$0xff]  }
 0x1ab   : > { %979 = vrot.lane.b32.xlu1 %v972_v0, %s4391_s26  ;;  %1071 = vrot.lane.b32.xlu0 %v1064_v2, %s4392_s27  ;;  %v4277_v0 = vld [vmem:[%s5998_s5 + $0x18] sm:$0xff]   ;;  %v4279_v2 = vld [vmem:[%s5998_s5 + $0x28] sm:$0xff]  }
 0x1af   : > { %1023 = vrot.lane.b32.xlu1 %v1016_v60, %s4393_s28  ;;  %1091 = vrot.lane.b32.xlu0 %v1084_v4, %s4391_s26  ;;  %v4283_v60 = vld [vmem:[%s5998_s5 + $0x48] sm:$0xff]   ;;  %v4284_v4 = vld [vmem:[%s5998_s5 + $0x50] sm:$0xff]  }
 0x1b3   : > { %1354 = vrot.lane.b32.xlu1 %v4773_v31, %s4393_s28  ;;  %1352 = vrot.lane.b32.xlu0 %v4764_v27, %s4393_s28  ;;  %v1025_v27 = vrot.slane %v4793_v11, 2 }
 0x1b7   : > { %1358 = vrot.lane.b32.xlu1 %v4770_v8, %s4393_s28  ;;  %1356 = vrot.lane.b32.xlu0 %v4761_v24, %s4393_s28  ;;  %v1026_v8 = vrot.slane %v4785_v40, 2  ;;  %v1028_v40 = vrot.slane %v4789_v17, 2 }
 0x1bb   : > { %1362 = vrot.lane.b32.xlu1 %v4838_v45, %s4393_s28  ;;  %1360 = vrot.lane.b32.xlu0 %v4829_v33, %s4393_s28  ;;  %v1027_v33 = vsel %vm648_vm1, %v1025_v27, %v1026_v8  ;;  %v5007_v27 = vld [vmem:[%s5997_s4] ss:$0 sm:$0xff] }
 0x1bf   : > { %1366 = vrot.lane.b32.xlu1 %v4832_v38, %s4393_s28  ;;  %1364 = vrot.lane.b32.xlu0 %v4823_v25, %s4393_s28 }
 0x1f8   : > { %v974_v31 = vpop.permute.xlu0 %973 }
 0x1fc   : > { %v1066_v7 = vpop.permute.xlu1 %1065  ;;  %v950_v24 = vpop.permute.xlu0 %949 }
 0x1fd   : > { %v1095_v45 = vsel %vm1093_vm14, %v4793_v11, %v950_v24  ;;  %v1126_v38 = vsel %vm1093_vm14, %v1027_v33, %v1066_v7  ;;  %v1029_v11 = vrot.slane %v4783_v39, 2 }
 0x1fe   : > { %v1104_v25 = vsel %vm1102_vm15, %v1095_v45, %v974_v31  ;;  %v4285_v31 = vld [vmem:[%s5998_s5 + $0x58] sm:$0xff]  }
 0x1ff   : > { %v1030_v62 = vsel %vm648_vm1, %v1028_v40, %v1029_v11 }
 0x200   : > { %v1086_v12 = vpop.permute.xlu1 %1085  ;;  %v1018_v13 = vpop.permute.xlu0 %1017 }
 0x201   : > { %v1137_v5 = vsel %vm1102_vm15, %v1126_v38, %v1086_v12  ;;  %v1113_v6 = vsel %vm1111_vm7, %v1104_v25, %v1018_v13  ;;  %v4286_v13 = vld [vmem:[%s5998_s5 + $0x60] sm:$0xff]  }
 0x202   : > { %3951 = vmatprep.mubr.msk.bf16.mxu1 %vm1111_vm7, %v1137_v5 }
 0x203   : > { %1304 = vmatmul.mubr.bf16.vlgmr.msra.gmra.mrb[0].mxu1 %v1113_v6 }
 0x204   : > { %v952_v14 = vpop.permute.xlu1 %951  ;;  %v1068_v16 = vpop.permute.xlu0 %1067 }
 0x205   : > { %v1129_v18 = vsel %vm1093_vm14, %v1030_v62, %v1068_v16  ;;  %v1097_v21 = vsel %vm1093_vm14, %v4789_v17, %v952_v14  ;;  %v4287_v16 = vld [vmem:[%s5998_s5 + $0x68] sm:$0xff]  }
 0x208   : > { %v976_v19 = vpop.permute.xlu1 %975  ;;  %v1088_v50 = vpop.permute.xlu0 %1087 }
 0x209   : > { %v1139_v9 = vsel %vm1102_vm15, %v1129_v18, %v1088_v50  ;;  %v1106_v20 = vsel %vm1102_vm15, %v1097_v21, %v976_v19 }
 0x20a   : > { %3952 = vmatprep.mubr.msk.bf16.mxu1 %vm1111_vm7, %v1139_v9 }
 0x20c   : > { %v1020_v23 = vpop.permute.xlu1 %1019 }
 0x20d   : > { %v1116_v39 = vsel %vm1111_vm7, %v1106_v20, %v1020_v23 }
 0x20e   : > { %1312 = vmatmul.mubr.bf16.gmra.mrb[4].mxu1 %v1116_v39 }
 0x210   : > { %v1090_v28 = vpop.permute.xlu1 %1089  ;;  %v978_v29 = vpop.permute.xlu0 %977 }
 0x215   : > { %v1070_v35 = vpop.permute.xlu1 %1069  ;;  %v954_v36 = vpop.permute.xlu0 %953 }
 0x216   : > { %v1132_v37 = vsel %vm1093_vm14, %v1033_v34, %v1070_v35  ;;  %v1099_v17 = vsel %vm1093_vm14, %v4863_v61, %v954_v36 }
 0x217   : > { %v1141_v41 = vsel %vm1102_vm15, %v1132_v37, %v1090_v28  ;;  %v1108_v44 = vsel %vm1102_vm15, %v1099_v17, %v978_v29 }
 0x218   : > { %3953 = vmatprep.mubr.msk.bf16.mxu1 %vm1111_vm7, %v1141_v41 }
 0x219   : > { %v956_v42 = vpop.permute.xlu1 %955  ;;  %v1022_v43 = vpop.permute.xlu0 %1021 }
 0x21a   : > { %v1119_v46 = vsel %vm1111_vm7, %v1108_v44, %v1022_v43  ;;  %v1101_v61 = vsel %vm1093_vm14, %v4857_v59, %v956_v42  ;;  %v4275_v59 = vld [vmem:[%s5998_s5 + $0x8] sm:$0xff]  }
 0x21b   : > { %1320 = vmatmul.mubr.bf16.gmra.mrb[8].mxu1 %v1119_v46  ;;  %1766 = vmatpush1.bf16.msra.mxu0 %v4275_v59 }
 0x21c   : > { %1767 = vmatprep.subr.bf16.mxu0 %v4390_v15 }
 0x21d   : > { %v980_v49 = vpop.permute.xlu1 %979  ;;  %v1072_v51 = vpop.permute.xlu0 %1071 }
 0x21e   : > { %v1110_v53 = vsel %vm1102_vm15, %v1101_v61, %v980_v49  ;;  %v1135_v47 = vsel %vm1093_vm14, %v1036_v52, %v1072_v51 }
 0x21f   : > { %1768 = vmatpush1.bf16.msra.mxu0 %v4276_v63 }
 0x220   : > { %1769 = vmatprep.subr.bf16.mxu0 %v4390_v15 }
 0x221   : > { %v1024_v54 = vpop.permute.xlu1 %1023  ;;  %v1092_v22 = vpop.permute.xlu0 %1091 }
 0x222   : > { %v1143_v55 = vsel %vm1102_vm15, %v1135_v47, %v1092_v22  ;;  %v1122_v58 = vsel %vm1111_vm7, %v1110_v53, %v1024_v54 }
 0x223   : > { %3954 = vmatprep.mubr.msk.bf16.mxu1 %vm1111_vm7, %v1143_v55  ;;  %1770 = vmatpush1.bf16.msra.mxu0 %v4277_v0 }
 0x224   : > { %1328 = vmatmul.mubr.bf16.gmra.mrb[12].mxu1 %v1122_v58  ;;  %1771 = vmatprep.subr.bf16.mxu0 %v4390_v15 }
 0x225   : > { %v1355_v5 = vpop.permute.xlu1 %1354  ;;  %v1353_v6 = vpop.permute.xlu0 %1352 }
 0x227   : > { %1772 = vmatpush1.bf16.msra.mxu0 %v4278_v1 }
 0x228   : > { %1773 = vmatprep.subr.bf16.mxu0 %v4390_v15 }
 0x229   : > { %v1357_v35 = vpop.permute.xlu0 %1356  ;;  %v1359_v57 = vpop.permute.xlu1 %1358 }
 0x22b   : > { %1774 = vmatpush1.bf16.msra.mxu0 %v4279_v2 }
 0x22c   : > { %1775 = vmatprep.subr.bf16.mxu0 %v4390_v15 }
 0x22f   : > { %1776 = vmatpush1.bf16.msra.mxu0 %v4280_v10 }
 0x230   : > { %1777 = vmatprep.subr.bf16.mxu0 %v4390_v15 }
 0x233   : > { %1778 = vmatpush1.bf16.msra.mxu0 %v4281_v3 }
 0x234   : > { %1779 = vmatprep.subr.bf16.mxu0 %v4390_v15 }
 0x237   : > { %1780 = vmatpush1.bf16.msra.mxu0 %v4282_v26 }
 0x238   : > { %1781 = vmatprep.subr.bf16.mxu0 %v4390_v15 }
 0x23b   : > { %1782 = vmatpush1.bf16.msra.mxu0 %v4283_v60 }
 0x23c   : > { %1783 = vmatprep.subr.bf16.mxu0 %v4390_v15 }
 0x23f   : > { %1784 = vmatpush1.bf16.msra.mxu0 %v4284_v4 }
 0x240   : > { %1785 = vmatprep.subr.bf16.mxu0 %v4390_v15 }
 0x243   : > { %1786 = vmatpush1.bf16.msra.mxu0 %v4285_v31 }
 0x244   : > { %1787 = vmatprep.subr.bf16.mxu0 %v4390_v15 }
 0x247   : > { %1788 = vmatpush1.bf16.msra.mxu0 %v4286_v13 }
 0x248   : > { %1789 = vmatprep.subr.bf16.mxu0 %v4390_v15 }
 0x24b   : > { %1790 = vmatpush1.bf16.msra.mxu0 %v4287_v16 }
 0x24c   : > { %2376 = vmatprep.subr.bf16.mxu0 %v4390_v15 }
 0x2d6   : > { %v1305_v8 = vpop.f32.mrb[0].mxu1 }
 0x2d7   : > { %v1306_v7 = vadd.f32 %v5007_v27, %v1305_v8  ;;  %v1307_v24 = vpop.f32.mrb[1].mxu1 }
 0x2d8   : > { %v1308_v45 = vpop.f32.mrb[2].mxu1 }
 0x2d9   : > { %v1336_v33 = vmax.f32 %v1306_v7, 0.0  ;;  %v1309_v38 = vadd.f32 %v5007_v27, %v1308_v45  ;;  %v1310_v12 = vpop.f32.mrb[3].mxu1 }
 0x2db   : > { %v1337_v25 = vmax.f32 %v1309_v38, 0.0  ;;  %v1376_v40 = vadd.f32 %v1353_v6, %v1336_v33 }
 0x2dd   : > { %v1377_v11 = vadd.f32 %v1355_v5, %v1337_v25 }
 0x2df   : > { %v1384_v14 = vpack.c.bf16 %v1377_v11, %v1376_v40 }
 0x2e1   : > { %v5018_v62 = vrot.slane %v1384_v14, 5  ;;  %v1313_v18 = vpop.f32.mrb[4].mxu1 }
 0x2e2   : > { %v1314_v19 = vadd.f32 %v5007_v27, %v1313_v18  ;;  %v1315_v50 = vpop.f32.mrb[5].mxu1 }
 0x2e3   : > { %v1316_v9 = vpop.f32.mrb[6].mxu1  ;;  %v5024_v21 = vsel %vm519_vm0, 0, %v5018_v62  ;;  %v1457_v20 = vrot.slane %v5018_v62, 1  ;;  %v1410_v23 = vshll.u32 %v5018_v62, 16  ;;  %v1479_v39 = vshrl.u32 %v5018_v62, 16 }
 0x2e4   : > { %v1338_v28 = vmax.f32 %v1314_v19, 0.0  ;;  %v1317_v29 = vadd.f32 %v5007_v27, %v1316_v9  ;;  %v1318_v30 = vpop.f32.mrb[7].mxu1  ;;  %v1456_v32 = vrot.slane %v5024_v21, 1  ;;  %v1404_v34 = vshrl.u32 %v5024_v21, 16 }
 0x2e5   : > { %v1406_v36 = vshll.u32 %v5024_v21, 16  ;;  %v1535_v37 = vrot.slane %v1479_v39, 2  ;;  %v1536_v17 = vrot.slane %v1410_v23, 3  ;;  %v1412_v41 = vrot.slane %v1410_v23, 1  ;;  %v1363_v30 = vpop.permute.xlu1 %1362 }
 0x2e6   : > { %v1378_v42 = vadd.f32 %v1357_v35, %v1338_v28  ;;  %v1339_v43 = vmax.f32 %v1317_v29, 0.0  ;;  %v1458_v44 = vsel %vm582_vm3, %v1456_v32, %v1457_v20  ;;  %v1532_v46 = vrot.slane %v1404_v34, 2  ;;  %v1361_v32 = vpop.permute.xlu0 %1360 }
 0x2e7   : > { %1468 = vrot.lane.b32.xlu0 %v1458_v44, %s4391_s26  ;;  %v1533_v48 = vrot.slane %v1406_v36, 3  ;;  %v1537_v49 = vor.u32 %v1536_v17, %v1535_v37  ;;  %v1408_v51 = vrot.slane %v1406_v36, 1  ;;  %v1568_v61 = vrot.slane %v5024_v21, 3 }
 0x2e8   : > { %v1379_v52 = vadd.f32 %v1359_v57, %v1339_v43  ;;  %v1569_v53 = vrot.slane %v5018_v62, 3  ;;  %v1476_v47 = vrot.slane %v1404_v34, 1  ;;  %v1477_v54 = vrot.slane %v1406_v36, 2 }
 0x2e9   : > { %v1534_v22 = vor.u32 %v1533_v48, %v1532_v46  ;;  %v1409_v55 = vor.u32 %v1408_v51, %v1404_v34  ;;  %v1481_v58 = vrot.slane %v1479_v39, 1  ;;  %v1482_v56 = vrot.slane %v1410_v23, 2 }
 0x2ea   : > { %v1385_v59 = vpack.c.bf16 %v1379_v52, %v1378_v42  ;;  %v1478_v63 = vor.u32 %v1477_v54, %v1476_v47  ;;  %v1570_v3 = vsel %vm706_vm6, %v1568_v61, %v1569_v53 }
 0x2eb   : > { %v1538_v0 = vsel %vm669_vm5, %v1534_v22, %v1537_v49  ;;  %v1413_v1 = vsel %vm529_vm2, %v1409_v55, %v1412_v41  ;;  %v1483_v2 = vor.u32 %v1482_v56, %v1481_v58  ;;  %v1365_v58 = vpop.permute.xlu0 %1364 }
 0x2ec   : > { %v5039_v10 = vrot.slane %v1385_v59, 5  ;;  %1560 = vrot.lane.b32.xlu1 %v1538_v0, %s4392_s27  ;;  %1444 = vrot.lane.b32.xlu0 %v1413_v1, %s4392_s27 }
 0x2ed   : > { %v1484_v26 = vsel %vm603_vm4, %v1478_v63, %v1483_v2 }
 0x2ee   : > { %v1321_v60 = vpop.f32.mrb[8].mxu1  ;;  %v5047_v4 = vsel %vm519_vm0, 0, %v5039_v10  ;;  %v1572_v31 = vrot.slane %v5039_v10, 3  ;;  %v1460_v8 = vrot.slane %v5039_v10, 1  ;;  %v1420_v7 = vshll.u32 %v5039_v10, 16 }
 0x2ef   : > { %v1322_v24 = vadd.f32 %v5007_v27, %v1321_v60  ;;  %v1323_v45 = vpop.f32.mrb[9].mxu1  ;;  %v1571_v33 = vrot.slane %v5047_v4, 3  ;;  %v1459_v38 = vrot.slane %v5047_v4, 1  ;;  %v1414_v12 = vshrl.u32 %v5047_v4, 16 }
 0x2f0   : > { %v1324_v13 = vpop.f32.mrb[10].mxu1  ;;  %1580 = vrot.lane.b32.xlu1 %v1570_v3, %s4391_s26  ;;  %1512 = vrot.lane.b32.xlu0 %v1484_v26, %s4393_s28  ;;  %v1416_v25 = vshll.u32 %v5047_v4, 16  ;;  %v1488_v5 = vshrl.u32 %v5039_v10, 16  ;;  %v1543_v6 = vrot.slane %v1420_v7, 3  ;;  %v1422_v39 = vrot.slane %v1420_v7, 1  ;;  %v1367_v26 = vpop.permute.xlu1 %1366 }
 0x2f1   : > { %v1340_v40 = vmax.f32 %v1322_v24, 0.0  ;;  %v1325_v11 = vadd.f32 %v5007_v27, %v1324_v13  ;;  %v1326_v14 = vpop.f32.mrb[11].mxu1  ;;  %v1573_v16 = vsel %vm706_vm6, %v1571_v33, %v1572_v31  ;;  %v1461_v18 = vsel %vm582_vm3, %v1459_v38, %v1460_v8 }
 0x2f2   : > { %v1539_v19 = vrot.slane %v1414_v12, 2  ;;  %v1540_v50 = vrot.slane %v1416_v25, 3  ;;  %v1542_v9 = vrot.slane %v1488_v5, 2  ;;  %v1418_v20 = vrot.slane %v1416_v25, 1 }
 0x2f3   : > { %v1341_v23 = vmax.f32 %v1325_v11, 0.0  ;;  %v1485_v28 = vrot.slane %v1414_v12, 1  ;;  %v1486_v29 = vrot.slane %v1416_v25, 2  ;;  %v1490_v37 = vrot.slane %v1488_v5, 1 }
 0x2f4   : > { %1582 = vrot.lane.b32.xlu0 %v1573_v16, %s4391_s26  ;;  %1470 = vrot.lane.b32.xlu1 %v1461_v18, %s4391_s26  ;;  %v1541_v34 = vor.u32 %v1540_v50, %v1539_v19  ;;  %v1544_v35 = vor.u32 %v1543_v6, %v1542_v9  ;;  %v1419_v36 = vor.u32 %v1418_v20, %v1414_v12  ;;  %v1491_v42 = vrot.slane %v1420_v7, 2 }
 0x2f5   : > { %v1380_v17 = vadd.f32 %v1361_v32, %v1340_v40  ;;  %v1381_v41 = vadd.f32 %v1363_v30, %v1341_v23  ;;  %v1487_v46 = vor.u32 %v1486_v29, %v1485_v28 }
 0x2f6   : > { %v1545_v43 = vsel %vm669_vm5, %v1541_v34, %v1544_v35  ;;  %v1423_v44 = vsel %vm529_vm2, %v1419_v36, %v1422_v39  ;;  %v1492_v49 = vor.u32 %v1491_v42, %v1490_v37 }
 0x2f7   : > { %v1386_v57 = vpack.c.bf16 %v1381_v41, %v1380_v17  ;;  %v1329_v48 = vpop.f32.mrb[12].mxu1 }
 0x2f8   : > { %v1330_v51 = vadd.f32 %v5007_v27, %v1329_v48  ;;  %v1331_v61 = vpop.f32.mrb[13].mxu1  ;;  %1562 = vrot.lane.b32.xlu0 %v1545_v43, %s4392_s27  ;;  %1446 = vrot.lane.b32.xlu1 %v1423_v44, %s4392_s27  ;;  %v1493_v55 = vsel %vm603_vm4, %v1487_v46, %v1492_v49 }
 0x2f9   : > { %v5070_v52 = vrot.slane %v1386_v57, 5  ;;  %v1332_v53 = vpop.f32.mrb[14].mxu1 }
 0x2fa   : > { %v1342_v47 = vmax.f32 %v1330_v51, 0.0  ;;  %v1333_v54 = vadd.f32 %v5007_v27, %v1332_v53  ;;  %v1334_v22 = vpop.f32.mrb[15].mxu1 }
 0x2fb   : > { %v5076_v56 = vsel %vm519_vm0, 0, %v5070_v52  ;;  %v1463_v59 = vrot.slane %v5070_v52, 1  ;;  %v1575_v63 = vrot.slane %v5070_v52, 3  ;;  %v1430_v0 = vshll.u32 %v5070_v52, 16 }
 0x2fc   : > { %v1382_v1 = vadd.f32 %v1365_v58, %v1342_v47  ;;  %v1343_v2 = vmax.f32 %v1333_v54, 0.0  ;;  %1514 = vrot.lane.b32.xlu1 %v1493_v55, %s4393_s28  ;;  %v1462_v27 = vrot.slane %v5076_v56, 1  ;;  %v1574_v3 = vrot.slane %v5076_v56, 3 }
 0x2fd   : > { %v1424_v60 = vshrl.u32 %v5076_v56, 16  ;;  %v1426_v31 = vshll.u32 %v5076_v56, 16  ;;  %v1432_v8 = vrot.slane %v1430_v0, 1  ;;  %v1497_v7 = vshrl.u32 %v5070_v52, 16 }
 0x2fe   : > { %v1383_v24 = vadd.f32 %v1367_v26, %v1343_v2  ;;  %v1464_v45 = vsel %vm582_vm3, %v1462_v27, %v1463_v59  ;;  %v1576_v33 = vsel %vm706_vm6, %v1574_v3, %v1575_v63  ;;  %v1550_v38 = vrot.slane %v1430_v0, 3 }
 0x2ff   : > { %1472 = vrot.lane.b32.xlu0 %v1464_v45, %s4391_s26  ;;  %v1428_v12 = vrot.slane %v1426_v31, 1  ;;  %v1546_v13 = vrot.slane %v1424_v60, 2  ;;  %v1547_v25 = vrot.slane %v1426_v31, 3  ;;  %v1549_v5 = vrot.slane %v1497_v7, 2 }
 0x300   : > { %v1387_v6 = vpack.c.bf16 %v1383_v24, %v1382_v1  ;;  %1584 = vrot.lane.b32.xlu1 %v1576_v33, %s4391_s26  ;;  %v1494_v40 = vrot.slane %v1424_v60, 1  ;;  %v1495_v11 = vrot.slane %v1426_v31, 2  ;;  %v1499_v14 = vrot.slane %v1497_v7, 1 }
 0x301   : > { %v1429_v16 = vor.u32 %v1428_v12, %v1424_v60  ;;  %v1548_v18 = vor.u32 %v1547_v25, %v1546_v13  ;;  %v1551_v19 = vor.u32 %v1550_v38, %v1549_v5  ;;  %v1500_v50 = vrot.slane %v1430_v0, 2 }
 0x302   : > { %v5091_v9 = vrot.slane %v1387_v6, 5  ;;  %v1496_v20 = vor.u32 %v1495_v11, %v1494_v40  ;;  %v1520_v26 = vrot.slane %v5024_v21, 2  ;;  %v1521_v60 = vrot.slane %v5018_v62, 2 }
 0x303   : > { %v1433_v23 = vsel %vm529_vm2, %v1429_v16, %v1432_v8  ;;  %v1552_v39 = vsel %vm669_vm5, %v1548_v18, %v1551_v19  ;;  %v1501_v28 = vor.u32 %v1500_v50, %v1499_v14  ;;  %v1523_v6 = vrot.slane %v5047_v4, 2 }
 0x304   : > { %1448 = vrot.lane.b32.xlu0 %v1433_v23, %s4392_s27  ;;  %1564 = vrot.lane.b32.xlu1 %v1552_v39, %s4392_s27  ;;  %v5099_v29 = vsel %vm519_vm0, 0, %v5091_v9  ;;  %v1466_v30 = vrot.slane %v5091_v9, 1  ;;  %v1440_v32 = vshll.u32 %v5091_v9, 16  ;;  %v1506_v34 = vshrl.u32 %v5091_v9, 16 }
 0x305   : > { %v1465_v35 = vrot.slane %v5099_v29, 1  ;;  %v1434_v36 = vshrl.u32 %v5099_v29, 16  ;;  %v1436_v37 = vshll.u32 %v5099_v29, 16  ;;  %v1502_v17 = vsel %vm603_vm4, %v1496_v20, %v1501_v28 }
 0x306   : > { %v1556_v41 = vrot.slane %v1506_v34, 2  ;;  %v1557_v42 = vrot.slane %v1440_v32, 3  ;;  %v1442_v49 = vrot.slane %v1440_v32, 1  ;;  %v1508_v54 = vrot.slane %v1506_v34, 1 }
 0x307   : > { %v1467_v43 = vsel %vm582_vm3, %v1465_v35, %v1466_v30  ;;  %v1553_v44 = vrot.slane %v1434_v36, 2  ;;  %v1554_v46 = vrot.slane %v1436_v37, 3  ;;  %v1438_v57 = vrot.slane %v1436_v37, 1 }
 0x308   : > { %1516 = vrot.lane.b32.xlu0 %v1502_v17, %s4393_s28  ;;  %1474 = vrot.lane.b32.xlu1 %v1467_v43, %s4391_s26  ;;  %v1558_v48 = vor.u32 %v1557_v42, %v1556_v41  ;;  %v1503_v51 = vrot.slane %v1434_v36, 1  ;;  %v1504_v61 = vrot.slane %v1436_v37, 2  ;;  %v1509_v22 = vrot.slane %v1440_v32, 2 }
 0x309   : > { %v1555_v53 = vor.u32 %v1554_v46, %v1553_v44  ;;  %v1439_v47 = vor.u32 %v1438_v57, %v1434_v36  ;;  %v1577_v55 = vrot.slane %v5099_v29, 3  ;;  %v1578_v58 = vrot.slane %v5091_v9, 3 }
 0x30a   : > { %v1505_v0 = vor.u32 %v1504_v61, %v1503_v51  ;;  %v1510_v1 = vor.u32 %v1509_v22, %v1508_v54  ;;  %v1522_v24 = vsel %vm648_vm1, %v1520_v26, %v1521_v60  ;;  %v1526_v28 = vrot.slane %v5076_v56, 2  ;;  %v4292_v22 = vld [vmem:[%s6000_s7] sm:$0xff]  }
 0x30b   : > { %v1559_v59 = vsel %vm669_vm5, %v1555_v53, %v1558_v48  ;;  %v1443_v63 = vsel %vm529_vm2, %v1439_v47, %v1442_v49  ;;  %v1579_v2 = vsel %vm706_vm6, %v1577_v55, %v1578_v58  ;;  %v1527_v30 = vrot.slane %v5070_v52, 2  ;;  %v4289_v55 = vld [vmem:[%s6000_s7 + $0x88] sm:$0xff]   ;;  %v4303_v26 = vld [vmem:[%s6000_s7 + $0x60] sm:$0xff]  }
 0x30c   : > { %1566 = vrot.lane.b32.xlu0 %v1559_v59, %s4392_s27  ;;  %1450 = vrot.lane.b32.xlu1 %v1443_v63, %s4392_s27  ;;  %v1511_v27 = vsel %vm603_vm4, %v1505_v0, %v1510_v1  ;;  %v1529_v52 = vrot.slane %v5099_v29, 2  ;;  %v1530_v44 = vrot.slane %v5091_v9, 2  ;;  %v4288_v9 = vld [vmem:[%s6000_s7 + $0x80] sm:$0xff]   ;;  %v4294_v58 = vld [vmem:[%s6000_s7 + $0x48] sm:$0xff]  }
 0x30d   : > { %v4295_v59 = vld [vmem:[%s6000_s7 + $0x8] sm:$0xff]   ;;  %v4297_v63 = vld [vmem:[%s6000_s7 + $0x50] sm:$0xff]   ;;  %v4296_v60 = vld [vmem:[%s6000_s7 + $0xa0] sm:$0xff]  }
 0x30e   : > { %v1531_v48 = vsel %vm648_vm1, %v1529_v52, %v1530_v44  ;;  %v4290_v0 = vld [vmem:[%s6000_s7 + $0x90] sm:$0xff]  }
 0x30f   : > { %v4298_v1 = vld [vmem:[%s6000_s7 + $0x10] sm:$0xff]  }
 0x310   : > { %1586 = vrot.lane.b32.xlu0 %v1579_v2, %s4391_s26  ;;  %1518 = vrot.lane.b32.xlu1 %v1511_v27, %s4393_s28  ;;  %v4300_v2 = vld [vmem:[%s6000_s7 + $0x58] sm:$0xff]   ;;  %s3928_s28 = sshll.u32 %s6012_s19, 2 }
 0x311   : > { %v4293_v27 = vld [vmem:[%s6000_s7 + $0x98] sm:$0xff]   ;;  %s497_s20 = scalar_lea.vmem %s6008_s15, %s3928_s28 }
 0x359   : > { %v1469_v3 = vpop.permute.xlu0 %1468 }
 0x35e   : > { %v1561_v31 = vpop.permute.xlu1 %1560  ;;  %v1445_v8 = vpop.permute.xlu0 %1444 }
 0x35f   : > { %v1589_v7 = vsel %vm1093_vm14, %v5024_v21, %v1445_v8  ;;  %v1618_v45 = vsel %vm1093_vm14, %v1522_v24, %v1561_v31  ;;  %v1524_v21 = vrot.slane %v5039_v10, 2  ;;  %v4304_v31 = vld [vmem:[%s6000_s7 + $0x20] sm:$0xff]   ;;  %v4306_v8 = vld [vmem:[%s6000_s7 + $0x68] sm:$0xff]  }
 0x360   : > { %v1597_v38 = vsel %vm1102_vm15, %v1589_v7, %v1469_v3  ;;  %v4301_v3 = vld [vmem:[%s6000_s7 + $0x18] sm:$0xff]   ;;  %v4299_v7 = vld [vmem:[%s6000_s7 + $0xa8] sm:$0xff]  }
 0x361   : > { %v1525_v11 = vsel %vm648_vm1, %v1523_v6, %v1524_v21  ;;  %v4307_v24 = vld [vmem:[%s6000_s7 + $0x28] sm:$0xff]   ;;  %v4314_v6 = vld [vmem:[%s6000_s7 + $0xd0] sm:$0xff]   ;;  %v5256_v21 = vld [vmem:[%s5999_s6] ss:$0 sm:$0xff] }
 0x362   : > { %v1581_v33 = vpop.permute.xlu1 %1580  ;;  %v1513_v12 = vpop.permute.xlu0 %1512 }
 0x363   : > { %v1629_v13 = vsel %vm1102_vm15, %v1618_v45, %v1581_v33  ;;  %v1605_v25 = vsel %vm1111_vm7, %v1597_v38, %v1513_v12  ;;  %v4309_v45 = vld [vmem:[%s6000_s7 + $0x70] sm:$0xff]   ;;  %v4312_v12 = vld [vmem:[%s6000_s7 + $0x78] sm:$0xff]  }
 0x364   : > { %3970 = vmatprep.mubr.msk.bf16.mxu0 %vm1111_vm7, %v1629_v13  ;;  %v4302_v33 = vld [vmem:[%s6000_s7 + $0xb0] sm:$0xff]   ;;  %v4305_v13 = vld [vmem:[%s6000_s7 + $0xb8] sm:$0xff]  }
 0x365   : > { %1796 = vmatmul.mubr.bf16.vlgmr.msra.gmra.mrb[8].mxu0 %v1605_v25  ;;  %v4310_v38 = vld [vmem:[%s6000_s7 + $0x30] sm:$0xff]   ;;  %v4313_v25 = vld [vmem:[%s6000_s7 + $0x38] sm:$0xff]  }
 0x366   : > { %v1471_v62 = vpop.permute.xlu1 %1470  ;;  %v1583_v5 = vpop.permute.xlu0 %1582  ;;  %2377 = vmatpush1.bf16.msra.mxu0 %v4288_v9 }
 0x367   : > { %2378 = vmatprep.subr.bf16.mxu0 %v4390_v15 }
 0x36a   : > { %v1447_v40 = vpop.permute.xlu1 %1446  ;;  %v1563_v14 = vpop.permute.xlu0 %1562  ;;  %2379 = vmatpush1.bf16.msra.mxu0 %v4289_v55 }
 0x36b   : > { %v1591_v16 = vsel %vm1093_vm14, %v5047_v4, %v1447_v40  ;;  %v1621_v18 = vsel %vm1093_vm14, %v1525_v11, %v1563_v14  ;;  %v1528_v4 = vsel %vm648_vm1, %v1526_v28, %v1527_v30  ;;  %2380 = vmatprep.subr.bf16.mxu0 %v4390_v15 }
 0x36c   : > { %v1631_v19 = vsel %vm1102_vm15, %v1621_v18, %v1583_v5  ;;  %v1599_v20 = vsel %vm1102_vm15, %v1591_v16, %v1471_v62  ;;  %v4308_v62 = vld [vmem:[%s6000_s7 + $0xc0] sm:$0xff]   ;;  %v4311_v5 = vld [vmem:[%s6000_s7 + $0xc8] sm:$0xff]  }
 0x36d   : > { %3971 = vmatprep.mubr.msk.bf16.mxu0 %vm1111_vm7, %v1631_v19 }
 0x36e   : > { %v1515_v50 = vpop.permute.xlu1 %1514  ;;  %2381 = vmatpush1.bf16.msra.mxu0 %v4290_v0 }
 0x36f   : > { %v1608_v23 = vsel %vm1111_vm7, %v1599_v20, %v1515_v50  ;;  %2382 = vmatprep.subr.bf16.mxu0 %v4390_v15 }
 0x370   : > { %1804 = vmatmul.mubr.bf16.gmra.mrb[12].mxu0 %v1608_v23 }
 0x371   : > { %v1473_v10 = vpop.permute.xlu0 %1472 }
 0x372   : > { %v1585_v39 = vpop.permute.xlu1 %1584  ;;  %2383 = vmatpush1.bf16.msra.mxu0 %v4293_v27 }
 0x373   : > { %2384 = vmatprep.subr.bf16.mxu0 %v4390_v15 }
 0x376   : > { %v1449_v32 = vpop.permute.xlu0 %1448  ;;  %v1565_v34 = vpop.permute.xlu1 %1564  ;;  %2385 = vmatpush1.bf16.msra.mxu0 %v4296_v60 }
 0x377   : > { %v1593_v35 = vsel %vm1093_vm14, %v5076_v56, %v1449_v32  ;;  %v1624_v36 = vsel %vm1093_vm14, %v1528_v4, %v1565_v34  ;;  %2386 = vmatprep.subr.bf16.mxu0 %v4390_v15 }
 0x378   : > { %v1633_v37 = vsel %vm1102_vm15, %v1624_v36, %v1585_v39  ;;  %v1601_v42 = vsel %vm1102_vm15, %v1593_v35, %v1473_v10  ;;  %v4315_v39 = vld [vmem:[%s6000_s7 + $0xd8] sm:$0xff]  }
 0x379   : > { %3972 = vmatprep.mubr.msk.bf16.mxu0 %vm1111_vm7, %v1633_v37 }
 0x37a   : > { %v1517_v17 = vpop.permute.xlu0 %1516  ;;  %v1475_v41 = vpop.permute.xlu1 %1474  ;;  %2387 = vmatpush1.bf16.msra.mxu0 %v4299_v7 }
 0x37b   : > { %v1611_v43 = vsel %vm1111_vm7, %v1601_v42, %v1517_v17  ;;  %2388 = vmatprep.subr.bf16.mxu0 %v4390_v15 }
 0x37c   : > { %1812 = vmatmul.mubr.bf16.gmra.mrb[16].mxu0 %v1611_v43 }
 0x37e   : > { %v1451_v46 = vpop.permute.xlu1 %1450  ;;  %v1567_v57 = vpop.permute.xlu0 %1566  ;;  %2389 = vmatpush1.bf16.msra.mxu0 %v4302_v33 }
 0x37f   : > { %v1595_v56 = vsel %vm1093_vm14, %v5099_v29, %v1451_v46  ;;  %v1627_v49 = vsel %vm1093_vm14, %v1531_v48, %v1567_v57  ;;  %v4291_v29 = vld [vmem:[%s6000_s7 + $0x40] sm:$0xff]   ;;  %2390 = vmatprep.subr.bf16.mxu0 %v4390_v15 }
 0x380   : > { %v1603_v53 = vsel %vm1102_vm15, %v1595_v56, %v1475_v41  ;;  %4088 = vmatprep.subr.bf16.mxu1 %v4291_v29 }
 0x381   : > { %4089 = vmatpush3.bf16.msra.mxu1 %v4292_v22 }
 0x382   : > { %v1519_v51 = vpop.permute.xlu1 %1518  ;;  %v1587_v61 = vpop.permute.xlu0 %1586  ;;  %4090 = vmatprep.subr.bf16.mxu1 %v4294_v58  ;;  %2391 = vmatpush1.bf16.msra.mxu0 %v4305_v13 }
 0x383   : > { %v1635_v47 = vsel %vm1102_vm15, %v1627_v49, %v1587_v61  ;;  %v1614_v54 = vsel %vm1111_vm7, %v1603_v53, %v1519_v51  ;;  %2392 = vmatprep.subr.bf16.mxu0 %v4390_v15 }
 0x384   : > { %3973 = vmatprep.mubr.msk.bf16.mxu0 %vm1111_vm7, %v1635_v47 }
 0x385   : > { %1820 = vmatmul.mubr.bf16.gmra.mrb[20].mxu0 %v1614_v54  ;;  %4091 = vmatpush3.bf16.msra.mxu1 %v4295_v59 }
 0x386   : > { %4092 = vmatprep.subr.bf16.mxu1 %v4297_v63  ;;  %2393 = vmatpush1.bf16.msra.mxu0 %v4308_v62 }
 0x387   : > { %2394 = vmatprep.subr.bf16.mxu0 %v4390_v15 }
 0x389   : > { %4093 = vmatpush3.bf16.msra.mxu1 %v4298_v1 }
 0x38a   : > { %4094 = vmatprep.subr.bf16.mxu1 %v4300_v2  ;;  %2395 = vmatpush1.bf16.msra.mxu0 %v4311_v5 }
 0x38b   : > { %2396 = vmatprep.subr.bf16.mxu0 %v4390_v15 }
 0x38d   : > { %4095 = vmatpush3.bf16.msra.mxu1 %v4301_v3 }
 0x38e   : > { %4096 = vmatprep.subr.bf16.mxu1 %v4303_v26  ;;  %2397 = vmatpush1.bf16.msra.mxu0 %v4314_v6 }
 0x38f   : > { %2398 = vmatprep.subr.bf16.mxu0 %v4390_v15 }
 0x391   : > { %4097 = vmatpush3.bf16.msra.mxu1 %v4304_v31 }
 0x392   : > { %4098 = vmatprep.subr.bf16.mxu1 %v4306_v8  ;;  %2399 = vmatpush1.bf16.msra.mxu0 %v4315_v39 }
 0x393   : > { %3029 = vmatprep.subr.bf16.mxu0 %v4390_v15 }
 0x395   : > { %4099 = vmatpush3.bf16.msra.mxu1 %v4307_v24 }
 0x396   : > { %4100 = vmatprep.subr.bf16.mxu1 %v4309_v45 }
 0x399   : > { %4101 = vmatpush3.bf16.msra.mxu1 %v4310_v38 }
 0x39a   : > { %4102 = vmatprep.subr.bf16.mxu1 %v4312_v12 }
 0x39d   : > { %4103 = vmatpush3.bf16.msra.mxu1 %v4313_v25 }
 0x438   : > { %v1797_v40 = vpop.f32.mrb[8].mxu0 }
 0x439   : > { %v5259_v11 = vadd.f32 %v5256_v21, %v1797_v40  ;;  %v1799_v14 = vpop.f32.mrb[9].mxu0 }
 0x43a   : > { %v1800_v16 = vpop.f32.mrb[10].mxu0 }
 0x43b   : > { %v5262_v18 = vadd.f32 %v5256_v21, %v1800_v16  ;;  %v1802_v19 = vpop.f32.mrb[11].mxu0  ;;  %v1828_v50 = vmax.f32 %v5259_v11, 0.0 }
 0x43d   : > { %v1829_v20 = vmax.f32 %v5262_v18, 0.0 }
 0x43f   : > { %v1836_v23 = vpack.c.bf16 %v1829_v20, %v1828_v50 }
 0x441   : > { %v5266_v10 = vrot.slane %v1836_v23, 5 }
 0x443   : > { %v1805_v28 = vpop.f32.mrb[12].mxu0  ;;  %v5273_v30 = vsel %vm519_vm0, 0, %v5266_v10  ;;  %v2013_v32 = vrot.slane %v5266_v10, 3  ;;  %v1862_v4 = vshll.u32 %v5266_v10, 16  ;;  %v1923_v34 = vshrl.u32 %v5266_v10, 16 }
 0x444   : > { %v5279_v35 = vadd.f32 %v5256_v21, %v1805_v28  ;;  %v1807_v36 = vpop.f32.mrb[13].mxu0  ;;  %v2012_v37 = vrot.slane %v5273_v30, 3  ;;  %v1856_v17 = vshrl.u32 %v5273_v30, 16  ;;  %v1858_v41 = vshll.u32 %v5273_v30, 16 }
 0x445   : > { %v1808_v42 = vpop.f32.mrb[14].mxu0  ;;  %v1925_v43 = vrot.slane %v1923_v34, 1  ;;  %v1926_v52 = vrot.slane %v1862_v4, 2  ;;  %v1979_v48 = vrot.slane %v1923_v34, 2  ;;  %v1980_v29 = vrot.slane %v1862_v4, 3 }
 0x446   : > { %v5286_v44 = vadd.f32 %v5256_v21, %v1808_v42  ;;  %v1810_v46 = vpop.f32.mrb[15].mxu0  ;;  %v2014_v57 = vsel %vm706_vm6, %v2012_v37, %v2013_v32  ;;  %v1920_v56 = vrot.slane %v1856_v17, 1  ;;  %v1921_v49 = vrot.slane %v1858_v41, 2 }
 0x447   : > { %4003 = vmatprep.mubr.msk.bf16.mxu0 %vm1102_vm15, %v2014_v57  ;;  %v1927_v51 = vor.u32 %v1926_v52, %v1925_v43  ;;  %v1860_v61 = vrot.slane %v1858_v41, 1  ;;  %v1976_v53 = vrot.slane %v1856_v17, 2  ;;  %v1830_v47 = vmax.f32 %v5279_v35, 0.0 }
 0x448   : > { %v1831_v54 = vmax.f32 %v5286_v44, 0.0  ;;  %v1977_v9 = vrot.slane %v1858_v41, 3  ;;  %v1922_v22 = vor.u32 %v1921_v49, %v1920_v56  ;;  %v1864_v58 = vrot.slane %v1862_v4, 1 }
 0x449   : > { %v1861_v55 = vor.u32 %v1860_v61, %v1856_v17  ;;  %v1981_v2 = vor.u32 %v1980_v29, %v1979_v48 }
 0x44a   : > { %v1837_v59 = vpack.c.bf16 %v1831_v54, %v1830_v47  ;;  %v1928_v63 = vsel %vm603_vm4, %v1922_v22, %v1927_v51  ;;  %v1978_v1 = vor.u32 %v1977_v9, %v1976_v53 }
 0x44b   : > { %v1865_v0 = vsel %vm529_vm2, %v1861_v55, %v1864_v58  ;;  %1956 = vrot.lane.b32.xlu0 %v1928_v63, %s4391_s26 }
 0x44c   : > { %v5294_v27 = vrot.slane %v1837_v59, 5  ;;  %1896 = vrot.lane.b32.xlu1 %v1865_v0, %s4391_s26  ;;  %v1982_v8 = vsel %vm669_vm5, %v1978_v1, %v1981_v2 }
 0x44e   : > { %v5300_v3 = vsel %vm519_vm0, 0, %v5294_v27  ;;  %v1872_v26 = vshll.u32 %v5294_v27, 16  ;;  %v1932_v60 = vshrl.u32 %v5294_v27, 16 }
 0x44f   : > { %v1813_v31 = vpop.f32.mrb[16].mxu0  ;;  %v1866_v7 = vshrl.u32 %v5300_v3, 16  ;;  %v1868_v24 = vshll.u32 %v5300_v3, 16  ;;  %2004 = vrot.lane.b32.xlu0 %v1982_v8, %s4391_s26 }
 0x450   : > { %v5308_v45 = vadd.f32 %v5256_v21, %v1813_v31  ;;  %v1815_v33 = vpop.f32.mrb[17].mxu0  ;;  %v1934_v38 = vrot.slane %v1932_v60, 1  ;;  %v1935_v12 = vrot.slane %v1872_v26, 2  ;;  %v1874_v19 = vrot.slane %v1872_v26, 1 }
 0x451   : > { %v1816_v13 = vpop.f32.mrb[18].mxu0  ;;  %v1929_v25 = vrot.slane %v1866_v7, 1  ;;  %v1930_v62 = vrot.slane %v1868_v24, 2  ;;  %v1870_v5 = vrot.slane %v1868_v24, 1  ;;  %v1983_v6 = vrot.slane %v1866_v7, 2 }
 0x452   : > { %v5312_v40 = vadd.f32 %v5256_v21, %v1816_v13  ;;  %v1818_v14 = vpop.f32.mrb[19].mxu0  ;;  %v1936_v16 = vor.u32 %v1935_v12, %v1934_v38  ;;  %v1984_v50 = vrot.slane %v1868_v24, 3  ;;  %v1986_v39 = vrot.slane %v1932_v60, 2 }
 0x453   : > { %v1931_v20 = vor.u32 %v1930_v62, %v1929_v25  ;;  %v1871_v23 = vor.u32 %v1870_v5, %v1866_v7  ;;  %v1987_v28 = vrot.slane %v1872_v26, 3  ;;  %v1832_v32 = vmax.f32 %v5308_v45, 0.0 }
 0x454   : > { %v1833_v4 = vmax.f32 %v5312_v40, 0.0  ;;  %v1985_v37 = vor.u32 %v1984_v50, %v1983_v6 }
 0x455   : > { %v1937_v34 = vsel %vm603_vm4, %v1931_v20, %v1936_v16  ;;  %v1875_v36 = vsel %vm529_vm2, %v1871_v23, %v1874_v19  ;;  %v1988_v17 = vor.u32 %v1987_v28, %v1986_v39 }
 0x456   : > { %v1838_v41 = vpack.c.bf16 %v1833_v4, %v1832_v32  ;;  %1958 = vrot.lane.b32.xlu1 %v1937_v34, %s4391_s26  ;;  %1898 = vrot.lane.b32.xlu0 %v1875_v36, %s4391_s26 }
 0x457   : > { %v1989_v57 = vsel %vm669_vm5, %v1985_v37, %v1988_v17 }
 0x458   : > { %v5320_v42 = vrot.slane %v1838_v41, 5  ;;  %v1821_v43 = vpop.f32.mrb[20].mxu0 }
 0x459   : > { %v5323_v52 = vadd.f32 %v5256_v21, %v1821_v43  ;;  %v1823_v46 = vpop.f32.mrb[21].mxu0 }
 0x45a   : > { %2006 = vrot.lane.b32.xlu1 %v1989_v57, %s4391_s26  ;;  %v1824_v56 = vpop.f32.mrb[22].mxu0  ;;  %v5329_v48 = vsel %vm519_vm0, 0, %v5320_v42  ;;  %v1882_v49 = vshll.u32 %v5320_v42, 16  ;;  %v1941_v51 = vshrl.u32 %v5320_v42, 16 }
 0x45b   : > { %v1825_v61 = vadd.f32 %v5256_v21, %v1824_v56  ;;  %v1826_v53 = vpop.f32.mrb[23].mxu0  ;;  %v1876_v47 = vshrl.u32 %v5329_v48, 16  ;;  %v1878_v54 = vshll.u32 %v5329_v48, 16  ;;  %v1834_v9 = vmax.f32 %v5323_v52, 0.0 }
 0x45c   : > { %v1943_v29 = vrot.slane %v1941_v51, 1  ;;  %v1944_v22 = vrot.slane %v1882_v49, 2  ;;  %v1993_v55 = vrot.slane %v1941_v51, 2  ;;  %v1994_v60 = vrot.slane %v1882_v49, 3 }
 0x45d   : > { %v1835_v58 = vmax.f32 %v1825_v61, 0.0  ;;  %v1938_v59 = vrot.slane %v1876_v47, 1  ;;  %v1939_v63 = vrot.slane %v1878_v54, 2  ;;  %v1880_v0 = vrot.slane %v1878_v54, 1 }
 0x45e   : > { %v1945_v1 = vor.u32 %v1944_v22, %v1943_v29  ;;  %v1990_v2 = vrot.slane %v1876_v47, 2  ;;  %v1991_v26 = vrot.slane %v1878_v54, 3  ;;  %v1884_v7 = vrot.slane %v1882_v49, 1 }
 0x45f   : > { %v1839_v31 = vpack.c.bf16 %v1835_v58, %v1834_v9  ;;  %v1940_v21 = vor.u32 %v1939_v63, %v1938_v59  ;;  %v1881_v8 = vor.u32 %v1880_v0, %v1876_v47  ;;  %v1995_v13 = vor.u32 %v1994_v60, %v1993_v55 }
 0x460   : > { %v1992_v24 = vor.u32 %v1991_v26, %v1990_v2  ;;  %v1967_v63 = vrot.slane %v5300_v3, 2  ;;  %v1968_v0 = vrot.slane %v5294_v27, 2  ;;  %v2018_v26 = vrot.slane %v5329_v48, 3 }
 0x461   : > { %v5337_v33 = vrot.slane %v1839_v31, 5  ;;  %v1946_v38 = vsel %vm603_vm4, %v1940_v21, %v1945_v1  ;;  %v1885_v12 = vsel %vm529_vm2, %v1881_v8, %v1884_v7  ;;  %v2019_v60 = vrot.slane %v5320_v42, 3 }
 0x462   : > { %1960 = vrot.lane.b32.xlu0 %v1946_v38, %s4391_s26  ;;  %1900 = vrot.lane.b32.xlu1 %v1885_v12, %s4391_s26  ;;  %v1996_v16 = vsel %vm669_vm5, %v1992_v24, %v1995_v13  ;;  %v1969_v21 = vsel %vm648_vm1, %v1967_v63, %v1968_v0  ;;  %v1970_v13 = vrot.slane %v5329_v48, 2  ;;  %v4342_v63 = vld [vmem:[%s6002_s9 + $0xd0] sm:$0xff]  }
 0x463   : > { %v5345_v25 = vsel %vm519_vm0, 0, %v5337_v33  ;;  %v1892_v62 = vshll.u32 %v5337_v33, 16  ;;  %v1950_v5 = vshrl.u32 %v5337_v33, 16  ;;  %v2020_v7 = vsel %vm706_vm6, %v2018_v26, %v2019_v60 }
 0x464   : > { %v1886_v6 = vshrl.u32 %v5345_v25, 16  ;;  %v1888_v14 = vshll.u32 %v5345_v25, 16 }
 0x465   : > { %v1952_v19 = vrot.slane %v1950_v5, 1  ;;  %v1953_v50 = vrot.slane %v1892_v62, 2  ;;  %v2000_v20 = vrot.slane %v1950_v5, 2  ;;  %v2001_v36 = vrot.slane %v1892_v62, 3 }
 0x466   : > { %2008 = vrot.lane.b32.xlu0 %v1996_v16, %s4391_s26  ;;  %v1947_v23 = vrot.slane %v1886_v6, 1  ;;  %v1948_v39 = vrot.slane %v1888_v14, 2  ;;  %v1890_v28 = vrot.slane %v1888_v14, 1  ;;  %v1997_v32 = vrot.slane %v1886_v6, 2 }
 0x467   : > { %v1954_v4 = vor.u32 %v1953_v50, %v1952_v19  ;;  %v1998_v34 = vrot.slane %v1888_v14, 3  ;;  %v1894_v41 = vrot.slane %v1892_v62, 1  ;;  %v2002_v56 = vor.u32 %v2001_v36, %v2000_v20 }
 0x468   : > { %v1949_v37 = vor.u32 %v1948_v39, %v1947_v23  ;;  %v1891_v17 = vor.u32 %v1890_v28, %v1886_v6  ;;  %v1971_v62 = vrot.slane %v5320_v42, 2  ;;  %v2021_v14 = vrot.slane %v5345_v25, 3 }
 0x469   : > { %v1999_v57 = vor.u32 %v1998_v34, %v1997_v32  ;;  %v2022_v16 = vrot.slane %v5337_v33, 3  ;;  %v1917_v23 = vrot.slane %v5345_v25, 1  ;;  %v1974_v34 = vrot.slane %v5337_v33, 2 }
 0x46a   : > { %v1955_v43 = vsel %vm603_vm4, %v1949_v37, %v1954_v4  ;;  %v1895_v46 = vsel %vm529_vm2, %v1891_v17, %v1894_v41  ;;  %v1972_v50 = vsel %vm648_vm1, %v1970_v13, %v1971_v62  ;;  %v1973_v4 = vrot.slane %v5345_v25, 2 }
 0x46b   : > { %1962 = vrot.lane.b32.xlu1 %v1955_v43, %s4391_s26  ;;  %1902 = vrot.lane.b32.xlu0 %v1895_v46, %s4391_s26  ;;  %v2003_v49 = vsel %vm669_vm5, %v1999_v57, %v2002_v56  ;;  %v2023_v39 = vsel %vm706_vm6, %v2021_v14, %v2022_v16  ;;  %v4316_v46 = vld [vmem:[%s6002_s9 + $0x80] sm:$0xff]   ;;  %v4317_v57 = vld [vmem:[%s6002_s9 + $0x88] sm:$0xff]  }
 0x46c   : > { %v1975_v41 = vsel %vm648_vm1, %v1973_v4, %v1974_v34  ;;  %v4322_v56 = vld [vmem:[%s6002_s9 + $0x48] sm:$0xff]  }
 0x46f   : > { %2010 = vrot.lane.b32.xlu1 %v2003_v49, %s4391_s26  ;;  %2457 = vrot.lane.b32.xlu0 %v5259_v11, %s4391_s26  ;;  %v1908_v11 = vrot.slane %v5273_v30, 1  ;;  %v4323_v49 = vld [vmem:[%s6002_s9 + $0x8] sm:$0xff]  }
 0x473   : > { %2459 = vrot.lane.b32.xlu1 %v5262_v18, %s4391_s26  ;;  %2461 = vrot.lane.b32.xlu0 %v5279_v35, %s4391_s26  ;;  %v1909_v18 = vrot.slane %v5266_v10, 1 }
 0x475   : > { %v1910_v53 = vsel %vm582_vm3, %v1908_v11, %v1909_v18  ;;  %v4325_v11 = vld [vmem:[%s6002_s9 + $0x50] sm:$0xff]  }
 0x476   : > { %v4318_v18 = vld [vmem:[%s6002_s9 + $0x90] sm:$0xff]  }
 0x477   : > { %2463 = vrot.lane.b32.xlu1 %v5286_v44, %s4391_s26  ;;  %2465 = vrot.lane.b32.xlu0 %v5308_v45, %s4391_s26  ;;  %v1964_v44 = vrot.slane %v5273_v30, 2  ;;  %v1965_v45 = vrot.slane %v5266_v10, 2  ;;  %v1911_v10 = vrot.slane %v5300_v3, 1 }
 0x479   : > { %v1966_v54 = vsel %vm648_vm1, %v1964_v44, %v1965_v45  ;;  %v4329_v44 = vld [vmem:[%s6002_s9 + $0x18] sm:$0xff]   ;;  %v4331_v45 = vld [vmem:[%s6002_s9 + $0x60] sm:$0xff]  }
 0x47b   : > { %2467 = vrot.lane.b32.xlu1 %v5312_v40, %s4391_s26  ;;  %2469 = vrot.lane.b32.xlu0 %v5323_v52, %s4391_s26  ;;  %v2015_v52 = vrot.slane %v5300_v3, 3 }
 0x47f   : > { %2471 = vrot.lane.b32.xlu1 %v1825_v61, %s4391_s26  ;;  %v2016_v61 = vrot.slane %v5294_v27, 3 }
 0x481   : > { %v2017_v22 = vsel %vm706_vm6, %v2015_v52, %v2016_v61  ;;  %v4334_v52 = vld [vmem:[%s6002_s9 + $0x68] sm:$0xff]  }
 0x482   : > { %v4327_v61 = vld [vmem:[%s6002_s9 + $0xa8] sm:$0xff]  }
 0x4bd   : > { %v1957_v35 = vpop.permute.xlu0 %1956 }
 0x4be   : > { %v1897_v51 = vpop.permute.xlu1 %1896  ;;  %v2038_v47 = vsel %vm1102_vm15, %v1910_v53, %v1957_v35  ;;  %v4328_v35 = vld [vmem:[%s6002_s9 + $0x58] sm:$0xff]  }
 0x4bf   : > { %v2025_v40 = vsel %vm1102_vm15, %v5273_v30, %v1897_v51  ;;  %2343 = vmatprep.mubr.bf16.mxu1 %v2038_v47  ;;  %v1912_v30 = vrot.slane %v5294_v27, 1  ;;  %v1914_v27 = vrot.slane %v5329_v48, 1  ;;  %v4326_v51 = vld [vmem:[%s6002_s9 + $0x10] sm:$0xff]   ;;  %v4321_v53 = vld [vmem:[%s6002_s9 + $0x98] sm:$0xff]   ;;  %v4332_v47 = vld [vmem:[%s6002_s9 + $0x20] sm:$0xff]  }
 0x4c0   : > { %2344 = vmatmul.mubr.bf16.vlgmr.msra.gmra.mrb[16].mxu1 %v2025_v40  ;;  %v4324_v40 = vld [vmem:[%s6002_s9 + $0xa0] sm:$0xff]  }
 0x4c1   : > { %v2005_v9 = vpop.permute.xlu0 %2004  ;;  %v1913_v59 = vsel %vm582_vm3, %v1911_v10, %v1912_v30  ;;  %v4340_v10 = vld [vmem:[%s6002_s9 + $0x78] sm:$0xff]  }
 0x4c2   : > { %v2054_v29 = vsel %vm1102_vm15, %v1966_v54, %v2005_v9  ;;  %v4335_v54 = vld [vmem:[%s6002_s9 + $0x28] sm:$0xff]   ;;  %v4337_v9 = vld [vmem:[%s6002_s9 + $0x70] sm:$0xff]   ;;  %v4333_v30 = vld [vmem:[%s6002_s9 + $0xb8] sm:$0xff]  }
 0x4c3   : > { %2409 = vmatmul.mubr.bf16.vlgmr.msra.gmra.mrb[24].mxu0 %v2054_v29  ;;  %v4330_v29 = vld [vmem:[%s6002_s9 + $0xb0] sm:$0xff]  }
 0x4c4   : > { %4004 = vmatprep.mubr.msk.bf16.mxu0 %vm1102_vm15, %v2017_v22  ;;  %3030 = vmatpush1.bf16.msra.mxu0 %v4316_v46  ;;  %v4338_v22 = vld [vmem:[%s6002_s9 + $0x30] sm:$0xff]   ;;  %v4343_v46 = vld [vmem:[%s6002_s9 + $0xd8] sm:$0xff]  }
 0x4c5   : > { %3031 = vmatprep.subr.bf16.mxu0 %v4390_v15 }
 0x4c8   : > { %v1959_v55 = vpop.permute.xlu1 %1958  ;;  %v1899_v58 = vpop.permute.xlu0 %1898  ;;  %3032 = vmatpush1.bf16.msra.mxu0 %v4317_v57 }
 0x4c9   : > { %v2042_v1 = vsel %vm1102_vm15, %v1913_v59, %v1959_v55  ;;  %v2028_v2 = vsel %vm1102_vm15, %v5300_v3, %v1899_v58  ;;  %v1915_v3 = vrot.slane %v5320_v42, 1  ;;  %v1918_v42 = vrot.slane %v5337_v33, 1  ;;  %v4319_v33 = vld [vmem:[%s6002_s9 + $0x40] sm:$0xff]   ;;  %3033 = vmatprep.subr.bf16.mxu0 %v4390_v15  ;;  %v4341_v55 = vld [vmem:[%s6002_s9 + $0x38] sm:$0xff]   ;;  %v4339_v59 = vld [vmem:[%s6002_s9 + $0xc8] sm:$0xff]  }
 0x4ca   : > { %2351 = vmatprep.mubr.bf16.mxu1 %v2042_v1  ;;  %4128 = vmatprep.subr.bf16.mxu1 %v4319_v33  ;;  %v4336_v58 = vld [vmem:[%s6002_s9 + $0xc0] sm:$0xff]  }
 0x4cb   : > { %2352 = vmatmul.mubr.bf16.gmra.mrb[20].mxu1 %v2028_v2  ;;  %v1916_v12 = vsel %vm582_vm3, %v1914_v27, %v1915_v3  ;;  %v1919_v32 = vsel %vm582_vm3, %v1917_v23, %v1918_v42  ;;  %v5521_v2 = vld [vmem:[%s6001_s8] ss:$0 sm:$0xff] }
 0x4cc   : > { %v2007_v31 = vpop.permute.xlu1 %2006  ;;  %3034 = vmatpush1.bf16.msra.mxu0 %v4318_v18 }
 0x4cd   : > { %v2058_v8 = vsel %vm1102_vm15, %v1969_v21, %v2007_v31  ;;  %3035 = vmatprep.subr.bf16.mxu0 %v4390_v15 }
 0x4ce   : > { %2417 = vmatmul.mubr.bf16.gmra.mrb[28].mxu0 %v2058_v8 }
 0x4cf   : > { %4005 = vmatprep.mubr.msk.bf16.mxu0 %vm1102_vm15, %v2020_v7 }
 0x4d0   : > { %3036 = vmatpush1.bf16.msra.mxu0 %v4321_v53 }
 0x4d1   : > { %3037 = vmatprep.subr.bf16.mxu0 %v4390_v15 }
 0x4d4   : > { %v1901_v24 = vpop.permute.xlu1 %1900  ;;  %v1961_v38 = vpop.permute.xlu0 %1960  ;;  %3038 = vmatpush1.bf16.msra.mxu0 %v4324_v40 }
 0x4d5   : > { %v2046_v5 = vsel %vm1102_vm15, %v1916_v12, %v1961_v38  ;;  %v2031_v6 = vsel %vm1102_vm15, %v5329_v48, %v1901_v24  ;;  %3039 = vmatprep.subr.bf16.mxu0 %v4390_v15 }
 0x4d6   : > { %2359 = vmatprep.mubr.bf16.mxu1 %v2046_v5 }
 0x4d7   : > { %2360 = vmatmul.mubr.bf16.gmra.mrb[24].mxu1 %v2031_v6 }
 0x4d8   : > { %v2009_v19 = vpop.permute.xlu0 %2008  ;;  %3040 = vmatpush1.bf16.msra.mxu0 %v4327_v61 }
 0x4d9   : > { %v2062_v20 = vsel %vm1102_vm15, %v1972_v50, %v2009_v19  ;;  %3041 = vmatprep.subr.bf16.mxu0 %v4390_v15 }
 0x4da   : > { %2425 = vmatmul.mubr.bf16.gmra.mrb[32].mxu0 %v2062_v20 }
 0x4db   : > { %4006 = vmatprep.mubr.msk.bf16.mxu0 %vm1102_vm15, %v2023_v39 }
 0x4dc   : > { %3042 = vmatpush1.bf16.msra.mxu0 %v4330_v29 }
 0x4dd   : > { %v1963_v48 = vpop.permute.xlu1 %1962  ;;  %v1903_v28 = vpop.permute.xlu0 %1902  ;;  %3043 = vmatprep.subr.bf16.mxu0 %v4390_v15 }
 0x4de   : > { %v2050_v36 = vsel %vm1102_vm15, %v1919_v32, %v1963_v48  ;;  %v2034_v37 = vsel %vm1102_vm15, %v5345_v25, %v1903_v28  ;;  %v4320_v25 = vld [vmem:[%s6002_s9] sm:$0xff]  }
 0x4df   : > { %2367 = vmatprep.mubr.bf16.mxu1 %v2050_v36  ;;  %4129 = vmatpush3.bf16.msra.mxu1 %v4320_v25 }
 0x4e0   : > { %2368 = vmatmul.mubr.bf16.gmra.mrb[28].mxu1 %v2034_v37  ;;  %4130 = vmatprep.subr.bf16.mxu1 %v4322_v56 }
 0x4e1   : > { %v2011_v17 = vpop.permute.xlu1 %2010  ;;  %3044 = vmatpush1.bf16.msra.mxu0 %v4333_v30  ;;  %v2458_v5 = vpop.permute.xlu0 %2457 }
 0x4e2   : > { %v2066_v43 = vsel %vm1102_vm15, %v1975_v41, %v2011_v17  ;;  %3045 = vmatprep.subr.bf16.mxu0 %v4390_v15 }
 0x4e3   : > { %2433 = vmatmul.mubr.bf16.gmra.mrb[36].mxu0 %v2066_v43  ;;  %4131 = vmatpush3.bf16.msra.mxu1 %v4323_v49 }
 0x4e4   : > { %4132 = vmatprep.subr.bf16.mxu1 %v4325_v11 }
 0x4e5   : > { %3046 = vmatpush1.bf16.msra.mxu0 %v4336_v58  ;;  %v2460_v16 = vpop.permute.xlu1 %2459 }
 0x4e6   : > { %3047 = vmatprep.subr.bf16.mxu0 %v4390_v15 }
 0x4e7   : > { %4133 = vmatpush3.bf16.msra.mxu1 %v4326_v51 }
 0x4e8   : > { %4134 = vmatprep.subr.bf16.mxu1 %v4328_v35 }
 0x4e9   : > { %3048 = vmatpush1.bf16.msra.mxu0 %v4339_v59 }
 0x4ea   : > { %3049 = vmatprep.subr.bf16.mxu0 %v4390_v15 }
 0x4eb   : > { %4135 = vmatpush3.bf16.msra.mxu1 %v4329_v44  ;;  %v2462_v44 = vpop.permute.xlu0 %2461 }
 0x4ec   : > { %4136 = vmatprep.subr.bf16.mxu1 %v4331_v45  ;;  %v2464_v45 = vpop.permute.xlu1 %2463 }
 0x4ed   : > { %3050 = vmatpush1.bf16.msra.mxu0 %v4342_v63 }
 0x4ee   : > { %3051 = vmatprep.subr.bf16.mxu0 %v4390_v15 }
 0x4ef   : > { %4137 = vmatpush3.bf16.msra.mxu1 %v4332_v47 }
 0x4f0   : > { %4138 = vmatprep.subr.bf16.mxu1 %v4334_v52 }
 0x4f1   : > { %3052 = vmatpush1.bf16.msra.mxu0 %v4343_v46 }
 0x4f3   : > { %4139 = vmatpush3.bf16.msra.mxu1 %v4335_v54 }
 0x4f4   : > { %4140 = vmatprep.subr.bf16.mxu1 %v4337_v9 }
 0x4f7   : > { %4141 = vmatpush3.bf16.msra.mxu1 %v4338_v22 }
 0x4f8   : > { %4142 = vmatprep.subr.bf16.mxu1 %v4340_v10 }
 0x4fb   : > { %4143 = vmatpush3.bf16.msra.mxu1 %v4341_v55 }
 0x593   : > { %v4104_v0 = vpop.f32.mrb[16].mxu1 }
 0x594   : > { %v4105_v1 = vpop.f32.mrb[17].mxu1 }
 0x595   : > { %v4106_v26 = vadd.f32 %v4105_v1, %v4104_v0  ;;  %v4107_v60 = vpop.f32.mrb[18].mxu1 }
 0x596   : > { %v4108_v31 = vpop.f32.mrb[19].mxu1  ;;  %v2410_v21 = vpop.f32.mrb[24].mxu0 }
 0x597   : > { %v4109_v8 = vadd.f32 %v4108_v31, %v4107_v60  ;;  %v2346_v7 = vadd.f32 %v4106_v26, %v5521_v2  ;;  %v2412_v27 = vpop.f32.mrb[25].mxu0 }
 0x598   : > { %v2413_v3 = vpop.f32.mrb[26].mxu0 }
 0x599   : > { %v2411_v24 = vadd.f32 %v2410_v21, %v2346_v7  ;;  %v2349_v38 = vadd.f32 %v4109_v8, %v5521_v2  ;;  %v2415_v12 = vpop.f32.mrb[27].mxu0 }
 0x59b   : > { %v2441_v13 = vmax.f32 %v2411_v24, 0.0  ;;  %v2414_v62 = vadd.f32 %v2413_v3, %v2349_v38 }
 0x59d   : > { %v2442_v6 = vmax.f32 %v2414_v62, 0.0  ;;  %v5525_v50 = vadd.f32 %v2458_v5, %v2441_v13 }
 0x59e   : > { %v4110_v14 = vpop.f32.mrb[20].mxu1 }
 0x59f   : > { %v4111_v19 = vpop.f32.mrb[21].mxu1  ;;  %v5527_v20 = vadd.f32 %v2460_v16, %v2442_v6 }
 0x5a0   : > { %v4112_v23 = vadd.f32 %v4111_v19, %v4110_v14  ;;  %v4113_v42 = vpop.f32.mrb[22].mxu1 }
 0x5a1   : > { %v4114_v39 = vpop.f32.mrb[23].mxu1  ;;  %v2418_v48 = vpop.f32.mrb[28].mxu0  ;;  %v2489_v28 = vpack.c.bf16 %v5527_v20, %v5525_v50 }
 0x5a2   : > { %v4115_v32 = vadd.f32 %v4114_v39, %v4113_v42  ;;  %v2354_v4 = vadd.f32 %v4112_v23, %v5521_v2  ;;  %v2420_v34 = vpop.f32.mrb[29].mxu0 }
 0x5a3   : > { %v2421_v36 = vpop.f32.mrb[30].mxu0  ;;  %v5532_v37 = vrot.slane %v2489_v28, 5 }
 0x5a4   : > { %v2419_v17 = vadd.f32 %v2418_v48, %v2354_v4  ;;  %v2357_v41 = vadd.f32 %v4115_v32, %v5521_v2  ;;  %v2423_v43 = vpop.f32.mrb[31].mxu0 }
 0x5a5   : > { %v5540_v57 = vsel %vm519_vm0, 0, %v5532_v37  ;;  %v2666_v56 = vrot.slane %v5532_v37, 3  ;;  %v2515_v51 = vshll.u32 %v5532_v37, 16  ;;  %v2576_v53 = vshrl.u32 %v5532_v37, 16  ;;  %v2466_v43 = vpop.permute.xlu0 %2465 }
 0x5a6   : > { %v2443_v33 = vmax.f32 %v2419_v17, 0.0  ;;  %v2422_v25 = vadd.f32 %v2421_v36, %v2357_v41  ;;  %v2665_v49 = vrot.slane %v5540_v57, 3  ;;  %v2509_v11 = vshrl.u32 %v5540_v57, 16 }
 0x5a7   : > { %v2511_v18 = vshll.u32 %v5540_v57, 16  ;;  %v2579_v61 = vrot.slane %v2515_v51, 2  ;;  %v2578_v22 = vrot.slane %v2576_v53, 1  ;;  %v2632_v63 = vrot.slane %v2576_v53, 2 }
 0x5a8   : > { %v2444_v35 = vmax.f32 %v2422_v25, 0.0  ;;  %v2667_v40 = vsel %vm706_vm6, %v2665_v49, %v2666_v56  ;;  %v2573_v47 = vrot.slane %v2509_v11, 1  ;;  %v5549_v54 = vadd.f32 %v2462_v44, %v2443_v33  ;;  %v2468_v44 = vpop.permute.xlu1 %2467 }
 0x5a9   : > { %v2574_v52 = vrot.slane %v2511_v18, 2  ;;  %4036 = vmatprep.mubr.msk.bf16.mxu0 %vm1102_vm15, %v2667_v40  ;;  %v2513_v10 = vrot.slane %v2511_v18, 1  ;;  %v2629_v58 = vrot.slane %v2509_v11, 2  ;;  %v2630_v59 = vrot.slane %v2511_v18, 3 }
 0x5aa   : > { %v5551_v9 = vadd.f32 %v2464_v45, %v2444_v35  ;;  %v4116_v29 = vpop.f32.mrb[24].mxu1  ;;  %v2580_v60 = vor.u32 %v2579_v61, %v2578_v22  ;;  %v2517_v7 = vrot.slane %v2515_v51, 1  ;;  %v2633_v3 = vrot.slane %v2515_v51, 3 }
 0x5ab   : > { %v4117_v30 = vpop.f32.mrb[25].mxu1  ;;  %v2575_v55 = vor.u32 %v2574_v52, %v2573_v47  ;;  %v2514_v31 = vor.u32 %v2513_v10, %v2509_v11  ;;  %v2631_v27 = vor.u32 %v2630_v59, %v2629_v58 }
 0x5ac   : > { %v2490_v0 = vpack.c.bf16 %v5551_v9, %v5549_v54  ;;  %v4118_v1 = vadd.f32 %v4117_v30, %v4116_v29  ;;  %v4119_v26 = vpop.f32.mrb[26].mxu1  ;;  %v2634_v14 = vor.u32 %v2633_v3, %v2632_v63 }
 0x5ad   : > { %v4120_v21 = vpop.f32.mrb[27].mxu1  ;;  %v2426_v8 = vpop.f32.mrb[32].mxu0  ;;  %v2581_v62 = vsel %vm603_vm4, %v2575_v55, %v2580_v60  ;;  %v2518_v5 = vsel %vm529_vm2, %v2514_v31, %v2517_v7 }
 0x5ae   : > { %v5556_v24 = vrot.slane %v2490_v0, 5  ;;  %v4121_v38 = vadd.f32 %v4120_v21, %v4119_v26  ;;  %v2362_v12 = vadd.f32 %v4118_v1, %v5521_v2  ;;  %v2428_v13 = vpop.f32.mrb[33].mxu0  ;;  %2609 = vrot.lane.b32.xlu0 %v2581_v62, %s4391_s26  ;;  %2549 = vrot.lane.b32.xlu1 %v2518_v5, %s4391_s26  ;;  %v2635_v48 = vsel %vm669_vm5, %v2631_v27, %v2634_v14  ;;  %v2470_v14 = vpop.permute.xlu0 %2469 }
 0x5af   : > { %v2429_v6 = vpop.f32.mrb[34].mxu0 }
 0x5b0   : > { %v2427_v16 = vadd.f32 %v2426_v8, %v2362_v12  ;;  %v2365_v19 = vadd.f32 %v4121_v38, %v5521_v2  ;;  %v2431_v23 = vpop.f32.mrb[35].mxu0  ;;  %v5566_v42 = vsel %vm519_vm0, 0, %v5556_v24  ;;  %v2525_v39 = vshll.u32 %v5556_v24, 16 }
 0x5b1   : > { %v2519_v28 = vshrl.u32 %v5566_v42, 16  ;;  %v2521_v32 = vshll.u32 %v5566_v42, 16  ;;  %v2585_v4 = vshrl.u32 %v5556_v24, 16  ;;  %v2472_v23 = vpop.permute.xlu1 %2471 }
 0x5b2   : > { %v2445_v34 = vmax.f32 %v2427_v16, 0.0  ;;  %v2430_v36 = vadd.f32 %v2429_v6, %v2365_v19  ;;  %v2588_v17 = vrot.slane %v2525_v39, 2  ;;  %v2527_v41 = vrot.slane %v2525_v39, 1  ;;  %2657 = vrot.lane.b32.xlu0 %v2635_v48, %s4391_s26 }
 0x5b3   : > { %v4122_v46 = vpop.f32.mrb[28].mxu1  ;;  %v2582_v33 = vrot.slane %v2519_v28, 1  ;;  %v2583_v25 = vrot.slane %v2521_v32, 2  ;;  %v2587_v56 = vrot.slane %v2585_v4, 1  ;;  %v2523_v49 = vrot.slane %v2521_v32, 1 }
 0x5b4   : > { %v5574_v11 = vadd.f32 %v2466_v43, %v2445_v34  ;;  %v2446_v18 = vmax.f32 %v2430_v36, 0.0  ;;  %v4123_v51 = vpop.f32.mrb[29].mxu1  ;;  %v2636_v35 = vrot.slane %v2519_v28, 2  ;;  %v2637_v53 = vrot.slane %v2521_v32, 3 }
 0x5b5   : > { %v4124_v45 = vadd.f32 %v4123_v51, %v4122_v46  ;;  %v4125_v40 = vpop.f32.mrb[30].mxu1  ;;  %v2584_v47 = vor.u32 %v2583_v25, %v2582_v33  ;;  %v2589_v52 = vor.u32 %v2588_v17, %v2587_v56  ;;  %v2524_v61 = vor.u32 %v2523_v49, %v2519_v28 }
 0x5b6   : > { %v5576_v29 = vadd.f32 %v2468_v44, %v2446_v18  ;;  %v4126_v22 = vpop.f32.mrb[31].mxu1  ;;  %v2434_v10 = vpop.f32.mrb[36].mxu0  ;;  %v2638_v30 = vor.u32 %v2637_v53, %v2636_v35  ;;  %v2639_v55 = vrot.slane %v2585_v4, 2  ;;  %v2640_v58 = vrot.slane %v2525_v39, 3 }
 0x5b7   : > { %v4127_v59 = vadd.f32 %v4126_v22, %v4125_v40  ;;  %v2370_v63 = vadd.f32 %v4124_v45, %v5521_v2  ;;  %v2436_v0 = vpop.f32.mrb[37].mxu0  ;;  %v2590_v1 = vsel %vm603_vm4, %v2584_v47, %v2589_v52  ;;  %v2528_v26 = vsel %vm529_vm2, %v2524_v61, %v2527_v41 }
 0x5b8   : > { %v2491_v60 = vpack.c.bf16 %v5576_v29, %v5574_v11  ;;  %v2437_v31 = vpop.f32.mrb[38].mxu0  ;;  %2611 = vrot.lane.b32.xlu1 %v2590_v1, %s4391_s26  ;;  %2551 = vrot.lane.b32.xlu0 %v2528_v26, %s4391_s26  ;;  %v2641_v21 = vor.u32 %v2640_v58, %v2639_v55 }
 0x5b9   : > { %v2435_v8 = vadd.f32 %v2434_v10, %v2370_v63  ;;  %v2373_v7 = vadd.f32 %v4127_v59, %v5521_v2  ;;  %v2439_v27 = vpop.f32.mrb[39].mxu0 }
 0x5ba   : > { %v5586_v3 = vrot.slane %v2491_v60, 5  ;;  %v2642_v13 = vsel %vm669_vm5, %v2638_v30, %v2641_v21 }
 0x5bb   : > { %v2447_v38 = vmax.f32 %v2435_v8, 0.0  ;;  %v2438_v12 = vadd.f32 %v2437_v31, %v2373_v7 }
 0x5bc   : > { %2659 = vrot.lane.b32.xlu1 %v2642_v13, %s4391_s26  ;;  %v5592_v62 = vsel %vm519_vm0, 0, %v5586_v3  ;;  %v2535_v5 = vshll.u32 %v5586_v3, 16  ;;  %v2594_v6 = vshrl.u32 %v5586_v3, 16 }
 0x5bd   : > { %v2448_v16 = vmax.f32 %v2438_v12, 0.0  ;;  %v2529_v2 = vshrl.u32 %v5592_v62, 16  ;;  %v2531_v19 = vshll.u32 %v5592_v62, 16  ;;  %v5598_v39 = vadd.f32 %v2470_v14, %v2447_v38 }
 0x5be   : > { %v2596_v48 = vrot.slane %v2594_v6, 1  ;;  %v2597_v28 = vrot.slane %v2535_v5, 2  ;;  %v2646_v32 = vrot.slane %v2594_v6, 2  ;;  %v2647_v33 = vrot.slane %v2535_v5, 3 }
 0x5bf   : > { %v5600_v4 = vadd.f32 %v2472_v23, %v2448_v16  ;;  %v2591_v34 = vrot.slane %v2529_v2, 1  ;;  %v2592_v36 = vrot.slane %v2531_v19, 2  ;;  %v2533_v17 = vrot.slane %v2531_v19, 1 }
 0x5c0   : > { %v2598_v41 = vor.u32 %v2597_v28, %v2596_v48  ;;  %v2643_v43 = vrot.slane %v2529_v2, 2  ;;  %v2644_v46 = vrot.slane %v2531_v19, 3  ;;  %v2537_v18 = vrot.slane %v2535_v5, 1 }
 0x5c1   : > { %v2492_v25 = vpack.c.bf16 %v5600_v4, %v5598_v39  ;;  %v2593_v56 = vor.u32 %v2592_v36, %v2591_v34  ;;  %v2534_v49 = vor.u32 %v2533_v17, %v2529_v2  ;;  %v2648_v45 = vor.u32 %v2647_v33, %v2646_v32 }
 0x5c2   : > { %v2645_v51 = vor.u32 %v2644_v46, %v2643_v43  ;;  %v2561_v6 = vrot.slane %v5540_v57, 1  ;;  %v2562_v14 = vrot.slane %v5532_v37, 1  ;;  %v2617_v19 = vrot.slane %v5540_v57, 2 }
 0x5c3   : > { %v5604_v35 = vrot.slane %v2492_v25, 5  ;;  %v2599_v53 = vsel %vm603_vm4, %v2593_v56, %v2598_v41  ;;  %v2538_v44 = vsel %vm529_vm2, %v2534_v49, %v2537_v18  ;;  %v2618_v23 = vrot.slane %v5532_v37, 2 }
 0x5c4   : > { %2613 = vrot.lane.b32.xlu0 %v2599_v53, %s4391_s26  ;;  %2553 = vrot.lane.b32.xlu1 %v2538_v44, %s4391_s26  ;;  %v2649_v10 = vsel %vm669_vm5, %v2645_v51, %v2648_v45  ;;  %v2563_v2 = vsel %vm582_vm3, %v2561_v6, %v2562_v14  ;;  %v2668_v34 = vrot.slane %v5566_v42, 3  ;;  %v2669_v36 = vrot.slane %v5556_v24, 3 }
 0x5c5   : > { %v5612_v40 = vsel %vm519_vm0, 0, %v5604_v35  ;;  %v2545_v47 = vshll.u32 %v5604_v35, 16  ;;  %v2603_v52 = vshrl.u32 %v5604_v35, 16  ;;  %v2619_v17 = vsel %vm648_vm1, %v2617_v19, %v2618_v23  ;;  %v4344_v19 = vld [vmem:[%s6004_s11 + $0x40] sm:$0xff]   ;;  %v4347_v23 = vld [vmem:[%s6004_s11 + $0x8] sm:$0xff]  }
 0x5c6   : > { %v2539_v61 = vshrl.u32 %v5612_v40, 16  ;;  %v2541_v22 = vshll.u32 %v5612_v40, 16  ;;  %v2564_v46 = vrot.slane %v5566_v42, 1  ;;  %v2565_v37 = vrot.slane %v5556_v24, 1  ;;  %4168 = vmatprep.subr.bf16.mxu1 %v4344_v19 }
 0x5c7   : > { %v2605_v30 = vrot.slane %v2603_v52, 1  ;;  %v2606_v55 = vrot.slane %v2545_v47, 2  ;;  %v2653_v58 = vrot.slane %v2603_v52, 2  ;;  %v2654_v31 = vrot.slane %v2545_v47, 3 }
 0x5c8   : > { %2661 = vrot.lane.b32.xlu0 %v2649_v10, %s4391_s26  ;;  %v2600_v59 = vrot.slane %v2539_v61, 1  ;;  %v2601_v63 = vrot.slane %v2541_v22, 2  ;;  %v2543_v0 = vrot.slane %v2541_v22, 1  ;;  %v2650_v1 = vrot.slane %v2539_v61, 2 }
 0x5c9   : > { %v2607_v26 = vor.u32 %v2606_v55, %v2605_v30  ;;  %v2651_v60 = vrot.slane %v2541_v22, 3  ;;  %v2547_v7 = vrot.slane %v2545_v47, 1  ;;  %v2655_v13 = vor.u32 %v2654_v31, %v2653_v58 }
 0x5ca   : > { %v2602_v21 = vor.u32 %v2601_v63, %v2600_v59  ;;  %v2544_v8 = vor.u32 %v2543_v0, %v2539_v61  ;;  %v2670_v33 = vsel %vm706_vm6, %v2668_v34, %v2669_v36  ;;  %v2566_v56 = vsel %vm582_vm3, %v2564_v46, %v2565_v37  ;;  %v4351_v34 = vld [vmem:[%s6004_s11 + $0x18] sm:$0xff]   ;;  %v4352_v36 = vld [vmem:[%s6004_s11 + $0x60] sm:$0xff]   ;;  %v4356_v46 = vld [vmem:[%s6004_s11 + $0x70] sm:$0xff]  }
 0x5cb   : > { %v2652_v12 = vor.u32 %v2651_v60, %v2650_v1  ;;  %v2620_v49 = vrot.slane %v5566_v42, 2  ;;  %v2621_v18 = vrot.slane %v5556_v24, 2  ;;  %v2671_v44 = vrot.slane %v5592_v62, 3  ;;  %v4357_v37 = vld [vmem:[%s6004_s11 + $0x30] sm:$0xff]  }
 0x5cc   : > { %v2608_v27 = vsel %vm603_vm4, %v2602_v21, %v2607_v26  ;;  %v2548_v38 = vsel %vm529_vm2, %v2544_v8, %v2547_v7  ;;  %v2672_v45 = vrot.slane %v5586_v3, 3  ;;  %v2567_v24 = vrot.slane %v5592_v62, 1 }
 0x5cd   : > { %2615 = vrot.lane.b32.xlu1 %v2608_v27, %s4391_s26  ;;  %2555 = vrot.lane.b32.xlu0 %v2548_v38, %s4391_s26  ;;  %v2656_v5 = vsel %vm669_vm5, %v2652_v12, %v2655_v13  ;;  %v2622_v52 = vsel %vm648_vm1, %v2620_v49, %v2621_v18  ;;  %v2623_v58 = vrot.slane %v5592_v62, 2  ;;  %v2624_v59 = vrot.slane %v5586_v3, 2  ;;  %v5730_v49 = vld [vmem:[%s6003_s10] ss:$0 sm:$0xff] }
 0x5ce   : > { %v2673_v22 = vsel %vm706_vm6, %v2671_v44, %v2672_v45  ;;  %v2674_v1 = vrot.slane %v5612_v40, 3  ;;  %v2675_v26 = vrot.slane %v5604_v35, 3  ;;  %v2570_v8 = vrot.slane %v5612_v40, 1 }
 0x5cf   : > { %v2625_v31 = vsel %vm648_vm1, %v2623_v58, %v2624_v59  ;;  %v2626_v12 = vrot.slane %v5612_v40, 2  ;;  %v2627_v13 = vrot.slane %v5604_v35, 2 }
 0x5d0   : > { %v2676_v7 = vsel %vm706_vm6, %v2674_v1, %v2675_v26 }
 0x5d1   : > { %2663 = vrot.lane.b32.xlu1 %v2656_v5, %s4391_s26 }
 0x620   : > { %v2610_v16 = vpop.permute.xlu0 %2609  ;;  %v2550_v48 = vpop.permute.xlu1 %2549 }
 0x621   : > { %v2691_v28 = vsel %vm1102_vm15, %v2563_v2, %v2610_v16  ;;  %v2678_v32 = vsel %vm1102_vm15, %v5540_v57, %v2550_v48  ;;  %v2628_v16 = vsel %vm648_vm1, %v2626_v12, %v2627_v13  ;;  %v4348_v48 = vld [vmem:[%s6004_s11 + $0x50] sm:$0xff]  }
 0x622   : > { %2996 = vmatprep.mubr.bf16.mxu1 %v2691_v28  ;;  %v4349_v28 = vld [vmem:[%s6004_s11 + $0x10] sm:$0xff]  }
 0x623   : > { %2997 = vmatmul.mubr.bf16.vlgmr.msra.gmra.mrb[32].mxu1 %v2678_v32  ;;  %v4350_v32 = vld [vmem:[%s6004_s11 + $0x58] sm:$0xff]  }
 0x624   : > { %v2658_v41 = vpop.permute.xlu0 %2657 }
 0x625   : > { %v2707_v43 = vsel %vm1102_vm15, %v2619_v17, %v2658_v41  ;;  %v4353_v17 = vld [vmem:[%s6004_s11 + $0x20] sm:$0xff]   ;;  %v4354_v41 = vld [vmem:[%s6004_s11 + $0x68] sm:$0xff]  }
 0x626   : > { %3062 = vmatmul.mubr.bf16.vlgmr.msra.gmra.mrb[40].mxu0 %v2707_v43  ;;  %v4355_v43 = vld [vmem:[%s6004_s11 + $0x28] sm:$0xff]  }
 0x627   : > { %4037 = vmatprep.mubr.msk.bf16.mxu0 %vm1102_vm15, %v2670_v33  ;;  %v4358_v33 = vld [vmem:[%s6004_s11 + $0x78] sm:$0xff]  }
 0x62a   : > { %v2612_v57 = vpop.permute.xlu1 %2611  ;;  %v2552_v25 = vpop.permute.xlu0 %2551 }
 0x62b   : > { %v2695_v51 = vsel %vm1102_vm15, %v2566_v56, %v2612_v57  ;;  %v2681_v53 = vsel %vm1102_vm15, %v5566_v42, %v2552_v25  ;;  %v2568_v42 = vrot.slane %v5586_v3, 1  ;;  %v2571_v3 = vrot.slane %v5604_v35, 1  ;;  %v4345_v35 = vld [vmem:[%s6004_s11] sm:$0xff]   ;;  %v4359_v57 = vld [vmem:[%s6004_s11 + $0x38] sm:$0xff]  }
 0x62c   : > { %3004 = vmatprep.mubr.bf16.mxu1 %v2695_v51  ;;  %4169 = vmatpush3.bf16.msra.mxu1 %v4345_v35 }
 0x62d   : > { %3005 = vmatmul.mubr.bf16.gmra.mrb[36].mxu1 %v2681_v53  ;;  %v2569_v55 = vsel %vm582_vm3, %v2567_v24, %v2568_v42  ;;  %v2572_v38 = vsel %vm582_vm3, %v2570_v8, %v2571_v3 }
 0x62e   : > { %v2660_v47 = vpop.permute.xlu1 %2659 }
 0x62f   : > { %v2711_v61 = vsel %vm1102_vm15, %v2622_v52, %v2660_v47 }
 0x630   : > { %3070 = vmatmul.mubr.bf16.gmra.mrb[44].mxu0 %v2711_v61 }
 0x631   : > { %4038 = vmatprep.mubr.msk.bf16.mxu0 %vm1102_vm15, %v2673_v22 }
 0x636   : > { %v2554_v10 = vpop.permute.xlu1 %2553  ;;  %v2614_v30 = vpop.permute.xlu0 %2613 }
 0x637   : > { %v2699_v63 = vsel %vm1102_vm15, %v2569_v55, %v2614_v30  ;;  %v2684_v0 = vsel %vm1102_vm15, %v5592_v62, %v2554_v10 }
 0x638   : > { %3012 = vmatprep.mubr.bf16.mxu1 %v2699_v63 }
 0x639   : > { %3013 = vmatmul.mubr.bf16.gmra.mrb[40].mxu1 %v2684_v0 }
 0x63a   : > { %v2662_v60 = vpop.permute.xlu0 %2661 }
 0x63b   : > { %v2715_v21 = vsel %vm1102_vm15, %v2625_v31, %v2662_v60 }
 0x63c   : > { %3078 = vmatmul.mubr.bf16.gmra.mrb[48].mxu0 %v2715_v21 }
 0x63d   : > { %4039 = vmatprep.mubr.msk.bf16.mxu0 %vm1102_vm15, %v2676_v7 }
 0x63f   : > { %v2616_v62 = vpop.permute.xlu1 %2615  ;;  %v2556_v27 = vpop.permute.xlu0 %2555 }
 0x640   : > { %v2703_v5 = vsel %vm1102_vm15, %v2572_v38, %v2616_v62  ;;  %v2687_v6 = vsel %vm1102_vm15, %v5612_v40, %v2556_v27  ;;  %v4346_v40 = vld [vmem:[%s6004_s11 + $0x48] sm:$0xff]  }
 0x641   : > { %3020 = vmatprep.mubr.bf16.mxu1 %v2703_v5  ;;  %4170 = vmatprep.subr.bf16.mxu1 %v4346_v40 }
 0x642   : > { %3021 = vmatmul.mubr.bf16.gmra.mrb[44].mxu1 %v2687_v6 }
 0x643   : > { %v2664_v14 = vpop.permute.xlu1 %2663  ;;  %4171 = vmatpush3.bf16.msra.mxu1 %v4347_v23 }
 0x644   : > { %v2719_v2 = vsel %vm1102_vm15, %v2628_v16, %v2664_v14  ;;  %4172 = vmatprep.subr.bf16.mxu1 %v4348_v48 }
 0x645   : > { %3086 = vmatmul.mubr.bf16.gmra.mrb[52].mxu0 %v2719_v2 }
 0x647   : > { %4173 = vmatpush3.bf16.msra.mxu1 %v4349_v28 }
 0x648   : > { %4174 = vmatprep.subr.bf16.mxu1 %v4350_v32 }
 0x64b   : > { %4175 = vmatpush3.bf16.msra.mxu1 %v4351_v34 }
 0x64c   : > { %4176 = vmatprep.subr.bf16.mxu1 %v4352_v36 }
 0x64f   : > { %4177 = vmatpush3.bf16.msra.mxu1 %v4353_v17 }
 0x650   : > { %4178 = vmatprep.subr.bf16.mxu1 %v4354_v41 }
 0x653   : > { %4179 = vmatpush3.bf16.msra.mxu1 %v4355_v43 }
 0x654   : > { %4180 = vmatprep.subr.bf16.mxu1 %v4356_v46 }
 0x657   : > { %4181 = vmatpush3.bf16.msra.mxu1 %v4357_v37 }
 0x658   : > { %4182 = vmatprep.subr.bf16.mxu1 %v4358_v33 }
 0x65b   : > { %4183 = vmatpush3.bf16.msra.mxu1 %v4359_v57 }
 0x65c   : > { %3642 = vmatprep.subr.bf16.mxu1 %v4390_v15 }
 0x6f6   : > { %v4144_v25 = vpop.f32.mrb[32].mxu1 }
 0x6f7   : > { %v4145_v56 = vpop.f32.mrb[33].mxu1 }
 0x6f8   : > { %v4146_v18 = vadd.f32 %v4145_v56, %v4144_v25  ;;  %v4147_v51 = vpop.f32.mrb[34].mxu1 }
 0x6f9   : > { %v4148_v53 = vpop.f32.mrb[35].mxu1  ;;  %v3063_v44 = vpop.f32.mrb[40].mxu0 }
 0x6fa   : > { %v4149_v45 = vadd.f32 %v4148_v53, %v4147_v51  ;;  %v2999_v47 = vadd.f32 %v4146_v18, %v5730_v49  ;;  %v3065_v52 = vpop.f32.mrb[41].mxu0 }
 0x6fb   : > { %v3066_v61 = vpop.f32.mrb[42].mxu0 }
 0x6fc   : > { %v3064_v22 = vadd.f32 %v3063_v44, %v2999_v47  ;;  %v3002_v24 = vadd.f32 %v4149_v45, %v5730_v49  ;;  %v3068_v42 = vpop.f32.mrb[43].mxu0 }
 0x6fe   : > { %v3067_v10 = vadd.f32 %v3066_v61, %v3002_v24  ;;  %v3094_v55 = vmax.f32 %v3064_v22, 0.0 }
 0x700   : > { %v4150_v30 = vpop.f32.mrb[36].mxu1  ;;  %v3095_v58 = vmax.f32 %v3067_v10, 0.0 }
 0x701   : > { %v4151_v59 = vpop.f32.mrb[37].mxu1 }
 0x702   : > { %v4152_v63 = vadd.f32 %v4151_v59, %v4150_v30  ;;  %v4153_v0 = vpop.f32.mrb[38].mxu1  ;;  %v3102_v1 = vpack.c.bf16 %v3095_v58, %v3094_v55 }
 0x703   : > { %v4154_v26 = vpop.f32.mrb[39].mxu1  ;;  %v3071_v60 = vpop.f32.mrb[44].mxu0 }
 0x704   : > { %v4155_v31 = vadd.f32 %v4154_v26, %v4153_v0  ;;  %v3007_v21 = vadd.f32 %v4152_v63, %v5730_v49  ;;  %v3073_v8 = vpop.f32.mrb[45].mxu0  ;;  %v5735_v3 = vrot.slane %v3102_v1, 5 }
 0x705   : > { %v3074_v7 = vpop.f32.mrb[46].mxu0 }
 0x706   : > { %v3072_v62 = vadd.f32 %v3071_v60, %v3007_v21  ;;  %v3010_v27 = vadd.f32 %v4155_v31, %v5730_v49  ;;  %v3076_v38 = vpop.f32.mrb[47].mxu0  ;;  %v5740_v12 = vsel %vm519_vm0, 0, %v5735_v3  ;;  %v5743_v13 = vshll.u32 %v5735_v3, 16 }
 0x707   : > { %v3189_v5 = vshrl.u32 %v5735_v3, 16  ;;  %v5747_v14 = vshrl.u32 %v5740_v12, 16  ;;  %v5750_v16 = vshll.u32 %v5740_v12, 16 }
 0x708   : > { %v3075_v6 = vadd.f32 %v3074_v7, %v3010_v27  ;;  %v3096_v2 = vmax.f32 %v3072_v62, 0.0  ;;  %v3192_v35 = vrot.slane %v5743_v13, 2  ;;  %v3130_v43 = vrot.slane %v5743_v13, 1 }
 0x709   : > { %v3191_v19 = vrot.slane %v3189_v5, 1  ;;  %v3186_v23 = vrot.slane %v5747_v14, 1  ;;  %v3187_v48 = vrot.slane %v5750_v16, 2  ;;  %v3126_v28 = vrot.slane %v5750_v16, 1 }
 0x70a   : > { %v3097_v40 = vmax.f32 %v3075_v6, 0.0 }
 0x70b   : > { %v3193_v32 = vor.u32 %v3192_v35, %v3191_v19  ;;  %v3188_v17 = vor.u32 %v3187_v48, %v3186_v23  ;;  %v3127_v41 = vor.u32 %v3126_v28, %v5747_v14 }
 0x70c   : > { %v3103_v34 = vpack.c.bf16 %v3097_v40, %v3096_v2  ;;  %v4156_v36 = vpop.f32.mrb[40].mxu1 }
 0x70d   : > { %v4157_v46 = vpop.f32.mrb[41].mxu1  ;;  %v3194_v57 = vsel %vm603_vm4, %v3188_v17, %v3193_v32  ;;  %v3131_v25 = vsel %vm529_vm2, %v3127_v41, %v3130_v43 }
 0x70e   : > { %v5760_v37 = vrot.slane %v3103_v34, 5  ;;  %v4158_v33 = vadd.f32 %v4157_v46, %v4156_v36  ;;  %v4159_v56 = vpop.f32.mrb[42].mxu1  ;;  %3222 = vrot.lane.b32.xlu0 %v3194_v57, %s4391_s26  ;;  %3162 = vrot.lane.b32.xlu1 %v3131_v25, %s4391_s26 }
 0x70f   : > { %v4160_v18 = vpop.f32.mrb[43].mxu1  ;;  %v3079_v51 = vpop.f32.mrb[48].mxu0 }
 0x710   : > { %v5768_v53 = vsel %vm519_vm0, 0, %v5760_v37  ;;  %v4161_v44 = vadd.f32 %v4160_v18, %v4159_v56  ;;  %v3015_v45 = vadd.f32 %v4158_v33, %v5730_v49  ;;  %v3081_v47 = vpop.f32.mrb[49].mxu0  ;;  %v5772_v52 = vshll.u32 %v5760_v37, 16 }
 0x711   : > { %v3082_v61 = vpop.f32.mrb[50].mxu0  ;;  %v5775_v22 = vshrl.u32 %v5768_v53, 16  ;;  %v5778_v24 = vshll.u32 %v5768_v53, 16  ;;  %v3198_v42 = vshrl.u32 %v5760_v37, 16 }
 0x712   : > { %v3080_v10 = vadd.f32 %v3079_v51, %v3015_v45  ;;  %v3018_v30 = vadd.f32 %v4161_v44, %v5730_v49  ;;  %v3084_v55 = vpop.f32.mrb[51].mxu0  ;;  %v3201_v58 = vrot.slane %v5772_v52, 2  ;;  %v3140_v7 = vrot.slane %v5772_v52, 1 }
 0x713   : > { %v3195_v59 = vrot.slane %v5775_v22, 1  ;;  %v3196_v63 = vrot.slane %v5778_v24, 2  ;;  %v3200_v0 = vrot.slane %v3198_v42, 1  ;;  %v3136_v1 = vrot.slane %v5778_v24, 1 }
 0x714   : > { %v3083_v26 = vadd.f32 %v3082_v61, %v3018_v30  ;;  %v3098_v62 = vmax.f32 %v3080_v10, 0.0 }
 0x715   : > { %v4162_v60 = vpop.f32.mrb[44].mxu1  ;;  %v3197_v31 = vor.u32 %v3196_v63, %v3195_v59  ;;  %v3202_v21 = vor.u32 %v3201_v58, %v3200_v0  ;;  %v3137_v8 = vor.u32 %v3136_v1, %v5775_v22  ;;  %v3242_v1 = vrot.slane %v5747_v14, 2 }
 0x716   : > { %v3099_v27 = vmax.f32 %v3083_v26, 0.0  ;;  %v4163_v38 = vpop.f32.mrb[45].mxu1  ;;  %v3245_v26 = vrot.slane %v3189_v5, 2  ;;  %v3250_v14 = vrot.slane %v5778_v24, 3  ;;  %v3252_v5 = vrot.slane %v3198_v42, 2 }
 0x717   : > { %v4164_v6 = vadd.f32 %v4163_v38, %v4162_v60  ;;  %v4165_v2 = vpop.f32.mrb[46].mxu1  ;;  %v3203_v19 = vsel %vm603_vm4, %v3197_v31, %v3202_v21  ;;  %v3141_v35 = vsel %vm529_vm2, %v3137_v8, %v3140_v7  ;;  %v3243_v8 = vrot.slane %v5750_v16, 3 }
 0x718   : > { %v3104_v40 = vpack.c.bf16 %v3099_v27, %v3098_v62  ;;  %3224 = vrot.lane.b32.xlu0 %v3203_v19, %s4391_s26  ;;  %3164 = vrot.lane.b32.xlu1 %v3141_v35, %s4391_s26  ;;  %v4166_v23 = vpop.f32.mrb[47].mxu1  ;;  %v3087_v48 = vpop.f32.mrb[52].mxu0  ;;  %v3246_v7 = vrot.slane %v5743_v13, 3  ;;  %v3249_v62 = vrot.slane %v5775_v22, 2 }
 0x719   : > { %v4167_v28 = vadd.f32 %v4166_v23, %v4165_v2  ;;  %v3023_v32 = vadd.f32 %v4164_v6, %v5730_v49  ;;  %v3089_v34 = vpop.f32.mrb[53].mxu0  ;;  %v3253_v6 = vrot.slane %v5772_v52, 3  ;;  %v3244_v24 = vor.u32 %v3243_v8, %v3242_v1 }
 0x71a   : > { %v5795_v36 = vrot.slane %v3104_v40, 5  ;;  %v3090_v17 = vpop.f32.mrb[54].mxu0  ;;  %v3247_v23 = vor.u32 %v3246_v7, %v3245_v26 }
 0x71b   : > { %v3088_v41 = vadd.f32 %v3087_v48, %v3023_v32  ;;  %v3026_v43 = vadd.f32 %v4167_v28, %v5730_v49  ;;  %v3092_v46 = vpop.f32.mrb[55].mxu0  ;;  %v3251_v28 = vor.u32 %v3250_v14, %v3249_v62  ;;  %v3254_v32 = vor.u32 %v3253_v6, %v3252_v5  ;;  %v4361_v62 = vld [vmem:[%s6004_s11 + $0x88] sm:$0xff]  }
 0x71c   : > { %v5800_v33 = vsel %vm519_vm0, 0, %v5795_v36  ;;  %v5803_v57 = vshll.u32 %v5795_v36, 16  ;;  %v3207_v25 = vshrl.u32 %v5795_v36, 16  ;;  %v3177_v14 = vrot.slane %v5768_v53, 1 }
 0x71d   : > { %v3091_v56 = vadd.f32 %v3090_v17, %v3026_v43  ;;  %v3142_v18 = vshrl.u32 %v5800_v33, 16  ;;  %v3144_v51 = vshll.u32 %v5800_v33, 16  ;;  %v3100_v44 = vmax.f32 %v3088_v41, 0.0 }
 0x71e   : > { %v3209_v45 = vrot.slane %v3207_v25, 1  ;;  %v3210_v47 = vrot.slane %v5803_v57, 2  ;;  %v3150_v0 = vrot.slane %v5803_v57, 1  ;;  %v3259_v34 = vrot.slane %v3207_v25, 2 }
 0x71f   : > { %v3101_v49 = vmax.f32 %v3091_v56, 0.0  ;;  %v3204_v61 = vrot.slane %v3142_v18, 1  ;;  %v3205_v10 = vrot.slane %v3144_v51, 2  ;;  %v3146_v30 = vrot.slane %v3144_v51, 1 }
 0x720   : > { %v3211_v55 = vor.u32 %v3210_v47, %v3209_v45  ;;  %v3256_v46 = vrot.slane %v3142_v18, 2  ;;  %v3257_v52 = vrot.slane %v3144_v51, 3  ;;  %v3260_v56 = vrot.slane %v5803_v57, 3 }
 0x721   : > { %v3105_v58 = vpack.c.bf16 %v3101_v49, %v3100_v44  ;;  %v3206_v59 = vor.u32 %v3205_v10, %v3204_v61  ;;  %v3147_v63 = vor.u32 %v3146_v30, %v3142_v18  ;;  %v3248_v25 = vsel %vm669_vm5, %v3244_v24, %v3247_v23  ;;  %v4364_v24 = vld [vmem:[%s6004_s11 + $0xa0] sm:$0xff]  }
 0x722   : > { %v3255_v30 = vsel %vm669_vm5, %v3251_v28, %v3254_v32  ;;  %v3258_v18 = vor.u32 %v3257_v52, %v3256_v46  ;;  %v3261_v51 = vor.u32 %v3260_v56, %v3259_v34  ;;  %v3178_v5 = vrot.slane %v5760_v37, 1  ;;  %v4367_v46 = vld [vmem:[%s6004_s11 + $0xb8] sm:$0xff]  }
 0x723   : > { %v5813_v60 = vrot.slane %v3105_v58, 5  ;;  %v3212_v31 = vsel %vm603_vm4, %v3206_v59, %v3211_v55  ;;  %v3151_v21 = vsel %vm529_vm2, %v3147_v63, %v3150_v0  ;;  %v3174_v63 = vrot.slane %v5740_v12, 1 }
 0x724   : > { %3226 = vrot.lane.b32.xlu0 %v3212_v31, %s4391_s26  ;;  %3166 = vrot.lane.b32.xlu1 %v3151_v21, %s4391_s26  ;;  %v3262_v58 = vsel %vm669_vm5, %v3258_v18, %v3261_v51  ;;  %v3175_v0 = vrot.slane %v5735_v3, 1  ;;  %v4360_v21 = vld [vmem:[%s6004_s11 + $0x80] sm:$0xff]   ;;  %v3278_v52 = vrot.slane %v5740_v12, 3  ;;  %v3279_v56 = vrot.slane %v5735_v3, 3  ;;  %v4370_v18 = vld [vmem:[%s6004_s11 + $0xd0] sm:$0xff]  }
 0x725   : > { %v5827_v27 = vsel %vm519_vm0, 0, %v5813_v60  ;;  %v3158_v38 = vshll.u32 %v5813_v60, 16  ;;  %v3216_v16 = vshrl.u32 %v5813_v60, 16  ;;  %v4371_v51 = vld [vmem:[%s6004_s11 + $0xd8] sm:$0xff]   ;;  %vm4395_vm0 = vmmov 0  }
 0x726   : > { %v3152_v2 = vshrl.u32 %v5827_v27, 16  ;;  %v3154_v13 = vshll.u32 %v5827_v27, 16  ;;  %v3176_v31 = vsel %vm582_vm3, %v3174_v63, %v3175_v0  ;;  %v3282_v63 = vrot.slane %v5760_v37, 3 }
 0x727   : > { %v3218_v22 = vrot.slane %v3216_v16, 1  ;;  %v3219_v19 = vrot.slane %v3158_v38, 2  ;;  %v3160_v43 = vrot.slane %v3158_v38, 1  ;;  %v3266_v45 = vrot.slane %v3216_v16, 2 }
 0x728   : > { %v3213_v35 = vrot.slane %v3152_v2, 1  ;;  %v3214_v40 = vrot.slane %v3154_v13, 2  ;;  %v3156_v42 = vrot.slane %v3154_v13, 1  ;;  %v3263_v44 = vrot.slane %v3152_v2, 2 }
 0x729   : > { %v3220_v48 = vor.u32 %v3219_v19, %v3218_v22  ;;  %v3264_v61 = vrot.slane %v3154_v13, 3  ;;  %v3267_v10 = vrot.slane %v3158_v38, 3  ;;  %v4362_v38 = vld [vmem:[%s6004_s11 + $0x90] sm:$0xff]   ;;  %v4363_v19 = vld [vmem:[%s6004_s11 + $0x98] sm:$0xff]  }
 0x72a   : > { %v3215_v17 = vor.u32 %v3214_v40, %v3213_v35  ;;  %v3157_v41 = vor.u32 %v3156_v42, %v3152_v2  ;;  %v3179_v2 = vsel %vm582_vm3, %v3177_v14, %v3178_v5  ;;  %v3180_v35 = vrot.slane %v5800_v33, 1  ;;  %v4365_v42 = vld [vmem:[%s6004_s11 + $0xa8] sm:$0xff]  }
 0x72b   : > { %v3265_v55 = vor.u32 %v3264_v61, %v3263_v44  ;;  %v3268_v57 = vor.u32 %v3267_v10, %v3266_v45  ;;  %v3181_v40 = vrot.slane %v5795_v36, 1  ;;  %v4368_v10 = vld [vmem:[%s6004_s11 + $0xc0] sm:$0xff]   ;;  %v3236_v14 = vrot.slane %v5800_v33, 2 }
 0x72c   : > { %v3221_v47 = vsel %vm603_vm4, %v3215_v17, %v3220_v48  ;;  %v3161_v49 = vsel %vm529_vm2, %v3157_v41, %v3160_v43  ;;  %v4366_v17 = vld [vmem:[%s6004_s11 + $0xb0] sm:$0xff]   ;;  %v3183_v41 = vrot.slane %v5827_v27, 1  ;;  %v3184_v43 = vrot.slane %v5813_v60, 1 }
 0x72d   : > { %3228 = vrot.lane.b32.xlu0 %v3221_v47, %s4391_s26  ;;  %3168 = vrot.lane.b32.xlu1 %v3161_v49, %s4391_s26  ;;  %v3269_v59 = vsel %vm669_vm5, %v3265_v55, %v3268_v57  ;;  %v3182_v28 = vsel %vm582_vm3, %v3180_v35, %v3181_v40  ;;  %v3230_v55 = vrot.slane %v5740_v12, 2  ;;  %v3231_v57 = vrot.slane %v5735_v3, 2  ;;  %v4375_v40 = vld [vmem:[%s6006_s13 + $0x18] sm:$0xff]  }
 0x72e   : > { %v3185_v47 = vsel %vm582_vm3, %v3183_v41, %v3184_v43  ;;  %v3234_v3 = vrot.slane %v5760_v37, 2  ;;  %v3287_v37 = vrot.slane %v5827_v27, 3  ;;  %v4394_v35 = vmov 0.0  }
 0x72f   : > { %v3232_v0 = vsel %vm648_vm1, %v3230_v55, %v3231_v57  ;;  %4225 = vmatprep.subr.bf16.mxu0 %v4394_v35  ;;  %4233 = vmatprep.mubr.msk.bf16.mxu0 %vm4395_vm0, %v4394_v35  ;;  %vm3793_vm2 = vcmask 1042434   ;;  %vm3795_vm3 = vcmask 1043459   ;;  %vm3865_vm4 = vcmask 19456  }
 0x731   : > { %3270 = vrot.lane.b32.xlu0 %v3248_v25, %s4391_s26  ;;  %3272 = vrot.lane.b32.xlu1 %v3255_v30, %s4391_s26  ;;  %v3280_v25 = vsel %vm706_vm6, %v3278_v52, %v3279_v56  ;;  %v4369_v30 = vld [vmem:[%s6004_s11 + $0xc8] sm:$0xff]  }
 0x735   : > { %3274 = vrot.lane.b32.xlu0 %v3262_v58, %s4391_s26  ;;  %3276 = vrot.lane.b32.xlu1 %v3269_v59, %s4391_s26  ;;  %v3281_v59 = vrot.slane %v5768_v53, 3 }
 0x780   : > { %v3163_v1 = vpop.permute.xlu1 %3162  ;;  %v3223_v26 = vpop.permute.xlu0 %3222 }
 0x781   : > { %v3291_v8 = vsel %vm1102_vm15, %v5740_v12, %v3163_v1  ;;  %v3304_v7 = vsel %vm1102_vm15, %v3176_v31, %v3223_v26  ;;  %v3283_v26 = vsel %vm706_vm6, %v3281_v59, %v3282_v63  ;;  %v3233_v12 = vrot.slane %v5768_v53, 2 }
 0x782   : > { %3609 = vmatprep.mubr.bf16.mxu1 %v3304_v7  ;;  %v3284_v31 = vrot.slane %v5800_v33, 3 }
 0x783   : > { %3610 = vmatmul.mubr.bf16.vlgmr.msra.gmra.mrb[48].mxu1 %v3291_v8  ;;  %v3235_v8 = vsel %vm648_vm1, %v3233_v12, %v3234_v3 }
 0x784   : > { %3643 = vmatpush1.bf16.msra.mxu1 %v4360_v21  ;;  %v3285_v21 = vrot.slane %v5795_v36, 3 }
 0x785   : > { %3644 = vmatprep.subr.bf16.mxu1 %v4390_v15 }
 0x788   : > { %3645 = vmatpush1.bf16.msra.mxu1 %v4361_v62  ;;  %v3286_v62 = vsel %vm706_vm6, %v3284_v31, %v3285_v21 }
 0x789   : > { %3646 = vmatprep.subr.bf16.mxu1 %v4390_v15 }
 0x78a   : > { %v3165_v16 = vpop.permute.xlu1 %3164  ;;  %v3225_v6 = vpop.permute.xlu0 %3224 }
 0x78b   : > { %v3308_v13 = vsel %vm1102_vm15, %v3179_v2, %v3225_v6  ;;  %v3294_v22 = vsel %vm1102_vm15, %v5768_v53, %v3165_v16  ;;  %v3237_v53 = vrot.slane %v5795_v36, 2 }
 0x78c   : > { %3617 = vmatprep.mubr.bf16.mxu1 %v3308_v13  ;;  %3647 = vmatpush1.bf16.msra.mxu1 %v4362_v38  ;;  %v3288_v38 = vrot.slane %v5813_v60, 3  ;;  %v3239_v13 = vrot.slane %v5827_v27, 2 }
 0x78d   : > { %3618 = vmatmul.mubr.bf16.gmra.mrb[52].mxu1 %v3294_v22  ;;  %3648 = vmatprep.subr.bf16.mxu1 %v4390_v15  ;;  %v3238_v16 = vsel %vm648_vm1, %v3236_v14, %v3237_v53 }
 0x78e   : > { %v3289_v2 = vsel %vm706_vm6, %v3287_v37, %v3288_v38 }
 0x790   : > { %3649 = vmatpush1.bf16.msra.mxu1 %v4363_v19 }
 0x791   : > { %3650 = vmatprep.subr.bf16.mxu1 %v4390_v15 }
 0x794   : > { %3651 = vmatpush1.bf16.msra.mxu1 %v4364_v24  ;;  %v4372_v24 = vld [vmem:[%s6006_s13] sm:$0xff]  }
 0x795   : > { %3652 = vmatprep.subr.bf16.mxu1 %v4390_v15  ;;  %4226 = vmatpush3.bf16.msra.mxu0 %v4372_v24 }
 0x796   : > { %v3167_v23 = vpop.permute.xlu1 %3166  ;;  %v3227_v48 = vpop.permute.xlu0 %3226  ;;  %4227 = vmatprep.subr.bf16.mxu0 %v4394_v35 }
 0x797   : > { %v3312_v32 = vsel %vm1102_vm15, %v3182_v28, %v3227_v48  ;;  %v3297_v34 = vsel %vm1102_vm15, %v5800_v33, %v3167_v23  ;;  %v3240_v33 = vrot.slane %v5813_v60, 2  ;;  %v4374_v60 = vld [vmem:[%s6006_s13 + $0x10] sm:$0xff]  }
 0x798   : > { %3625 = vmatprep.mubr.bf16.mxu1 %v3312_v32  ;;  %3653 = vmatpush1.bf16.msra.mxu1 %v4365_v42 }
 0x799   : > { %3626 = vmatmul.mubr.bf16.gmra.mrb[56].mxu1 %v3297_v34  ;;  %3654 = vmatprep.subr.bf16.mxu1 %v4390_v15  ;;  %v3241_v36 = vsel %vm648_vm1, %v3239_v13, %v3240_v33  ;;  %vm3791_vm1 = vcmask 1041409  }
 0x79c   : > { %3655 = vmatpush1.bf16.msra.mxu1 %v4366_v17 }
 0x79d   : > { %3656 = vmatprep.subr.bf16.mxu1 %v4390_v15 }
 0x79f   : > { %v3169_v44 = vpop.permute.xlu1 %3168  ;;  %v3229_v45 = vpop.permute.xlu0 %3228 }
 0x7a0   : > { %v3316_v49 = vsel %vm1102_vm15, %v3185_v47, %v3229_v45  ;;  %v3300_v61 = vsel %vm1102_vm15, %v5827_v27, %v3169_v44  ;;  %3657 = vmatpush1.bf16.msra.mxu1 %v4367_v46  ;;  %v4373_v27 = vld [vmem:[%s6006_s13 + $0x8] sm:$0xff]  }
 0x7a1   : > { %3633 = vmatprep.mubr.bf16.mxu1 %v3316_v49  ;;  %3658 = vmatprep.subr.bf16.mxu1 %v4390_v15 }
 0x7a2   : > { %3634 = vmatmul.mubr.bf16.gmra.mrb[60].mxu1 %v3300_v61  ;;  %4228 = vmatpush3.bf16.msra.mxu0 %v4373_v27 }
 0x7a3   : > { %4069 = vmatprep.mubr.msk.bf16.mxu1 %vm1102_vm15, %v3280_v25  ;;  %v3271_v58 = vpop.permute.xlu0 %3270  ;;  %4229 = vmatprep.subr.bf16.mxu0 %v4394_v35 }
 0x7a4   : > { %3659 = vmatpush1.bf16.msra.mxu1 %v4368_v10  ;;  %v3320_v1 = vsel %vm1102_vm15, %v3232_v0, %v3271_v58  ;;  %v4040_v58 = vld [vmem:[%s6005_s12] ss:$0 sm:$0xff] }
 0x7a5   : > { %3660 = vmatprep.subr.bf16.mxu1 %v4390_v15 }
 0x7a6   : > { %4230 = vmatpush3.bf16.msra.mxu0 %v4374_v60 }
 0x7a7   : > { %v3275_v5 = vpop.permute.xlu0 %3274  ;;  %4231 = vmatprep.subr.bf16.mxu0 %v4394_v35 }
 0x7a8   : > { %3661 = vmatpush1.bf16.msra.mxu1 %v4369_v30  ;;  %v3328_v6 = vsel %vm1102_vm15, %v3238_v16, %v3275_v5 }
 0x7a9   : > { %3662 = vmatprep.subr.bf16.mxu1 %v4390_v15 }
 0x7aa   : > { %4232 = vmatpush3.bf16.msra.mxu0 %v4375_v40 }
 0x7ac   : > { %3663 = vmatpush1.bf16.msra.mxu1 %v4370_v18 }
 0x7ad   : > { %3664 = vmatprep.subr.bf16.mxu1 %v4390_v15  ;;  %v3273_v15 = vpop.permute.xlu1 %3272 }
 0x7ae   : > { %v3324_v7 = vsel %vm1102_vm15, %v3235_v8, %v3273_v15 }
 0x7b0   : > { %3665 = vmatpush1.bf16.msra.mxu1 %v4371_v51 }
 0x7b1   : > { %v3277_v22 = vpop.permute.xlu1 %3276 }
 0x7b2   : > { %v3332_v19 = vsel %vm1102_vm15, %v3241_v36, %v3277_v22 }
 0x7b3   : > { %3675 = vmatmul.mubr.bf16.vlgmr.msra.gmra.mrb[64].mxu1 %v3320_v1 }
 0x7b4   : > { %4070 = vmatprep.mubr.msk.bf16.mxu1 %vm1102_vm15, %v3283_v26 }
 0x7bb   : > { %3683 = vmatmul.mubr.bf16.gmra.mrb[68].mxu1 %v3324_v7 }
 0x7bc   : > { %4071 = vmatprep.mubr.msk.bf16.mxu1 %vm1102_vm15, %v3286_v62 }
 0x7c3   : > { %3691 = vmatmul.mubr.bf16.gmra.mrb[72].mxu1 %v3328_v6 }
 0x7c4   : > { %4072 = vmatprep.mubr.msk.bf16.mxu1 %vm1102_vm15, %v3289_v2 }
 0x7cb   : > { %3699 = vmatmul.mubr.bf16.gmra.mrb[76].mxu1 %v3332_v19 }
 0x856   : > { %v4184_v42 = vpop.f32.mrb[48].mxu1 }
 0x857   : > { %v4185_v23 = vpop.f32.mrb[49].mxu1 }
 0x858   : > { %v4186_v48 = vadd.f32 %v4185_v23, %v4184_v42  ;;  %v4187_v28 = vpop.f32.mrb[50].mxu1 }
 0x859   : > { %v4188_v32 = vpop.f32.mrb[51].mxu1 }
 0x85a   : > { %v4189_v34 = vadd.f32 %v4188_v32, %v4187_v28  ;;  %v3612_v59 = vadd.f32 %v4186_v48, %v4040_v58 }
 0x85c   : > { %v3615_v26 = vadd.f32 %v4189_v34, %v4040_v58 }
 0x860   : > { %v4190_v17 = vpop.f32.mrb[52].mxu1 }
 0x861   : > { %v4191_v41 = vpop.f32.mrb[53].mxu1 }
 0x862   : > { %v4192_v43 = vadd.f32 %v4191_v41, %v4190_v17  ;;  %v4193_v46 = vpop.f32.mrb[54].mxu1 }
 0x863   : > { %v4194_v52 = vpop.f32.mrb[55].mxu1 }
 0x864   : > { %v4195_v56 = vadd.f32 %v4194_v52, %v4193_v46  ;;  %v3620_v62 = vadd.f32 %v4192_v43, %v4040_v58 }
 0x866   : > { %v3623_v16 = vadd.f32 %v4195_v56, %v4040_v58 }
 0x86c   : > { %v4196_v44 = vpop.f32.mrb[56].mxu1 }
 0x86d   : > { %v4197_v45 = vpop.f32.mrb[57].mxu1 }
 0x86e   : > { %v4198_v47 = vadd.f32 %v4197_v45, %v4196_v44  ;;  %v4199_v49 = vpop.f32.mrb[58].mxu1 }
 0x86f   : > { %v4200_v61 = vpop.f32.mrb[59].mxu1 }
 0x870   : > { %v4201_v10 = vadd.f32 %v4200_v61, %v4199_v49  ;;  %v3628_v35 = vadd.f32 %v4198_v47, %v4040_v58 }
 0x872   : > { %v3631_v28 = vadd.f32 %v4201_v10, %v4040_v58 }
 0x875   : > { %v4202_v25 = vpop.f32.mrb[60].mxu1 }
 0x876   : > { %v4203_v30 = vpop.f32.mrb[61].mxu1 }
 0x877   : > { %v4204_v18 = vadd.f32 %v4203_v30, %v4202_v25  ;;  %v4205_v51 = vpop.f32.mrb[62].mxu1 }
 0x878   : > { %v4206_v55 = vpop.f32.mrb[63].mxu1 }
 0x879   : > { %v4207_v57 = vadd.f32 %v4206_v55, %v4205_v51  ;;  %v3636_v47 = vadd.f32 %v4204_v18, %v4040_v58 }
 0x886   : > { %v3676_v63 = vpop.f32.mrb[64].mxu1 }
 0x887   : > { %v3677_v0 = vadd.f32 %v3676_v63, %v3612_v59  ;;  %v3678_v1 = vpop.f32.mrb[65].mxu1  ;;  %v3639_v59 = vadd.f32 %v4207_v57, %v4040_v58 }
 0x888   : > { %v3679_v12 = vpop.f32.mrb[66].mxu1 }
 0x889   : > { %v3707_v3 = vmax.f32 %v3677_v0, 0.0  ;;  %v3680_v15 = vadd.f32 %v3679_v12, %v3615_v26  ;;  %v3681_v31 = vpop.f32.mrb[67].mxu1 }
 0x88b   : > { %v3715_v21 = vadd.f32 %v3707_v3, %v5525_v50  ;;  %v3708_v8 = vmax.f32 %v3680_v15, 0.0 }
 0x88d   : > { %v3716_v7 = vadd.f32 %v3708_v8, %v5527_v20  ;;  %v3723_v53 = vsel %vm1102_vm15, %v3715_v21, 0.0 }
 0x88e   : > { %v3684_v14 = vpop.f32.mrb[68].mxu1 }
 0x88f   : > { %v3724_v5 = vsel %vm1102_vm15, %v3716_v7, 0.0  ;;  %v3685_v37 = vadd.f32 %v3684_v14, %v3620_v62  ;;  %v3686_v38 = vpop.f32.mrb[69].mxu1 }
 0x890   : > { %v3725_v6 = vadd.f32 %v3724_v5, %v3723_v53  ;;  %v3687_v2 = vpop.f32.mrb[70].mxu1 }
 0x891   : > { %v3709_v13 = vmax.f32 %v3685_v37, 0.0  ;;  %v3688_v33 = vadd.f32 %v3687_v2, %v3623_v16  ;;  %v3689_v22 = vpop.f32.mrb[71].mxu1 }
 0x892   : > { %v3726_v36 = vrot.slane %v3725_v6, 4 }
 0x893   : > { %v3717_v50 = vadd.f32 %v3709_v13, %v5549_v54  ;;  %v3710_v19 = vmax.f32 %v3688_v33, 0.0 }
 0x894   : > { %v3727_v24 = vadd.f32 %v3726_v36, %v3725_v6 }
 0x895   : > { %v3718_v20 = vadd.f32 %v3710_v19, %v5551_v9  ;;  %v3732_v40 = vsel %vm1102_vm15, %v3717_v50, 0.0 }
 0x896   : > { %v3728_v27 = vrot.slane %v3727_v24, 2  ;;  %v3692_v60 = vpop.f32.mrb[72].mxu1 }
 0x897   : > { %v3733_v42 = vsel %vm1102_vm15, %v3718_v20, 0.0  ;;  %v3693_v23 = vadd.f32 %v3692_v60, %v3628_v35  ;;  %v3694_v48 = vpop.f32.mrb[73].mxu1 }
 0x898   : > { %v3729_v32 = vadd.f32 %v3728_v27, %v3727_v24  ;;  %v3734_v34 = vadd.f32 %v3733_v42, %v3732_v40  ;;  %v3695_v17 = vpop.f32.mrb[74].mxu1 }
 0x899   : > { %v3711_v41 = vmax.f32 %v3693_v23, 0.0  ;;  %v3696_v43 = vadd.f32 %v3695_v17, %v3631_v28  ;;  %v3697_v54 = vpop.f32.mrb[75].mxu1  ;;  %v4073_v28 = vld [vmem:[%s6007_s14] ss:$0 sm:$0xff] }
 0x89a   : > { %v3730_v46 = vrot.slane %v3729_v32, 1  ;;  %v3735_v52 = vrot.slane %v3734_v34, 4 }
 0x89b   : > { %v3719_v9 = vadd.f32 %v3711_v41, %v5574_v11  ;;  %v3712_v56 = vmax.f32 %v3696_v43, 0.0 }
 0x89c   : > { %v3736_v44 = vadd.f32 %v3735_v52, %v3734_v34  ;;  %v3731_v49 = vadd.f32 %v3730_v46, %v3729_v32 }
 0x89d   : > { %v3720_v45 = vadd.f32 %v3712_v56, %v5576_v29  ;;  %v3741_v10 = vsel %vm1102_vm15, %v3719_v9, 0.0 }
 0x89e   : > { %v3737_v61 = vrot.slane %v3736_v44, 2  ;;  %v3700_v25 = vpop.f32.mrb[76].mxu1  ;;  %v3760_v3 = vmul.f32 0.0625, %v3731_v49 }
 0x89f   : > { %v3742_v30 = vsel %vm1102_vm15, %v3720_v45, 0.0  ;;  %v3701_v51 = vadd.f32 %v3700_v25, %v3636_v47  ;;  %v3702_v55 = vpop.f32.mrb[77].mxu1 }
 0x8a0   : > { %v3738_v63 = vadd.f32 %v3737_v61, %v3736_v44  ;;  %v3743_v0 = vadd.f32 %v3742_v30, %v3741_v10  ;;  %v3703_v1 = vpop.f32.mrb[78].mxu1  ;;  %v3764_v62 = vpack.c.bf16 %v3760_v3, %v3760_v3 }
 0x8a1   : > { %v3713_v26 = vmax.f32 %v3701_v51, 0.0  ;;  %v3704_v11 = vadd.f32 %v3703_v1, %v3639_v59  ;;  %v3705_v12 = vpop.f32.mrb[79].mxu1 }
 0x8a2   : > { %v3739_v15 = vrot.slane %v3738_v63, 1  ;;  %v3744_v29 = vrot.slane %v3743_v0, 4  ;;  %v3787_v16 = vunpack.c.l.b16 %v3764_v62 }
 0x8a3   : > { %v3721_v18 = vadd.f32 %v3713_v26, %v5598_v39  ;;  %v3714_v31 = vmax.f32 %v3704_v11, 0.0 }
 0x8a4   : > { %v3740_v21 = vadd.f32 %v3739_v15, %v3738_v63  ;;  %v3745_v8 = vadd.f32 %v3744_v29, %v3743_v0 }
 0x8a5   : > { %v3722_v7 = vadd.f32 %v3714_v31, %v5600_v4  ;;  %v3750_v57 = vsel %vm1102_vm15, %v3721_v18, 0.0 }
 0x8a6   : > { %v3761_v14 = vmul.f32 0.0625, %v3740_v21  ;;  %v3746_v53 = vrot.slane %v3745_v8, 2 }
 0x8a7   : > { %v3751_v58 = vsel %vm1102_vm15, %v3722_v7, 0.0 }
 0x8a8   : > { %v3765_v5 = vpack.c.bf16 %v3761_v14, %v3761_v14  ;;  %v3747_v37 = vadd.f32 %v3746_v53, %v3745_v8  ;;  %v3752_v38 = vadd.f32 %v3751_v58, %v3750_v57 }
 0x8aa   : > { %v3788_v6 = vunpack.c.l.b16 %v3765_v5  ;;  %v3748_v2 = vrot.slane %v3747_v37, 1  ;;  %v3753_v39 = vrot.slane %v3752_v38, 4 }
 0x8ac   : > { %v3792_v13 = vsel %vm3791_vm1, %v3788_v6, %v3787_v16  ;;  %v3749_v33 = vadd.f32 %v3748_v2, %v3747_v37  ;;  %v3754_v22 = vadd.f32 %v3753_v39, %v3752_v38 }
 0x8ae   : > { %v3762_v36 = vmul.f32 0.0625, %v3749_v33  ;;  %v3755_v4 = vrot.slane %v3754_v22, 2 }
 0x8b0   : > { %v3766_v50 = vpack.c.bf16 %v3762_v36, %v3762_v36  ;;  %v3756_v19 = vadd.f32 %v3755_v4, %v3754_v22 }
 0x8b2   : > { %v3789_v24 = vunpack.c.l.b16 %v3766_v50  ;;  %v3757_v20 = vrot.slane %v3756_v19, 1 }
 0x8b4   : > { %v3794_v35 = vsel %vm3793_vm2, %v3789_v24, %v3792_v13  ;;  %v3758_v27 = vadd.f32 %v3757_v20, %v3756_v19 }
 0x8b6   : > { %v3763_v60 = vmul.f32 0.0625, %v3758_v27 }
 0x8b8   : > { %v3767_v40 = vpack.c.bf16 %v3763_v60, %v3763_v60 }
 0x8ba   : > { %v3790_v42 = vunpack.c.l.b16 %v3767_v40 }
 0x8bc   : > { %v3796_v23 = vsel %vm3795_vm3, %v3790_v42, %v3794_v35 }
 0x8bd   : > { %v3797_v48 = vpack.c.b16 %v3796_v23, %v3796_v23 }
 0x8bf   : > { %4234 = vmatmul.mubr.msk.bf16.vlgmr.msra.gmra.mrb[56].mxu0 %vm1102_vm15, %v3797_v48 }
 0x992   : > { %v3859_v32 = vpop.f32.mrb[56].mxu0 }
 0x993   : > { %v3860_v34 = vadd.f32 %v4073_v28, %v3859_v32  ;;  %v4235_v17 = vpop.f32.mrb[57].mxu0 }
 0x994   : > { %v3862_v41 = vpop.f32.mrb[58].mxu0 }
 0x995   : > { %3866 = vst.msk [vmem:[%s497_s20] sm:$0xf] %vm3865_vm4, %v3860_v34  ;;  %v4236_v43 = vpop.f32.mrb[59].mxu0 }
 0x996 PF: > { %s25_s18 = sadd.s32 1, %s4382_s18  }
 0x997   : > { %p22_p5 = scmp.ge.s32.totalorder %s25_s18, 4  }
 0x999   :  { %24 = sbr.rel (!%p22_p5) target bundleno = 1 (0x1), region = 110 }

</bundles_post_ra>
